<compile_context>
chip_gen: v6e
topology: v6e:2x2x1
jax: 0.10.0
libtpu: 0.0.40
codegen_flags: <defaults>
</compile_context>

<pallas_src>
import functools

import jax
import jax.numpy as jnp
from jax import lax
from jax.experimental import pallas as pl
from jax.experimental.pallas import tpu as pltpu

# ----------------------- synthetic vocabulary constants -----------------------
NUMBER_OF_PITCHES = 128
N_DURATIONS = 16
METRICAL_LEVELS = 5
LN_EPS = 1e-5


def _vmem():
    return pl.BlockSpec(memory_space=pltpu.MemorySpace.VMEM)


# =========================== fused forward kernel ===========================
def make_fused_kernel(num_layers, input_dim, hidden_dim, emb_dims):
    """Whole ArcPredictionModel forward as a single Pallas kernel body."""
    H = hidden_dim // 2          # per-direction hidden width
    HH = hidden_dim              # 2H = packed fwd|bwd hidden width
    G = 3 * H                    # per-direction gate width (r|z|n)
    D_pad = max(input_dim, hidden_dim)
    d_p, d_d, d_m = emb_dims['pitch'], emb_dims['duration'], emb_dims['metrical']
    V_P, V_D, V_M = NUMBER_OF_PITCHES, N_DURATIONS, METRICAL_LEVELS

    def kernel(idx_ref, emb_ref, arcs_ref, wih_ref, whh_ref, bias_ref,
               w1_ref, vec_ref, o_ref):
        T = idx_ref.shape[0]

        # ---------------- embedding lookup: one-hot MXU gathers ----------------
        idx = idx_ref[...]                              # (T, 4) int32
        emb = emb_ref[...]                              # (V_P+V_D+V_M, e_w) f32

        def gather(ids, vocab, row_off, width):
            cols = lax.broadcasted_iota(jnp.int32, (T, vocab), 1)
            oh = jnp.where(ids == cols, 1.0, 0.0)
            return jnp.dot(oh, emb[row_off:row_off + vocab, :width],
                           preferred_element_type=jnp.float32)

        x = jnp.concatenate([
            gather(idx[:, 0:1], V_P, 0, d_p),                     # pitch
            gather(idx[:, 2:3], V_D, V_P, d_d),                   # duration
            gather(idx[:, 3:4], V_M, V_P + V_D, d_m),             # metrical
        ], axis=-1)                                               # (T, input_dim)

        # ------ bidirectional multi-layer GRU, fwd/bwd packed along lanes ------
        # TODO(synk): on v7x the fwd/bwd halves could alternatively run on the 2
        # TensorCores via pl.core_map; kept single-core + lane-packed here.
        z = x
        for l in range(num_layers):
            if z.shape[1] < D_pad:                      # zero-pad layer input to D_pad
                z = jnp.concatenate(
                    [z, jnp.zeros((T, D_pad - z.shape[1]), jnp.float32)], axis=-1)
            wih = wih_ref[l]                            # (D_pad, 6H) bf16, [fwd r|z|n, bwd r|z|n]
            whh = whh_ref[l]                            # (2H, 6H)  bf16, block-diag, gate-major
            bias = bias_ref[l]                          # (2, 6H)   f32
            bih, bhh = bias[0:1, :], bias[1:2, :]

            # hoisted input projection for BOTH directions: one (T,D)@(D,6H) matmul
            gi = jnp.dot(z.astype(jnp.bfloat16), wih,
                         preferred_element_type=jnp.float32) + bih
            gi_f, gi_b = gi[:, :G], gi[:, G:]           # each (T, 3H), columns [r|z|n]

            h = jnp.zeros((1, HH), jnp.float32)         # packed [h_fwd | h_bwd]
            hs = [None] * T
            # TODO(synk): for production T replace the static unroll with
            # lax.fori_loop(..., unroll=k) writing into a (T, 2H) VMEM scratch.
            for s in range(T):
                tb = T - 1 - s                          # bwd time index for this step
                # input-side pre-activations (precomputed gi rows, off the h-chain)
                gi_rz = jnp.concatenate(
                    [gi_f[s:s + 1, 0:H], gi_b[tb:tb + 1, 0:H],
                     gi_f[s:s + 1, H:2 * H], gi_b[tb:tb + 1, H:2 * H]], axis=-1)
                gi_n = jnp.concatenate(
                    [gi_f[s:s + 1, 2 * H:3 * H], gi_b[tb:tb + 1, 2 * H:3 * H]], axis=-1)
                # ONE recurrent matmul per step for both directions (96 lanes)
                gh = jnp.dot(h.astype(jnp.bfloat16), whh,
                             preferred_element_type=jnp.float32) + bhh
                # gh column layout: [r_f, r_b, z_f, z_b, n_f, n_b]
                rz = jax.nn.sigmoid(gh[:, :4 * H] + gi_rz)      # one EUP push (r,z both dirs)
                r, zg = rz[:, :HH], rz[:, HH:]
                n = jnp.tanh(gi_n + r * gh[:, 4 * H:])          # one EUP push
                h = n + zg * (h - n)                            # shortened serial VPU chain
                hs[s] = h
            # per-time output row t = [fwd from step t | bwd from step T-1-t]
            z = jnp.concatenate(
                [jnp.concatenate([hs[t][:, :H], hs[T - 1 - t][:, H:]], axis=-1)
                 for t in range(T)], axis=0)                    # (T, hidden_dim)
            # inter-layer dropout -> identity (inference)

        # ----------------------- ArcDecoder (non-biaffine) -----------------------
        vec = vec_ref[...]                                       # (6, hidden) f32
        root, gamma, beta = vec[0:1, :], vec[1:2, :], vec[2:3, :]
        b1, w2, b2 = vec[3:4, :], vec[4:5, :], vec[5:6, 0:1]

        def layer_norm(v):                                       # shared self.norm (used twice)
            mu = jnp.mean(v, axis=-1, keepdims=True)
            var = jnp.mean((v - mu) ** 2, axis=-1, keepdims=True)
            return (v - mu) * lax.rsqrt(var + LN_EPS) * gamma + beta

        zf = layer_norm(jnp.concatenate([root, z], axis=0))      # (T+1, hidden)

        # in-kernel arc gather: one-hot (N_pad, T+1) selectors, gathered on the MXU
        arcs = arcs_ref[...]                                     # (N_pad, 2) int32
        n_pad = arcs.shape[0]
        cols = lax.broadcasted_iota(jnp.int32, (n_pad, T + 1), 1)
        oh0 = jnp.where(arcs[:, 0:1] == cols, 1.0, 0.0)
        oh1 = jnp.where(arcs[:, 1:2] == cols, 1.0, 0.0)
        z1 = jnp.dot(oh0, zf, preferred_element_type=jnp.float32)   # (N_pad, hidden)
        z2 = jnp.dot(oh1, zf, preferred_element_type=jnp.float32)
        cat = jnp.concatenate([z1, z2], axis=-1)                    # (N_pad, 2*hidden)

        # lin1 -> relu -> norm -> (dropout) -> lin2
        hdec = jnp.dot(cat.astype(jnp.bfloat16), w1_ref[...],
                       preferred_element_type=jnp.float32) + b1
        hdec = layer_norm(jnp.maximum(hdec, 0.0))
        # lane-dense (1, N_pad) scores: w2_row @ hdec^T  (N_pad is a multiple of 128)
        scores = lax.dot_general(w2, hdec, (((1,), (1,)), ((), ())),
                                 preferred_element_type=jnp.float32) + b2
        o_ref[...] = scores

    return kernel


# ================================ parameter init ================================
def init_params(key, input_dim, hidden_dim, num_layers, emb_dims):
    assert hidden_dim % 2 == 0
    h_dir = hidden_dim // 2
    keys = iter(jax.random.split(key, 256))

    def w(shape, scale=0.1):
        return (scale * jax.random.normal(next(keys), shape)).astype(jnp.float32)

    params = {
        'emb_pitch': w((NUMBER_OF_PITCHES, emb_dims['pitch'])),
        'emb_duration': w((N_DURATIONS, emb_dims['duration'])),
        'emb_metrical': w((METRICAL_LEVELS, emb_dims['metrical'])),
        'gru': [],
        # ArcDecoder
        'w_root': w((hidden_dim,)),       # root_linear weight (in=1) flattened
        'b_root': w((hidden_dim,)),
        'ln_g': jnp.ones((hidden_dim,), jnp.float32),
        'ln_b': jnp.zeros((hidden_dim,), jnp.float32),
        'w1a': w((hidden_dim, hidden_dim)),   # lin1 rows multiplying z[arc0]
        'w1b': w((hidden_dim, hidden_dim)),   # lin1 rows multiplying z[arc1]
        'b1': w((hidden_dim,)),
        'w2': w((hidden_dim,)),               # lin2 weight (out=1)
        'b2': w((1,)),
    }
    d_in = input_dim
    for _ in range(num_layers):
        layer = {}
        for dname in ('fwd', 'bwd'):
            layer[dname] = (
                w((d_in, 3 * h_dir)),        # wih  (gates r|z|n along columns)
                w((h_dir, h_dir)),           # whh_r  (per-gate recurrent weights)
                w((h_dir, h_dir)),           # whh_z
                w((h_dir, h_dir)),           # whh_n
                w((3 * h_dir,)),             # bih
                w((3 * h_dir,)),             # bhh
            )
        params['gru'].append(layer)
        d_in = hidden_dim
    return params


# ======================= wrapper-side operand slab packing ======================
def pack_operands(params, input_dim, hidden_dim, emb_dims):
    """One-time layout plumbing: ~35 tiny tensors -> 6 DMA slabs."""
    H = hidden_dim // 2
    L = len(params['gru'])
    D_pad = max(input_dim, hidden_dim)

    # --- embedding table slab (pitch rows, then duration, then metrical) ---
    e_w = max(emb_dims.values())

    def padw(t):
        return jnp.pad(t, ((0, 0), (0, e_w - t.shape[1])))

    emb_slab = jnp.concatenate([padw(params['emb_pitch']),
                                padw(params['emb_duration']),
                                padw(params['emb_metrical'])],
                               axis=0).astype(jnp.float32)

    # --- GRU slabs: direction-concat wih, block-diag gate-major whh ---
    wih_list, whh_list, bias_list = [], [], []
    for layer in params['gru']:
        wih_f, whh_r_f, whh_z_f, whh_n_f, bih_f, bhh_f = layer['fwd']
        wih_b, whh_r_b, whh_z_b, whh_n_b, bih_b, bhh_b = layer['bwd']
        d_in = wih_f.shape[0]
        wih_cat = jnp.concatenate([wih_f, wih_b], axis=1)           # (d_in, 6H)
        wih_list.append(jnp.pad(wih_cat, ((0, D_pad - d_in), (0, 0))))
        zro = jnp.zeros((H, H), jnp.float32)
        row_f = jnp.concatenate([whh_r_f, zro, whh_z_f, zro, whh_n_f, zro], axis=1)
        row_b = jnp.concatenate([zro, whh_r_b, zro, whh_z_b, zro, whh_n_b], axis=1)
        whh_list.append(jnp.concatenate([row_f, row_b], axis=0))    # (2H, 6H)
        bih_cat = jnp.concatenate([bih_f, bih_b])                   # (6H,) direction-major [r|z|n]
        bhh_pack = jnp.concatenate([bhh_f[0:H], bhh_b[0:H],
                                    bhh_f[H:2 * H], bhh_b[H:2 * H],
                                    bhh_f[2 * H:], bhh_b[2 * H:]])  # (6H,) gate-major
        bias_list.append(jnp.stack([bih_cat, bhh_pack], axis=0))    # (2, 6H)

    wih_slab = jnp.stack(wih_list, axis=0).astype(jnp.bfloat16)     # (L, D_pad, 6H)
    whh_slab = jnp.stack(whh_list, axis=0).astype(jnp.bfloat16)     # (L, 2H, 6H)
    bias_slab = jnp.stack(bias_list, axis=0).astype(jnp.float32)    # (L, 2, 6H)

    # --- decoder slabs ---
    w1 = jnp.concatenate([params['w1a'], params['w1b']],
                         axis=0).astype(jnp.bfloat16)               # (2*hidden, hidden)
    root_feat = params['w_root'] + params['b_root']                 # root_linear(ones(1,1))
    b2_row = jnp.zeros((hidden_dim,), jnp.float32).at[0].set(params['b2'][0])
    vec_slab = jnp.stack([root_feat, params['ln_g'], params['ln_b'],
                          params['b1'], params['w2'], b2_row],
                         axis=0).astype(jnp.float32)                # (6, hidden)

    return dict(emb=emb_slab, wih=wih_slab, whh=whh_slab, bias=bias_slab,
                w1=w1, vec=vec_slab)


# ================================ model forward =================================
def arc_prediction_forward(packed, note_features, pot_arcs, *,
                           input_dim, hidden_dim, emb_dims):
    num_layers = packed['wih'].shape[0]
    n_arcs = pot_arcs.shape[0]
    n_pad = ((n_arcs + 127) // 128) * 128                    # lane-dense decoder dim

    idx = note_features.astype(jnp.int32)                    # (T, 4)
    arcs = jnp.pad(pot_arcs.astype(jnp.int32), ((0, n_pad - n_arcs), (0, 0)))

    operands = (idx, packed['emb'], arcs, packed['wih'], packed['whh'],
                packed['bias'], packed['w1'], packed['vec'])

    # TODO(synk): when scaling T / hidden_dim / num_layers, tile the per-layer
    # input projection over time chunks and the decoder over arc chunks with a
    # grid instead of keeping everything VMEM-resident (v7x: 64 MiB VMEM).
    scores = pl.pallas_call(
        make_fused_kernel(num_layers, input_dim, hidden_dim, emb_dims),
        out_shape=jax.ShapeDtypeStruct((1, n_pad), jnp.float32),
        in_specs=[_vmem()] * len(operands),
        out_specs=_vmem(),
    )(*operands)
    return scores.reshape(-1)[:n_arcs]                       # (n_arcs,)


# ===================================== main =====================================
if __name__ == "__main__":
    SEQ_LEN = 8
    HIDDEN_DIM = 32
    NUM_LAYERS = 2
    EMB_DIMS = {'pitch': 16, 'duration': 8, 'metrical': 8}
    INPUT_DIM = sum(EMB_DIMS.values())          # 32
    N_ARCS = 16

    key = jax.random.PRNGKey(0)
    k_param, k_pitch, k_onset, k_dur, k_met, k_arcs = jax.random.split(key, 6)

    params = init_params(k_param, INPUT_DIM, HIDDEN_DIM, NUM_LAYERS, EMB_DIMS)
    packed = pack_operands(params, INPUT_DIM, HIDDEN_DIM, EMB_DIMS)

    # note_features columns: [pitch, onset(unused), duration, metrical]
    note_features = jnp.stack([
        jax.random.randint(k_pitch, (SEQ_LEN,), 0, NUMBER_OF_PITCHES),
        jax.random.randint(k_onset, (SEQ_LEN,), 0, 100),
        jax.random.randint(k_dur, (SEQ_LEN,), 0, N_DURATIONS),
        jax.random.randint(k_met, (SEQ_LEN,), 0, METRICAL_LEVELS),
    ], axis=1).astype(jnp.float32)                                   # (8, 4)

    # candidate arcs index into z after the root row is prepended -> [0, SEQ_LEN]
    pot_arcs = jax.random.randint(k_arcs, (N_ARCS, 2), 0, SEQ_LEN + 1).astype(jnp.int32)

    fwd = jax.jit(functools.partial(arc_prediction_forward,
                                    input_dim=INPUT_DIM,
                                    hidden_dim=HIDDEN_DIM,
                                    emb_dims=EMB_DIMS))
    out = fwd(packed, note_features, pot_arcs)
    jax.block_until_ready(out)
    assert out.shape == (N_ARCS,) and out.dtype == jnp.float32
    print("KERNEL_OK")
</pallas_src>

<mosaic_0001>
module attributes {stable_mosaic.version = 11 : i64} {
  func.func @kernel(%arg0: memref<8x4xi32, #tpu.memory_space<vmem>>, %arg1: memref<149x16xf32, #tpu.memory_space<vmem>>, %arg2: memref<128x2xi32, #tpu.memory_space<vmem>>, %arg3: memref<2x32x96xbf16, #tpu.memory_space<vmem>>, %arg4: memref<2x32x96xbf16, #tpu.memory_space<vmem>>, %arg5: memref<2x2x96xf32, #tpu.memory_space<vmem>>, %arg6: memref<64x32xbf16, #tpu.memory_space<vmem>>, %arg7: memref<6x32xf32, #tpu.memory_space<vmem>>, %arg8: memref<1x128xf32, #tpu.memory_space<vmem>>) attributes {dimension_semantics = [], scalar_prefetch = 0 : i64, scratch_operands = 0 : i64, tpu.core_type = #tpu.core_type<tc>} {
    %c0 = arith.constant 0 : index
    %c0_0 = arith.constant 0 : index
    %0 = vector.load %arg0[%c0, %c0_0] : memref<8x4xi32, #tpu.memory_space<vmem>>, vector<8x4xi32>
    %c0_1 = arith.constant 0 : index
    %c0_2 = arith.constant 0 : index
    %1 = vector.load %arg1[%c0_1, %c0_2] : memref<149x16xf32, #tpu.memory_space<vmem>>, vector<149x16xf32>
    %2 = vector.extract_strided_slice %0 {offsets = [0, 0], sizes = [8, 1], strides = [1, 1]} : vector<8x4xi32> to vector<8x1xi32>
    %3 = tpu.iota {dimensions = array<i32: 1>} : vector<8x128xi32>
    %4 = vector.broadcast %2 : vector<8x1xi32> to vector<8x128xi32>
    %5 = arith.cmpi eq, %4, %3 : vector<8x128xi32>
    %cst = arith.constant 1.000000e+00 : f32
    %cst_3 = arith.constant 0.000000e+00 : f32
    %6 = vector.broadcast %cst : f32 to vector<8x128xf32>
    %7 = vector.broadcast %cst_3 : f32 to vector<8x128xf32>
    %8 = arith.select %5, %6, %7 : vector<8x128xi1>, vector<8x128xf32>
    %9 = vector.extract_strided_slice %1 {offsets = [0, 0], sizes = [128, 16], strides = [1, 1]} : vector<149x16xf32> to vector<128x16xf32>
    %cst_4 = arith.constant dense<0.000000e+00> : vector<8x16xf32>
    %10 = tpu.matmul %8, %9, %cst_4 {dimension_numbers = #tpu.dot_dimension_numbers<[1], [0], [0], [1], [0, 0, 1, 1], [], []>} : vector<8x128xf32>, vector<128x16xf32>, vector<8x16xf32> -> vector<8x16xf32>
    %11 = vector.extract_strided_slice %0 {offsets = [0, 2], sizes = [8, 1], strides = [1, 1]} : vector<8x4xi32> to vector<8x1xi32>
    %12 = tpu.iota {dimensions = array<i32: 1>} : vector<8x16xi32>
    %13 = vector.broadcast %11 : vector<8x1xi32> to vector<8x16xi32>
    %14 = arith.cmpi eq, %13, %12 : vector<8x16xi32>
    %cst_5 = arith.constant 1.000000e+00 : f32
    %cst_6 = arith.constant 0.000000e+00 : f32
    %15 = vector.broadcast %cst_5 : f32 to vector<8x16xf32>
    %16 = vector.broadcast %cst_6 : f32 to vector<8x16xf32>
    %17 = arith.select %14, %15, %16 : vector<8x16xi1>, vector<8x16xf32>
    %18 = vector.extract_strided_slice %1 {offsets = [128, 0], sizes = [16, 8], strides = [1, 1]} : vector<149x16xf32> to vector<16x8xf32>
    %cst_7 = arith.constant dense<0.000000e+00> : vector<8x8xf32>
    %19 = tpu.matmul %17, %18, %cst_7 {dimension_numbers = #tpu.dot_dimension_numbers<[1], [0], [0], [1], [0, 0, 1, 1], [], []>} : vector<8x16xf32>, vector<16x8xf32>, vector<8x8xf32> -> vector<8x8xf32>
    %20 = vector.extract_strided_slice %0 {offsets = [0, 3], sizes = [8, 1], strides = [1, 1]} : vector<8x4xi32> to vector<8x1xi32>
    %21 = tpu.iota {dimensions = array<i32: 1>} : vector<8x5xi32>
    %22 = vector.broadcast %20 : vector<8x1xi32> to vector<8x5xi32>
    %23 = arith.cmpi eq, %22, %21 : vector<8x5xi32>
    %cst_8 = arith.constant 1.000000e+00 : f32
    %cst_9 = arith.constant 0.000000e+00 : f32
    %24 = vector.broadcast %cst_8 : f32 to vector<8x5xf32>
    %25 = vector.broadcast %cst_9 : f32 to vector<8x5xf32>
    %26 = arith.select %23, %24, %25 : vector<8x5xi1>, vector<8x5xf32>
    %27 = vector.extract_strided_slice %1 {offsets = [144, 0], sizes = [5, 8], strides = [1, 1]} : vector<149x16xf32> to vector<5x8xf32>
    %cst_10 = arith.constant dense<0.000000e+00> : vector<8x8xf32>
    %28 = tpu.matmul %26, %27, %cst_10 {dimension_numbers = #tpu.dot_dimension_numbers<[1], [0], [0], [1], [0, 0, 1, 1], [], []>} : vector<8x5xf32>, vector<5x8xf32>, vector<8x8xf32> -> vector<8x8xf32>
    %29 = tpu.concatenate %10, %19, %28 in 1 : vector<8x16xf32>, vector<8x8xf32>, vector<8x8xf32> -> vector<8x32xf32>
    %c0_11 = arith.constant 0 : index
    %c0_12 = arith.constant 0 : index
    %c0_13 = arith.constant 0 : index
    %30 = vector.load %arg3[%c0_11, %c0_12, %c0_13] : memref<2x32x96xbf16, #tpu.memory_space<vmem>>, vector<1x32x96xbf16>
    %31 = vector.shape_cast %30 : vector<1x32x96xbf16> to vector<32x96xbf16>
    %c0_14 = arith.constant 0 : index
    %c0_15 = arith.constant 0 : index
    %c0_16 = arith.constant 0 : index
    %32 = vector.load %arg4[%c0_14, %c0_15, %c0_16] : memref<2x32x96xbf16, #tpu.memory_space<vmem>>, vector<1x32x96xbf16>
    %33 = vector.shape_cast %32 : vector<1x32x96xbf16> to vector<32x96xbf16>
    %c0_17 = arith.constant 0 : index
    %c0_18 = arith.constant 0 : index
    %c0_19 = arith.constant 0 : index
    %34 = vector.load %arg5[%c0_17, %c0_18, %c0_19] : memref<2x2x96xf32, #tpu.memory_space<vmem>>, vector<1x2x96xf32>
    %35 = vector.shape_cast %34 : vector<1x2x96xf32> to vector<2x96xf32>
    %36 = vector.extract_strided_slice %35 {offsets = [0, 0], sizes = [1, 96], strides = [1, 1]} : vector<2x96xf32> to vector<1x96xf32>
    %37 = vector.extract_strided_slice %35 {offsets = [1, 0], sizes = [1, 96], strides = [1, 1]} : vector<2x96xf32> to vector<1x96xf32>
    %38 = arith.truncf %29 : vector<8x32xf32> to vector<8x32xbf16>
    %cst_20 = arith.constant dense<0.000000e+00> : vector<8x96xf32>
    %39 = tpu.matmul %38, %31, %cst_20 {dimension_numbers = #tpu.dot_dimension_numbers<[1], [0], [0], [1], [0, 0, 1, 1], [], []>} : vector<8x32xbf16>, vector<32x96xbf16>, vector<8x96xf32> -> vector<8x96xf32>
    %40 = vector.broadcast %36 : vector<1x96xf32> to vector<8x96xf32>
    %41 = arith.addf %39, %40 : vector<8x96xf32>
    %42 = vector.extract_strided_slice %41 {offsets = [0, 0], sizes = [8, 48], strides = [1, 1]} : vector<8x96xf32> to vector<8x48xf32>
    %43 = vector.extract_strided_slice %41 {offsets = [0, 48], sizes = [8, 48], strides = [1, 1]} : vector<8x96xf32> to vector<8x48xf32>
    %cst_21 = arith.constant 0.000000e+00 : f32
    %44 = vector.broadcast %cst_21 : f32 to vector<1x32xf32>
    %45 = vector.extract_strided_slice %42 {offsets = [0, 0], sizes = [1, 16], strides = [1, 1]} : vector<8x48xf32> to vector<1x16xf32>
    %46 = vector.extract_strided_slice %43 {offsets = [7, 0], sizes = [1, 16], strides = [1, 1]} : vector<8x48xf32> to vector<1x16xf32>
    %47 = vector.extract_strided_slice %42 {offsets = [0, 16], sizes = [1, 16], strides = [1, 1]} : vector<8x48xf32> to vector<1x16xf32>
    %48 = vector.extract_strided_slice %43 {offsets = [7, 16], sizes = [1, 16], strides = [1, 1]} : vector<8x48xf32> to vector<1x16xf32>
    %49 = tpu.concatenate %45, %46, %47, %48 in 1 : vector<1x16xf32>, vector<1x16xf32>, vector<1x16xf32>, vector<1x16xf32> -> vector<1x64xf32>
    %50 = vector.extract_strided_slice %42 {offsets = [0, 32], sizes = [1, 16], strides = [1, 1]} : vector<8x48xf32> to vector<1x16xf32>
    %51 = vector.extract_strided_slice %43 {offsets = [7, 32], sizes = [1, 16], strides = [1, 1]} : vector<8x48xf32> to vector<1x16xf32>
    %52 = tpu.concatenate %50, %51 in 1 : vector<1x16xf32>, vector<1x16xf32> -> vector<1x32xf32>
    %53 = arith.truncf %44 : vector<1x32xf32> to vector<1x32xbf16>
    %cst_22 = arith.constant dense<0.000000e+00> : vector<1x96xf32>
    %54 = tpu.matmul %53, %33, %cst_22 {dimension_numbers = #tpu.dot_dimension_numbers<[1], [0], [0], [1], [0, 0, 1, 1], [], []>} : vector<1x32xbf16>, vector<32x96xbf16>, vector<1x96xf32> -> vector<1x96xf32>
    %55 = arith.addf %54, %37 : vector<1x96xf32>
    %56 = vector.extract_strided_slice %55 {offsets = [0, 0], sizes = [1, 64], strides = [1, 1]} : vector<1x96xf32> to vector<1x64xf32>
    %57 = arith.addf %56, %49 : vector<1x64xf32>
    %58 = arith.negf %57 : vector<1x64xf32>
    %59 = math.exp %58 : vector<1x64xf32>
    %cst_23 = arith.constant 1.000000e+00 : f32
    %60 = vector.broadcast %cst_23 : f32 to vector<1x64xf32>
    %61 = arith.addf %60, %59 : vector<1x64xf32>
    %62 = arith.divf %60, %61 : vector<1x64xf32>
    %63 = vector.extract_strided_slice %62 {offsets = [0, 0], sizes = [1, 32], strides = [1, 1]} : vector<1x64xf32> to vector<1x32xf32>
    %64 = vector.extract_strided_slice %62 {offsets = [0, 32], sizes = [1, 32], strides = [1, 1]} : vector<1x64xf32> to vector<1x32xf32>
    %65 = vector.extract_strided_slice %55 {offsets = [0, 64], sizes = [1, 32], strides = [1, 1]} : vector<1x96xf32> to vector<1x32xf32>
    %66 = arith.mulf %63, %65 : vector<1x32xf32>
    %67 = arith.addf %52, %66 : vector<1x32xf32>
    %68 = math.tanh %67 : vector<1x32xf32>
    %69 = arith.subf %44, %68 : vector<1x32xf32>
    %70 = arith.mulf %64, %69 : vector<1x32xf32>
    %71 = arith.addf %68, %70 : vector<1x32xf32>
    %72 = vector.extract_strided_slice %42 {offsets = [1, 0], sizes = [1, 16], strides = [1, 1]} : vector<8x48xf32> to vector<1x16xf32>
    %73 = vector.extract_strided_slice %43 {offsets = [6, 0], sizes = [1, 16], strides = [1, 1]} : vector<8x48xf32> to vector<1x16xf32>
    %74 = vector.extract_strided_slice %42 {offsets = [1, 16], sizes = [1, 16], strides = [1, 1]} : vector<8x48xf32> to vector<1x16xf32>
    %75 = vector.extract_strided_slice %43 {offsets = [6, 16], sizes = [1, 16], strides = [1, 1]} : vector<8x48xf32> to vector<1x16xf32>
    %76 = tpu.concatenate %72, %73, %74, %75 in 1 : vector<1x16xf32>, vector<1x16xf32>, vector<1x16xf32>, vector<1x16xf32> -> vector<1x64xf32>
    %77 = vector.extract_strided_slice %42 {offsets = [1, 32], sizes = [1, 16], strides = [1, 1]} : vector<8x48xf32> to vector<1x16xf32>
    %78 = vector.extract_strided_slice %43 {offsets = [6, 32], sizes = [1, 16], strides = [1, 1]} : vector<8x48xf32> to vector<1x16xf32>
    %79 = tpu.concatenate %77, %78 in 1 : vector<1x16xf32>, vector<1x16xf32> -> vector<1x32xf32>
    %80 = arith.truncf %71 : vector<1x32xf32> to vector<1x32xbf16>
    %cst_24 = arith.constant dense<0.000000e+00> : vector<1x96xf32>
    %81 = tpu.matmul %80, %33, %cst_24 {dimension_numbers = #tpu.dot_dimension_numbers<[1], [0], [0], [1], [0, 0, 1, 1], [], []>} : vector<1x32xbf16>, vector<32x96xbf16>, vector<1x96xf32> -> vector<1x96xf32>
    %82 = arith.addf %81, %37 : vector<1x96xf32>
    %83 = vector.extract_strided_slice %82 {offsets = [0, 0], sizes = [1, 64], strides = [1, 1]} : vector<1x96xf32> to vector<1x64xf32>
    %84 = arith.addf %83, %76 : vector<1x64xf32>
    %85 = arith.negf %84 : vector<1x64xf32>
    %86 = math.exp %85 : vector<1x64xf32>
    %cst_25 = arith.constant 1.000000e+00 : f32
    %87 = vector.broadcast %cst_25 : f32 to vector<1x64xf32>
    %88 = arith.addf %87, %86 : vector<1x64xf32>
    %89 = arith.divf %87, %88 : vector<1x64xf32>
    %90 = vector.extract_strided_slice %89 {offsets = [0, 0], sizes = [1, 32], strides = [1, 1]} : vector<1x64xf32> to vector<1x32xf32>
    %91 = vector.extract_strided_slice %89 {offsets = [0, 32], sizes = [1, 32], strides = [1, 1]} : vector<1x64xf32> to vector<1x32xf32>
    %92 = vector.extract_strided_slice %82 {offsets = [0, 64], sizes = [1, 32], strides = [1, 1]} : vector<1x96xf32> to vector<1x32xf32>
    %93 = arith.mulf %90, %92 : vector<1x32xf32>
    %94 = arith.addf %79, %93 : vector<1x32xf32>
    %95 = math.tanh %94 : vector<1x32xf32>
    %96 = arith.subf %71, %95 : vector<1x32xf32>
    %97 = arith.mulf %91, %96 : vector<1x32xf32>
    %98 = arith.addf %95, %97 : vector<1x32xf32>
    %99 = vector.extract_strided_slice %42 {offsets = [2, 0], sizes = [1, 16], strides = [1, 1]} : vector<8x48xf32> to vector<1x16xf32>
    %100 = vector.extract_strided_slice %43 {offsets = [5, 0], sizes = [1, 16], strides = [1, 1]} : vector<8x48xf32> to vector<1x16xf32>
    %101 = vector.extract_strided_slice %42 {offsets = [2, 16], sizes = [1, 16], strides = [1, 1]} : vector<8x48xf32> to vector<1x16xf32>
    %102 = vector.extract_strided_slice %43 {offsets = [5, 16], sizes = [1, 16], strides = [1, 1]} : vector<8x48xf32> to vector<1x16xf32>
    %103 = tpu.concatenate %99, %100, %101, %102 in 1 : vector<1x16xf32>, vector<1x16xf32>, vector<1x16xf32>, vector<1x16xf32> -> vector<1x64xf32>
    %104 = vector.extract_strided_slice %42 {offsets = [2, 32], sizes = [1, 16], strides = [1, 1]} : vector<8x48xf32> to vector<1x16xf32>
    %105 = vector.extract_strided_slice %43 {offsets = [5, 32], sizes = [1, 16], strides = [1, 1]} : vector<8x48xf32> to vector<1x16xf32>
    %106 = tpu.concatenate %104, %105 in 1 : vector<1x16xf32>, vector<1x16xf32> -> vector<1x32xf32>
    %107 = arith.truncf %98 : vector<1x32xf32> to vector<1x32xbf16>
    %cst_26 = arith.constant dense<0.000000e+00> : vector<1x96xf32>
    %108 = tpu.matmul %107, %33, %cst_26 {dimension_numbers = #tpu.dot_dimension_numbers<[1], [0], [0], [1], [0, 0, 1, 1], [], []>} : vector<1x32xbf16>, vector<32x96xbf16>, vector<1x96xf32> -> vector<1x96xf32>
    %109 = arith.addf %108, %37 : vector<1x96xf32>
    %110 = vector.extract_strided_slice %109 {offsets = [0, 0], sizes = [1, 64], strides = [1, 1]} : vector<1x96xf32> to vector<1x64xf32>
    %111 = arith.addf %110, %103 : vector<1x64xf32>
    %112 = arith.negf %111 : vector<1x64xf32>
    %113 = math.exp %112 : vector<1x64xf32>
    %cst_27 = arith.constant 1.000000e+00 : f32
    %114 = vector.broadcast %cst_27 : f32 to vector<1x64xf32>
    %115 = arith.addf %114, %113 : vector<1x64xf32>
    %116 = arith.divf %114, %115 : vector<1x64xf32>
    %117 = vector.extract_strided_slice %116 {offsets = [0, 0], sizes = [1, 32], strides = [1, 1]} : vector<1x64xf32> to vector<1x32xf32>
    %118 = vector.extract_strided_slice %116 {offsets = [0, 32], sizes = [1, 32], strides = [1, 1]} : vector<1x64xf32> to vector<1x32xf32>
    %119 = vector.extract_strided_slice %109 {offsets = [0, 64], sizes = [1, 32], strides = [1, 1]} : vector<1x96xf32> to vector<1x32xf32>
    %120 = arith.mulf %117, %119 : vector<1x32xf32>
    %121 = arith.addf %106, %120 : vector<1x32xf32>
    %122 = math.tanh %121 : vector<1x32xf32>
    %123 = arith.subf %98, %122 : vector<1x32xf32>
    %124 = arith.mulf %118, %123 : vector<1x32xf32>
    %125 = arith.addf %122, %124 : vector<1x32xf32>
    %126 = vector.extract_strided_slice %42 {offsets = [3, 0], sizes = [1, 16], strides = [1, 1]} : vector<8x48xf32> to vector<1x16xf32>
    %127 = vector.extract_strided_slice %43 {offsets = [4, 0], sizes = [1, 16], strides = [1, 1]} : vector<8x48xf32> to vector<1x16xf32>
    %128 = vector.extract_strided_slice %42 {offsets = [3, 16], sizes = [1, 16], strides = [1, 1]} : vector<8x48xf32> to vector<1x16xf32>
    %129 = vector.extract_strided_slice %43 {offsets = [4, 16], sizes = [1, 16], strides = [1, 1]} : vector<8x48xf32> to vector<1x16xf32>
    %130 = tpu.concatenate %126, %127, %128, %129 in 1 : vector<1x16xf32>, vector<1x16xf32>, vector<1x16xf32>, vector<1x16xf32> -> vector<1x64xf32>
    %131 = vector.extract_strided_slice %42 {offsets = [3, 32], sizes = [1, 16], strides = [1, 1]} : vector<8x48xf32> to vector<1x16xf32>
    %132 = vector.extract_strided_slice %43 {offsets = [4, 32], sizes = [1, 16], strides = [1, 1]} : vector<8x48xf32> to vector<1x16xf32>
    %133 = tpu.concatenate %131, %132 in 1 : vector<1x16xf32>, vector<1x16xf32> -> vector<1x32xf32>
    %134 = arith.truncf %125 : vector<1x32xf32> to vector<1x32xbf16>
    %cst_28 = arith.constant dense<0.000000e+00> : vector<1x96xf32>
    %135 = tpu.matmul %134, %33, %cst_28 {dimension_numbers = #tpu.dot_dimension_numbers<[1], [0], [0], [1], [0, 0, 1, 1], [], []>} : vector<1x32xbf16>, vector<32x96xbf16>, vector<1x96xf32> -> vector<1x96xf32>
    %136 = arith.addf %135, %37 : vector<1x96xf32>
    %137 = vector.extract_strided_slice %136 {offsets = [0, 0], sizes = [1, 64], strides = [1, 1]} : vector<1x96xf32> to vector<1x64xf32>
    %138 = arith.addf %137, %130 : vector<1x64xf32>
    %139 = arith.negf %138 : vector<1x64xf32>
    %140 = math.exp %139 : vector<1x64xf32>
    %cst_29 = arith.constant 1.000000e+00 : f32
    %141 = vector.broadcast %cst_29 : f32 to vector<1x64xf32>
    %142 = arith.addf %141, %140 : vector<1x64xf32>
    %143 = arith.divf %141, %142 : vector<1x64xf32>
    %144 = vector.extract_strided_slice %143 {offsets = [0, 0], sizes = [1, 32], strides = [1, 1]} : vector<1x64xf32> to vector<1x32xf32>
    %145 = vector.extract_strided_slice %143 {offsets = [0, 32], sizes = [1, 32], strides = [1, 1]} : vector<1x64xf32> to vector<1x32xf32>
    %146 = vector.extract_strided_slice %136 {offsets = [0, 64], sizes = [1, 32], strides = [1, 1]} : vector<1x96xf32> to vector<1x32xf32>
    %147 = arith.mulf %144, %146 : vector<1x32xf32>
    %148 = arith.addf %133, %147 : vector<1x32xf32>
    %149 = math.tanh %148 : vector<1x32xf32>
    %150 = arith.subf %125, %149 : vector<1x32xf32>
    %151 = arith.mulf %145, %150 : vector<1x32xf32>
    %152 = arith.addf %149, %151 : vector<1x32xf32>
    %153 = vector.extract_strided_slice %42 {offsets = [4, 0], sizes = [1, 16], strides = [1, 1]} : vector<8x48xf32> to vector<1x16xf32>
    %154 = vector.extract_strided_slice %43 {offsets = [3, 0], sizes = [1, 16], strides = [1, 1]} : vector<8x48xf32> to vector<1x16xf32>
    %155 = vector.extract_strided_slice %42 {offsets = [4, 16], sizes = [1, 16], strides = [1, 1]} : vector<8x48xf32> to vector<1x16xf32>
    %156 = vector.extract_strided_slice %43 {offsets = [3, 16], sizes = [1, 16], strides = [1, 1]} : vector<8x48xf32> to vector<1x16xf32>
    %157 = tpu.concatenate %153, %154, %155, %156 in 1 : vector<1x16xf32>, vector<1x16xf32>, vector<1x16xf32>, vector<1x16xf32> -> vector<1x64xf32>
    %158 = vector.extract_strided_slice %42 {offsets = [4, 32], sizes = [1, 16], strides = [1, 1]} : vector<8x48xf32> to vector<1x16xf32>
    %159 = vector.extract_strided_slice %43 {offsets = [3, 32], sizes = [1, 16], strides = [1, 1]} : vector<8x48xf32> to vector<1x16xf32>
    %160 = tpu.concatenate %158, %159 in 1 : vector<1x16xf32>, vector<1x16xf32> -> vector<1x32xf32>
    %161 = arith.truncf %152 : vector<1x32xf32> to vector<1x32xbf16>
    %cst_30 = arith.constant dense<0.000000e+00> : vector<1x96xf32>
    %162 = tpu.matmul %161, %33, %cst_30 {dimension_numbers = #tpu.dot_dimension_numbers<[1], [0], [0], [1], [0, 0, 1, 1], [], []>} : vector<1x32xbf16>, vector<32x96xbf16>, vector<1x96xf32> -> vector<1x96xf32>
    %163 = arith.addf %162, %37 : vector<1x96xf32>
    %164 = vector.extract_strided_slice %163 {offsets = [0, 0], sizes = [1, 64], strides = [1, 1]} : vector<1x96xf32> to vector<1x64xf32>
    %165 = arith.addf %164, %157 : vector<1x64xf32>
    %166 = arith.negf %165 : vector<1x64xf32>
    %167 = math.exp %166 : vector<1x64xf32>
    %cst_31 = arith.constant 1.000000e+00 : f32
    %168 = vector.broadcast %cst_31 : f32 to vector<1x64xf32>
    %169 = arith.addf %168, %167 : vector<1x64xf32>
    %170 = arith.divf %168, %169 : vector<1x64xf32>
    %171 = vector.extract_strided_slice %170 {offsets = [0, 0], sizes = [1, 32], strides = [1, 1]} : vector<1x64xf32> to vector<1x32xf32>
    %172 = vector.extract_strided_slice %170 {offsets = [0, 32], sizes = [1, 32], strides = [1, 1]} : vector<1x64xf32> to vector<1x32xf32>
    %173 = vector.extract_strided_slice %163 {offsets = [0, 64], sizes = [1, 32], strides = [1, 1]} : vector<1x96xf32> to vector<1x32xf32>
    %174 = arith.mulf %171, %173 : vector<1x32xf32>
    %175 = arith.addf %160, %174 : vector<1x32xf32>
    %176 = math.tanh %175 : vector<1x32xf32>
    %177 = arith.subf %152, %176 : vector<1x32xf32>
    %178 = arith.mulf %172, %177 : vector<1x32xf32>
    %179 = arith.addf %176, %178 : vector<1x32xf32>
    %180 = vector.extract_strided_slice %42 {offsets = [5, 0], sizes = [1, 16], strides = [1, 1]} : vector<8x48xf32> to vector<1x16xf32>
    %181 = vector.extract_strided_slice %43 {offsets = [2, 0], sizes = [1, 16], strides = [1, 1]} : vector<8x48xf32> to vector<1x16xf32>
    %182 = vector.extract_strided_slice %42 {offsets = [5, 16], sizes = [1, 16], strides = [1, 1]} : vector<8x48xf32> to vector<1x16xf32>
    %183 = vector.extract_strided_slice %43 {offsets = [2, 16], sizes = [1, 16], strides = [1, 1]} : vector<8x48xf32> to vector<1x16xf32>
    %184 = tpu.concatenate %180, %181, %182, %183 in 1 : vector<1x16xf32>, vector<1x16xf32>, vector<1x16xf32>, vector<1x16xf32> -> vector<1x64xf32>
    %185 = vector.extract_strided_slice %42 {offsets = [5, 32], sizes = [1, 16], strides = [1, 1]} : vector<8x48xf32> to vector<1x16xf32>
    %186 = vector.extract_strided_slice %43 {offsets = [2, 32], sizes = [1, 16], strides = [1, 1]} : vector<8x48xf32> to vector<1x16xf32>
    %187 = tpu.concatenate %185, %186 in 1 : vector<1x16xf32>, vector<1x16xf32> -> vector<1x32xf32>
    %188 = arith.truncf %179 : vector<1x32xf32> to vector<1x32xbf16>
    %cst_32 = arith.constant dense<0.000000e+00> : vector<1x96xf32>
    %189 = tpu.matmul %188, %33, %cst_32 {dimension_numbers = #tpu.dot_dimension_numbers<[1], [0], [0], [1], [0, 0, 1, 1], [], []>} : vector<1x32xbf16>, vector<32x96xbf16>, vector<1x96xf32> -> vector<1x96xf32>
    %190 = arith.addf %189, %37 : vector<1x96xf32>
    %191 = vector.extract_strided_slice %190 {offsets = [0, 0], sizes = [1, 64], strides = [1, 1]} : vector<1x96xf32> to vector<1x64xf32>
    %192 = arith.addf %191, %184 : vector<1x64xf32>
    %193 = arith.negf %192 : vector<1x64xf32>
    %194 = math.exp %193 : vector<1x64xf32>
    %cst_33 = arith.constant 1.000000e+00 : f32
    %195 = vector.broadcast %cst_33 : f32 to vector<1x64xf32>
    %196 = arith.addf %195, %194 : vector<1x64xf32>
    %197 = arith.divf %195, %196 : vector<1x64xf32>
    %198 = vector.extract_strided_slice %197 {offsets = [0, 0], sizes = [1, 32], strides = [1, 1]} : vector<1x64xf32> to vector<1x32xf32>
    %199 = vector.extract_strided_slice %197 {offsets = [0, 32], sizes = [1, 32], strides = [1, 1]} : vector<1x64xf32> to vector<1x32xf32>
    %200 = vector.extract_strided_slice %190 {offsets = [0, 64], sizes = [1, 32], strides = [1, 1]} : vector<1x96xf32> to vector<1x32xf32>
    %201 = arith.mulf %198, %200 : vector<1x32xf32>
    %202 = arith.addf %187, %201 : vector<1x32xf32>
    %203 = math.tanh %202 : vector<1x32xf32>
    %204 = arith.subf %179, %203 : vector<1x32xf32>
    %205 = arith.mulf %199, %204 : vector<1x32xf32>
    %206 = arith.addf %203, %205 : vector<1x32xf32>
    %207 = vector.extract_strided_slice %42 {offsets = [6, 0], sizes = [1, 16], strides = [1, 1]} : vector<8x48xf32> to vector<1x16xf32>
    %208 = vector.extract_strided_slice %43 {offsets = [1, 0], sizes = [1, 16], strides = [1, 1]} : vector<8x48xf32> to vector<1x16xf32>
    %209 = vector.extract_strided_slice %42 {offsets = [6, 16], sizes = [1, 16], strides = [1, 1]} : vector<8x48xf32> to vector<1x16xf32>
    %210 = vector.extract_strided_slice %43 {offsets = [1, 16], sizes = [1, 16], strides = [1, 1]} : vector<8x48xf32> to vector<1x16xf32>
    %211 = tpu.concatenate %207, %208, %209, %210 in 1 : vector<1x16xf32>, vector<1x16xf32>, vector<1x16xf32>, vector<1x16xf32> -> vector<1x64xf32>
    %212 = vector.extract_strided_slice %42 {offsets = [6, 32], sizes = [1, 16], strides = [1, 1]} : vector<8x48xf32> to vector<1x16xf32>
    %213 = vector.extract_strided_slice %43 {offsets = [1, 32], sizes = [1, 16], strides = [1, 1]} : vector<8x48xf32> to vector<1x16xf32>
    %214 = tpu.concatenate %212, %213 in 1 : vector<1x16xf32>, vector<1x16xf32> -> vector<1x32xf32>
    %215 = arith.truncf %206 : vector<1x32xf32> to vector<1x32xbf16>
    %cst_34 = arith.constant dense<0.000000e+00> : vector<1x96xf32>
    %216 = tpu.matmul %215, %33, %cst_34 {dimension_numbers = #tpu.dot_dimension_numbers<[1], [0], [0], [1], [0, 0, 1, 1], [], []>} : vector<1x32xbf16>, vector<32x96xbf16>, vector<1x96xf32> -> vector<1x96xf32>
    %217 = arith.addf %216, %37 : vector<1x96xf32>
    %218 = vector.extract_strided_slice %217 {offsets = [0, 0], sizes = [1, 64], strides = [1, 1]} : vector<1x96xf32> to vector<1x64xf32>
    %219 = arith.addf %218, %211 : vector<1x64xf32>
    %220 = arith.negf %219 : vector<1x64xf32>
    %221 = math.exp %220 : vector<1x64xf32>
    %cst_35 = arith.constant 1.000000e+00 : f32
    %222 = vector.broadcast %cst_35 : f32 to vector<1x64xf32>
    %223 = arith.addf %222, %221 : vector<1x64xf32>
    %224 = arith.divf %222, %223 : vector<1x64xf32>
    %225 = vector.extract_strided_slice %224 {offsets = [0, 0], sizes = [1, 32], strides = [1, 1]} : vector<1x64xf32> to vector<1x32xf32>
    %226 = vector.extract_strided_slice %224 {offsets = [0, 32], sizes = [1, 32], strides = [1, 1]} : vector<1x64xf32> to vector<1x32xf32>
    %227 = vector.extract_strided_slice %217 {offsets = [0, 64], sizes = [1, 32], strides = [1, 1]} : vector<1x96xf32> to vector<1x32xf32>
    %228 = arith.mulf %225, %227 : vector<1x32xf32>
    %229 = arith.addf %214, %228 : vector<1x32xf32>
    %230 = math.tanh %229 : vector<1x32xf32>
    %231 = arith.subf %206, %230 : vector<1x32xf32>
    %232 = arith.mulf %226, %231 : vector<1x32xf32>
    %233 = arith.addf %230, %232 : vector<1x32xf32>
    %234 = vector.extract_strided_slice %42 {offsets = [7, 0], sizes = [1, 16], strides = [1, 1]} : vector<8x48xf32> to vector<1x16xf32>
    %235 = vector.extract_strided_slice %43 {offsets = [0, 0], sizes = [1, 16], strides = [1, 1]} : vector<8x48xf32> to vector<1x16xf32>
    %236 = vector.extract_strided_slice %42 {offsets = [7, 16], sizes = [1, 16], strides = [1, 1]} : vector<8x48xf32> to vector<1x16xf32>
    %237 = vector.extract_strided_slice %43 {offsets = [0, 16], sizes = [1, 16], strides = [1, 1]} : vector<8x48xf32> to vector<1x16xf32>
    %238 = tpu.concatenate %234, %235, %236, %237 in 1 : vector<1x16xf32>, vector<1x16xf32>, vector<1x16xf32>, vector<1x16xf32> -> vector<1x64xf32>
    %239 = vector.extract_strided_slice %42 {offsets = [7, 32], sizes = [1, 16], strides = [1, 1]} : vector<8x48xf32> to vector<1x16xf32>
    %240 = vector.extract_strided_slice %43 {offsets = [0, 32], sizes = [1, 16], strides = [1, 1]} : vector<8x48xf32> to vector<1x16xf32>
    %241 = tpu.concatenate %239, %240 in 1 : vector<1x16xf32>, vector<1x16xf32> -> vector<1x32xf32>
    %242 = arith.truncf %233 : vector<1x32xf32> to vector<1x32xbf16>
    %cst_36 = arith.constant dense<0.000000e+00> : vector<1x96xf32>
    %243 = tpu.matmul %242, %33, %cst_36 {dimension_numbers = #tpu.dot_dimension_numbers<[1], [0], [0], [1], [0, 0, 1, 1], [], []>} : vector<1x32xbf16>, vector<32x96xbf16>, vector<1x96xf32> -> vector<1x96xf32>
    %244 = arith.addf %243, %37 : vector<1x96xf32>
    %245 = vector.extract_strided_slice %244 {offsets = [0, 0], sizes = [1, 64], strides = [1, 1]} : vector<1x96xf32> to vector<1x64xf32>
    %246 = arith.addf %245, %238 : vector<1x64xf32>
    %247 = arith.negf %246 : vector<1x64xf32>
    %248 = math.exp %247 : vector<1x64xf32>
    %cst_37 = arith.constant 1.000000e+00 : f32
    %249 = vector.broadcast %cst_37 : f32 to vector<1x64xf32>
    %250 = arith.addf %249, %248 : vector<1x64xf32>
    %251 = arith.divf %249, %250 : vector<1x64xf32>
    %252 = vector.extract_strided_slice %251 {offsets = [0, 0], sizes = [1, 32], strides = [1, 1]} : vector<1x64xf32> to vector<1x32xf32>
    %253 = vector.extract_strided_slice %251 {offsets = [0, 32], sizes = [1, 32], strides = [1, 1]} : vector<1x64xf32> to vector<1x32xf32>
    %254 = vector.extract_strided_slice %244 {offsets = [0, 64], sizes = [1, 32], strides = [1, 1]} : vector<1x96xf32> to vector<1x32xf32>
    %255 = arith.mulf %252, %254 : vector<1x32xf32>
    %256 = arith.addf %241, %255 : vector<1x32xf32>
    %257 = math.tanh %256 : vector<1x32xf32>
    %258 = arith.subf %233, %257 : vector<1x32xf32>
    %259 = arith.mulf %253, %258 : vector<1x32xf32>
    %260 = arith.addf %257, %259 : vector<1x32xf32>
    %261 = vector.extract_strided_slice %71 {offsets = [0, 0], sizes = [1, 16], strides = [1, 1]} : vector<1x32xf32> to vector<1x16xf32>
    %262 = vector.extract_strided_slice %260 {offsets = [0, 16], sizes = [1, 16], strides = [1, 1]} : vector<1x32xf32> to vector<1x16xf32>
    %263 = tpu.concatenate %261, %262 in 1 : vector<1x16xf32>, vector<1x16xf32> -> vector<1x32xf32>
    %264 = vector.extract_strided_slice %98 {offsets = [0, 0], sizes = [1, 16], strides = [1, 1]} : vector<1x32xf32> to vector<1x16xf32>
    %265 = vector.extract_strided_slice %233 {offsets = [0, 16], sizes = [1, 16], strides = [1, 1]} : vector<1x32xf32> to vector<1x16xf32>
    %266 = tpu.concatenate %264, %265 in 1 : vector<1x16xf32>, vector<1x16xf32> -> vector<1x32xf32>
    %267 = vector.extract_strided_slice %125 {offsets = [0, 0], sizes = [1, 16], strides = [1, 1]} : vector<1x32xf32> to vector<1x16xf32>
    %268 = vector.extract_strided_slice %206 {offsets = [0, 16], sizes = [1, 16], strides = [1, 1]} : vector<1x32xf32> to vector<1x16xf32>
    %269 = tpu.concatenate %267, %268 in 1 : vector<1x16xf32>, vector<1x16xf32> -> vector<1x32xf32>
    %270 = vector.extract_strided_slice %152 {offsets = [0, 0], sizes = [1, 16], strides = [1, 1]} : vector<1x32xf32> to vector<1x16xf32>
    %271 = vector.extract_strided_slice %179 {offsets = [0, 16], sizes = [1, 16], strides = [1, 1]} : vector<1x32xf32> to vector<1x16xf32>
    %272 = tpu.concatenate %270, %271 in 1 : vector<1x16xf32>, vector<1x16xf32> -> vector<1x32xf32>
    %273 = vector.extract_strided_slice %179 {offsets = [0, 0], sizes = [1, 16], strides = [1, 1]} : vector<1x32xf32> to vector<1x16xf32>
    %274 = vector.extract_strided_slice %152 {offsets = [0, 16], sizes = [1, 16], strides = [1, 1]} : vector<1x32xf32> to vector<1x16xf32>
    %275 = tpu.concatenate %273, %274 in 1 : vector<1x16xf32>, vector<1x16xf32> -> vector<1x32xf32>
    %276 = vector.extract_strided_slice %206 {offsets = [0, 0], sizes = [1, 16], strides = [1, 1]} : vector<1x32xf32> to vector<1x16xf32>
    %277 = vector.extract_strided_slice %125 {offsets = [0, 16], sizes = [1, 16], strides = [1, 1]} : vector<1x32xf32> to vector<1x16xf32>
    %278 = tpu.concatenate %276, %277 in 1 : vector<1x16xf32>, vector<1x16xf32> -> vector<1x32xf32>
    %279 = vector.extract_strided_slice %233 {offsets = [0, 0], sizes = [1, 16], strides = [1, 1]} : vector<1x32xf32> to vector<1x16xf32>
    %280 = vector.extract_strided_slice %98 {offsets = [0, 16], sizes = [1, 16], strides = [1, 1]} : vector<1x32xf32> to vector<1x16xf32>
    %281 = tpu.concatenate %279, %280 in 1 : vector<1x16xf32>, vector<1x16xf32> -> vector<1x32xf32>
    %282 = vector.extract_strided_slice %260 {offsets = [0, 0], sizes = [1, 16], strides = [1, 1]} : vector<1x32xf32> to vector<1x16xf32>
    %283 = vector.extract_strided_slice %71 {offsets = [0, 16], sizes = [1, 16], strides = [1, 1]} : vector<1x32xf32> to vector<1x16xf32>
    %284 = tpu.concatenate %282, %283 in 1 : vector<1x16xf32>, vector<1x16xf32> -> vector<1x32xf32>
    %285 = tpu.concatenate %263, %266, %269, %272, %275, %278, %281, %284 in 0 : vector<1x32xf32>, vector<1x32xf32>, vector<1x32xf32>, vector<1x32xf32>, vector<1x32xf32>, vector<1x32xf32>, vector<1x32xf32>, vector<1x32xf32> -> vector<8x32xf32>
    %c1 = arith.constant 1 : index
    %c0_38 = arith.constant 0 : index
    %c0_39 = arith.constant 0 : index
    %286 = vector.load %arg3[%c1, %c0_38, %c0_39] : memref<2x32x96xbf16, #tpu.memory_space<vmem>>, vector<1x32x96xbf16>
    %287 = vector.shape_cast %286 : vector<1x32x96xbf16> to vector<32x96xbf16>
    %c1_40 = arith.constant 1 : index
    %c0_41 = arith.constant 0 : index
    %c0_42 = arith.constant 0 : index
    %288 = vector.load %arg4[%c1_40, %c0_41, %c0_42] : memref<2x32x96xbf16, #tpu.memory_space<vmem>>, vector<1x32x96xbf16>
    %289 = vector.shape_cast %288 : vector<1x32x96xbf16> to vector<32x96xbf16>
    %c1_43 = arith.constant 1 : index
    %c0_44 = arith.constant 0 : index
    %c0_45 = arith.constant 0 : index
    %290 = vector.load %arg5[%c1_43, %c0_44, %c0_45] : memref<2x2x96xf32, #tpu.memory_space<vmem>>, vector<1x2x96xf32>
    %291 = vector.shape_cast %290 : vector<1x2x96xf32> to vector<2x96xf32>
    %292 = vector.extract_strided_slice %291 {offsets = [0, 0], sizes = [1, 96], strides = [1, 1]} : vector<2x96xf32> to vector<1x96xf32>
    %293 = vector.extract_strided_slice %291 {offsets = [1, 0], sizes = [1, 96], strides = [1, 1]} : vector<2x96xf32> to vector<1x96xf32>
    %294 = arith.truncf %285 : vector<8x32xf32> to vector<8x32xbf16>
    %cst_46 = arith.constant dense<0.000000e+00> : vector<8x96xf32>
    %295 = tpu.matmul %294, %287, %cst_46 {dimension_numbers = #tpu.dot_dimension_numbers<[1], [0], [0], [1], [0, 0, 1, 1], [], []>} : vector<8x32xbf16>, vector<32x96xbf16>, vector<8x96xf32> -> vector<8x96xf32>
    %296 = vector.broadcast %292 : vector<1x96xf32> to vector<8x96xf32>
    %297 = arith.addf %295, %296 : vector<8x96xf32>
    %298 = vector.extract_strided_slice %297 {offsets = [0, 0], sizes = [8, 48], strides = [1, 1]} : vector<8x96xf32> to vector<8x48xf32>
    %299 = vector.extract_strided_slice %297 {offsets = [0, 48], sizes = [8, 48], strides = [1, 1]} : vector<8x96xf32> to vector<8x48xf32>
    %cst_47 = arith.constant 0.000000e+00 : f32
    %300 = vector.broadcast %cst_47 : f32 to vector<1x32xf32>
    %301 = vector.extract_strided_slice %298 {offsets = [0, 0], sizes = [1, 16], strides = [1, 1]} : vector<8x48xf32> to vector<1x16xf32>
    %302 = vector.extract_strided_slice %299 {offsets = [7, 0], sizes = [1, 16], strides = [1, 1]} : vector<8x48xf32> to vector<1x16xf32>
    %303 = vector.extract_strided_slice %298 {offsets = [0, 16], sizes = [1, 16], strides = [1, 1]} : vector<8x48xf32> to vector<1x16xf32>
    %304 = vector.extract_strided_slice %299 {offsets = [7, 16], sizes = [1, 16], strides = [1, 1]} : vector<8x48xf32> to vector<1x16xf32>
    %305 = tpu.concatenate %301, %302, %303, %304 in 1 : vector<1x16xf32>, vector<1x16xf32>, vector<1x16xf32>, vector<1x16xf32> -> vector<1x64xf32>
    %306 = vector.extract_strided_slice %298 {offsets = [0, 32], sizes = [1, 16], strides = [1, 1]} : vector<8x48xf32> to vector<1x16xf32>
    %307 = vector.extract_strided_slice %299 {offsets = [7, 32], sizes = [1, 16], strides = [1, 1]} : vector<8x48xf32> to vector<1x16xf32>
    %308 = tpu.concatenate %306, %307 in 1 : vector<1x16xf32>, vector<1x16xf32> -> vector<1x32xf32>
    %309 = arith.truncf %300 : vector<1x32xf32> to vector<1x32xbf16>
    %cst_48 = arith.constant dense<0.000000e+00> : vector<1x96xf32>
    %310 = tpu.matmul %309, %289, %cst_48 {dimension_numbers = #tpu.dot_dimension_numbers<[1], [0], [0], [1], [0, 0, 1, 1], [], []>} : vector<1x32xbf16>, vector<32x96xbf16>, vector<1x96xf32> -> vector<1x96xf32>
    %311 = arith.addf %310, %293 : vector<1x96xf32>
    %312 = vector.extract_strided_slice %311 {offsets = [0, 0], sizes = [1, 64], strides = [1, 1]} : vector<1x96xf32> to vector<1x64xf32>
    %313 = arith.addf %312, %305 : vector<1x64xf32>
    %314 = arith.negf %313 : vector<1x64xf32>
    %315 = math.exp %314 : vector<1x64xf32>
    %cst_49 = arith.constant 1.000000e+00 : f32
    %316 = vector.broadcast %cst_49 : f32 to vector<1x64xf32>
    %317 = arith.addf %316, %315 : vector<1x64xf32>
    %318 = arith.divf %316, %317 : vector<1x64xf32>
    %319 = vector.extract_strided_slice %318 {offsets = [0, 0], sizes = [1, 32], strides = [1, 1]} : vector<1x64xf32> to vector<1x32xf32>
    %320 = vector.extract_strided_slice %318 {offsets = [0, 32], sizes = [1, 32], strides = [1, 1]} : vector<1x64xf32> to vector<1x32xf32>
    %321 = vector.extract_strided_slice %311 {offsets = [0, 64], sizes = [1, 32], strides = [1, 1]} : vector<1x96xf32> to vector<1x32xf32>
    %322 = arith.mulf %319, %321 : vector<1x32xf32>
    %323 = arith.addf %308, %322 : vector<1x32xf32>
    %324 = math.tanh %323 : vector<1x32xf32>
    %325 = arith.subf %300, %324 : vector<1x32xf32>
    %326 = arith.mulf %320, %325 : vector<1x32xf32>
    %327 = arith.addf %324, %326 : vector<1x32xf32>
    %328 = vector.extract_strided_slice %298 {offsets = [1, 0], sizes = [1, 16], strides = [1, 1]} : vector<8x48xf32> to vector<1x16xf32>
    %329 = vector.extract_strided_slice %299 {offsets = [6, 0], sizes = [1, 16], strides = [1, 1]} : vector<8x48xf32> to vector<1x16xf32>
    %330 = vector.extract_strided_slice %298 {offsets = [1, 16], sizes = [1, 16], strides = [1, 1]} : vector<8x48xf32> to vector<1x16xf32>
    %331 = vector.extract_strided_slice %299 {offsets = [6, 16], sizes = [1, 16], strides = [1, 1]} : vector<8x48xf32> to vector<1x16xf32>
    %332 = tpu.concatenate %328, %329, %330, %331 in 1 : vector<1x16xf32>, vector<1x16xf32>, vector<1x16xf32>, vector<1x16xf32> -> vector<1x64xf32>
    %333 = vector.extract_strided_slice %298 {offsets = [1, 32], sizes = [1, 16], strides = [1, 1]} : vector<8x48xf32> to vector<1x16xf32>
    %334 = vector.extract_strided_slice %299 {offsets = [6, 32], sizes = [1, 16], strides = [1, 1]} : vector<8x48xf32> to vector<1x16xf32>
    %335 = tpu.concatenate %333, %334 in 1 : vector<1x16xf32>, vector<1x16xf32> -> vector<1x32xf32>
    %336 = arith.truncf %327 : vector<1x32xf32> to vector<1x32xbf16>
    %cst_50 = arith.constant dense<0.000000e+00> : vector<1x96xf32>
    %337 = tpu.matmul %336, %289, %cst_50 {dimension_numbers = #tpu.dot_dimension_numbers<[1], [0], [0], [1], [0, 0, 1, 1], [], []>} : vector<1x32xbf16>, vector<32x96xbf16>, vector<1x96xf32> -> vector<1x96xf32>
    %338 = arith.addf %337, %293 : vector<1x96xf32>
    %339 = vector.extract_strided_slice %338 {offsets = [0, 0], sizes = [1, 64], strides = [1, 1]} : vector<1x96xf32> to vector<1x64xf32>
    %340 = arith.addf %339, %332 : vector<1x64xf32>
    %341 = arith.negf %340 : vector<1x64xf32>
    %342 = math.exp %341 : vector<1x64xf32>
    %cst_51 = arith.constant 1.000000e+00 : f32
    %343 = vector.broadcast %cst_51 : f32 to vector<1x64xf32>
    %344 = arith.addf %343, %342 : vector<1x64xf32>
    %345 = arith.divf %343, %344 : vector<1x64xf32>
    %346 = vector.extract_strided_slice %345 {offsets = [0, 0], sizes = [1, 32], strides = [1, 1]} : vector<1x64xf32> to vector<1x32xf32>
    %347 = vector.extract_strided_slice %345 {offsets = [0, 32], sizes = [1, 32], strides = [1, 1]} : vector<1x64xf32> to vector<1x32xf32>
    %348 = vector.extract_strided_slice %338 {offsets = [0, 64], sizes = [1, 32], strides = [1, 1]} : vector<1x96xf32> to vector<1x32xf32>
    %349 = arith.mulf %346, %348 : vector<1x32xf32>
    %350 = arith.addf %335, %349 : vector<1x32xf32>
    %351 = math.tanh %350 : vector<1x32xf32>
    %352 = arith.subf %327, %351 : vector<1x32xf32>
    %353 = arith.mulf %347, %352 : vector<1x32xf32>
    %354 = arith.addf %351, %353 : vector<1x32xf32>
    %355 = vector.extract_strided_slice %298 {offsets = [2, 0], sizes = [1, 16], strides = [1, 1]} : vector<8x48xf32> to vector<1x16xf32>
    %356 = vector.extract_strided_slice %299 {offsets = [5, 0], sizes = [1, 16], strides = [1, 1]} : vector<8x48xf32> to vector<1x16xf32>
    %357 = vector.extract_strided_slice %298 {offsets = [2, 16], sizes = [1, 16], strides = [1, 1]} : vector<8x48xf32> to vector<1x16xf32>
    %358 = vector.extract_strided_slice %299 {offsets = [5, 16], sizes = [1, 16], strides = [1, 1]} : vector<8x48xf32> to vector<1x16xf32>
    %359 = tpu.concatenate %355, %356, %357, %358 in 1 : vector<1x16xf32>, vector<1x16xf32>, vector<1x16xf32>, vector<1x16xf32> -> vector<1x64xf32>
    %360 = vector.extract_strided_slice %298 {offsets = [2, 32], sizes = [1, 16], strides = [1, 1]} : vector<8x48xf32> to vector<1x16xf32>
    %361 = vector.extract_strided_slice %299 {offsets = [5, 32], sizes = [1, 16], strides = [1, 1]} : vector<8x48xf32> to vector<1x16xf32>
    %362 = tpu.concatenate %360, %361 in 1 : vector<1x16xf32>, vector<1x16xf32> -> vector<1x32xf32>
    %363 = arith.truncf %354 : vector<1x32xf32> to vector<1x32xbf16>
    %cst_52 = arith.constant dense<0.000000e+00> : vector<1x96xf32>
    %364 = tpu.matmul %363, %289, %cst_52 {dimension_numbers = #tpu.dot_dimension_numbers<[1], [0], [0], [1], [0, 0, 1, 1], [], []>} : vector<1x32xbf16>, vector<32x96xbf16>, vector<1x96xf32> -> vector<1x96xf32>
    %365 = arith.addf %364, %293 : vector<1x96xf32>
    %366 = vector.extract_strided_slice %365 {offsets = [0, 0], sizes = [1, 64], strides = [1, 1]} : vector<1x96xf32> to vector<1x64xf32>
    %367 = arith.addf %366, %359 : vector<1x64xf32>
    %368 = arith.negf %367 : vector<1x64xf32>
    %369 = math.exp %368 : vector<1x64xf32>
    %cst_53 = arith.constant 1.000000e+00 : f32
    %370 = vector.broadcast %cst_53 : f32 to vector<1x64xf32>
    %371 = arith.addf %370, %369 : vector<1x64xf32>
    %372 = arith.divf %370, %371 : vector<1x64xf32>
    %373 = vector.extract_strided_slice %372 {offsets = [0, 0], sizes = [1, 32], strides = [1, 1]} : vector<1x64xf32> to vector<1x32xf32>
    %374 = vector.extract_strided_slice %372 {offsets = [0, 32], sizes = [1, 32], strides = [1, 1]} : vector<1x64xf32> to vector<1x32xf32>
    %375 = vector.extract_strided_slice %365 {offsets = [0, 64], sizes = [1, 32], strides = [1, 1]} : vector<1x96xf32> to vector<1x32xf32>
    %376 = arith.mulf %373, %375 : vector<1x32xf32>
    %377 = arith.addf %362, %376 : vector<1x32xf32>
    %378 = math.tanh %377 : vector<1x32xf32>
    %379 = arith.subf %354, %378 : vector<1x32xf32>
    %380 = arith.mulf %374, %379 : vector<1x32xf32>
    %381 = arith.addf %378, %380 : vector<1x32xf32>
    %382 = vector.extract_strided_slice %298 {offsets = [3, 0], sizes = [1, 16], strides = [1, 1]} : vector<8x48xf32> to vector<1x16xf32>
    %383 = vector.extract_strided_slice %299 {offsets = [4, 0], sizes = [1, 16], strides = [1, 1]} : vector<8x48xf32> to vector<1x16xf32>
    %384 = vector.extract_strided_slice %298 {offsets = [3, 16], sizes = [1, 16], strides = [1, 1]} : vector<8x48xf32> to vector<1x16xf32>
    %385 = vector.extract_strided_slice %299 {offsets = [4, 16], sizes = [1, 16], strides = [1, 1]} : vector<8x48xf32> to vector<1x16xf32>
    %386 = tpu.concatenate %382, %383, %384, %385 in 1 : vector<1x16xf32>, vector<1x16xf32>, vector<1x16xf32>, vector<1x16xf32> -> vector<1x64xf32>
    %387 = vector.extract_strided_slice %298 {offsets = [3, 32], sizes = [1, 16], strides = [1, 1]} : vector<8x48xf32> to vector<1x16xf32>
    %388 = vector.extract_strided_slice %299 {offsets = [4, 32], sizes = [1, 16], strides = [1, 1]} : vector<8x48xf32> to vector<1x16xf32>
    %389 = tpu.concatenate %387, %388 in 1 : vector<1x16xf32>, vector<1x16xf32> -> vector<1x32xf32>
    %390 = arith.truncf %381 : vector<1x32xf32> to vector<1x32xbf16>
    %cst_54 = arith.constant dense<0.000000e+00> : vector<1x96xf32>
    %391 = tpu.matmul %390, %289, %cst_54 {dimension_numbers = #tpu.dot_dimension_numbers<[1], [0], [0], [1], [0, 0, 1, 1], [], []>} : vector<1x32xbf16>, vector<32x96xbf16>, vector<1x96xf32> -> vector<1x96xf32>
    %392 = arith.addf %391, %293 : vector<1x96xf32>
    %393 = vector.extract_strided_slice %392 {offsets = [0, 0], sizes = [1, 64], strides = [1, 1]} : vector<1x96xf32> to vector<1x64xf32>
    %394 = arith.addf %393, %386 : vector<1x64xf32>
    %395 = arith.negf %394 : vector<1x64xf32>
    %396 = math.exp %395 : vector<1x64xf32>
    %cst_55 = arith.constant 1.000000e+00 : f32
    %397 = vector.broadcast %cst_55 : f32 to vector<1x64xf32>
    %398 = arith.addf %397, %396 : vector<1x64xf32>
    %399 = arith.divf %397, %398 : vector<1x64xf32>
    %400 = vector.extract_strided_slice %399 {offsets = [0, 0], sizes = [1, 32], strides = [1, 1]} : vector<1x64xf32> to vector<1x32xf32>
    %401 = vector.extract_strided_slice %399 {offsets = [0, 32], sizes = [1, 32], strides = [1, 1]} : vector<1x64xf32> to vector<1x32xf32>
    %402 = vector.extract_strided_slice %392 {offsets = [0, 64], sizes = [1, 32], strides = [1, 1]} : vector<1x96xf32> to vector<1x32xf32>
    %403 = arith.mulf %400, %402 : vector<1x32xf32>
    %404 = arith.addf %389, %403 : vector<1x32xf32>
    %405 = math.tanh %404 : vector<1x32xf32>
    %406 = arith.subf %381, %405 : vector<1x32xf32>
    %407 = arith.mulf %401, %406 : vector<1x32xf32>
    %408 = arith.addf %405, %407 : vector<1x32xf32>
    %409 = vector.extract_strided_slice %298 {offsets = [4, 0], sizes = [1, 16], strides = [1, 1]} : vector<8x48xf32> to vector<1x16xf32>
    %410 = vector.extract_strided_slice %299 {offsets = [3, 0], sizes = [1, 16], strides = [1, 1]} : vector<8x48xf32> to vector<1x16xf32>
    %411 = vector.extract_strided_slice %298 {offsets = [4, 16], sizes = [1, 16], strides = [1, 1]} : vector<8x48xf32> to vector<1x16xf32>
    %412 = vector.extract_strided_slice %299 {offsets = [3, 16], sizes = [1, 16], strides = [1, 1]} : vector<8x48xf32> to vector<1x16xf32>
    %413 = tpu.concatenate %409, %410, %411, %412 in 1 : vector<1x16xf32>, vector<1x16xf32>, vector<1x16xf32>, vector<1x16xf32> -> vector<1x64xf32>
    %414 = vector.extract_strided_slice %298 {offsets = [4, 32], sizes = [1, 16], strides = [1, 1]} : vector<8x48xf32> to vector<1x16xf32>
    %415 = vector.extract_strided_slice %299 {offsets = [3, 32], sizes = [1, 16], strides = [1, 1]} : vector<8x48xf32> to vector<1x16xf32>
    %416 = tpu.concatenate %414, %415 in 1 : vector<1x16xf32>, vector<1x16xf32> -> vector<1x32xf32>
    %417 = arith.truncf %408 : vector<1x32xf32> to vector<1x32xbf16>
    %cst_56 = arith.constant dense<0.000000e+00> : vector<1x96xf32>
    %418 = tpu.matmul %417, %289, %cst_56 {dimension_numbers = #tpu.dot_dimension_numbers<[1], [0], [0], [1], [0, 0, 1, 1], [], []>} : vector<1x32xbf16>, vector<32x96xbf16>, vector<1x96xf32> -> vector<1x96xf32>
    %419 = arith.addf %418, %293 : vector<1x96xf32>
    %420 = vector.extract_strided_slice %419 {offsets = [0, 0], sizes = [1, 64], strides = [1, 1]} : vector<1x96xf32> to vector<1x64xf32>
    %421 = arith.addf %420, %413 : vector<1x64xf32>
    %422 = arith.negf %421 : vector<1x64xf32>
    %423 = math.exp %422 : vector<1x64xf32>
    %cst_57 = arith.constant 1.000000e+00 : f32
    %424 = vector.broadcast %cst_57 : f32 to vector<1x64xf32>
    %425 = arith.addf %424, %423 : vector<1x64xf32>
    %426 = arith.divf %424, %425 : vector<1x64xf32>
    %427 = vector.extract_strided_slice %426 {offsets = [0, 0], sizes = [1, 32], strides = [1, 1]} : vector<1x64xf32> to vector<1x32xf32>
    %428 = vector.extract_strided_slice %426 {offsets = [0, 32], sizes = [1, 32], strides = [1, 1]} : vector<1x64xf32> to vector<1x32xf32>
    %429 = vector.extract_strided_slice %419 {offsets = [0, 64], sizes = [1, 32], strides = [1, 1]} : vector<1x96xf32> to vector<1x32xf32>
    %430 = arith.mulf %427, %429 : vector<1x32xf32>
    %431 = arith.addf %416, %430 : vector<1x32xf32>
    %432 = math.tanh %431 : vector<1x32xf32>
    %433 = arith.subf %408, %432 : vector<1x32xf32>
    %434 = arith.mulf %428, %433 : vector<1x32xf32>
    %435 = arith.addf %432, %434 : vector<1x32xf32>
    %436 = vector.extract_strided_slice %298 {offsets = [5, 0], sizes = [1, 16], strides = [1, 1]} : vector<8x48xf32> to vector<1x16xf32>
    %437 = vector.extract_strided_slice %299 {offsets = [2, 0], sizes = [1, 16], strides = [1, 1]} : vector<8x48xf32> to vector<1x16xf32>
    %438 = vector.extract_strided_slice %298 {offsets = [5, 16], sizes = [1, 16], strides = [1, 1]} : vector<8x48xf32> to vector<1x16xf32>
    %439 = vector.extract_strided_slice %299 {offsets = [2, 16], sizes = [1, 16], strides = [1, 1]} : vector<8x48xf32> to vector<1x16xf32>
    %440 = tpu.concatenate %436, %437, %438, %439 in 1 : vector<1x16xf32>, vector<1x16xf32>, vector<1x16xf32>, vector<1x16xf32> -> vector<1x64xf32>
    %441 = vector.extract_strided_slice %298 {offsets = [5, 32], sizes = [1, 16], strides = [1, 1]} : vector<8x48xf32> to vector<1x16xf32>
    %442 = vector.extract_strided_slice %299 {offsets = [2, 32], sizes = [1, 16], strides = [1, 1]} : vector<8x48xf32> to vector<1x16xf32>
    %443 = tpu.concatenate %441, %442 in 1 : vector<1x16xf32>, vector<1x16xf32> -> vector<1x32xf32>
    %444 = arith.truncf %435 : vector<1x32xf32> to vector<1x32xbf16>
    %cst_58 = arith.constant dense<0.000000e+00> : vector<1x96xf32>
    %445 = tpu.matmul %444, %289, %cst_58 {dimension_numbers = #tpu.dot_dimension_numbers<[1], [0], [0], [1], [0, 0, 1, 1], [], []>} : vector<1x32xbf16>, vector<32x96xbf16>, vector<1x96xf32> -> vector<1x96xf32>
    %446 = arith.addf %445, %293 : vector<1x96xf32>
    %447 = vector.extract_strided_slice %446 {offsets = [0, 0], sizes = [1, 64], strides = [1, 1]} : vector<1x96xf32> to vector<1x64xf32>
    %448 = arith.addf %447, %440 : vector<1x64xf32>
    %449 = arith.negf %448 : vector<1x64xf32>
    %450 = math.exp %449 : vector<1x64xf32>
    %cst_59 = arith.constant 1.000000e+00 : f32
    %451 = vector.broadcast %cst_59 : f32 to vector<1x64xf32>
    %452 = arith.addf %451, %450 : vector<1x64xf32>
    %453 = arith.divf %451, %452 : vector<1x64xf32>
    %454 = vector.extract_strided_slice %453 {offsets = [0, 0], sizes = [1, 32], strides = [1, 1]} : vector<1x64xf32> to vector<1x32xf32>
    %455 = vector.extract_strided_slice %453 {offsets = [0, 32], sizes = [1, 32], strides = [1, 1]} : vector<1x64xf32> to vector<1x32xf32>
    %456 = vector.extract_strided_slice %446 {offsets = [0, 64], sizes = [1, 32], strides = [1, 1]} : vector<1x96xf32> to vector<1x32xf32>
    %457 = arith.mulf %454, %456 : vector<1x32xf32>
    %458 = arith.addf %443, %457 : vector<1x32xf32>
    %459 = math.tanh %458 : vector<1x32xf32>
    %460 = arith.subf %435, %459 : vector<1x32xf32>
    %461 = arith.mulf %455, %460 : vector<1x32xf32>
    %462 = arith.addf %459, %461 : vector<1x32xf32>
    %463 = vector.extract_strided_slice %298 {offsets = [6, 0], sizes = [1, 16], strides = [1, 1]} : vector<8x48xf32> to vector<1x16xf32>
    %464 = vector.extract_strided_slice %299 {offsets = [1, 0], sizes = [1, 16], strides = [1, 1]} : vector<8x48xf32> to vector<1x16xf32>
    %465 = vector.extract_strided_slice %298 {offsets = [6, 16], sizes = [1, 16], strides = [1, 1]} : vector<8x48xf32> to vector<1x16xf32>
    %466 = vector.extract_strided_slice %299 {offsets = [1, 16], sizes = [1, 16], strides = [1, 1]} : vector<8x48xf32> to vector<1x16xf32>
    %467 = tpu.concatenate %463, %464, %465, %466 in 1 : vector<1x16xf32>, vector<1x16xf32>, vector<1x16xf32>, vector<1x16xf32> -> vector<1x64xf32>
    %468 = vector.extract_strided_slice %298 {offsets = [6, 32], sizes = [1, 16], strides = [1, 1]} : vector<8x48xf32> to vector<1x16xf32>
    %469 = vector.extract_strided_slice %299 {offsets = [1, 32], sizes = [1, 16], strides = [1, 1]} : vector<8x48xf32> to vector<1x16xf32>
    %470 = tpu.concatenate %468, %469 in 1 : vector<1x16xf32>, vector<1x16xf32> -> vector<1x32xf32>
    %471 = arith.truncf %462 : vector<1x32xf32> to vector<1x32xbf16>
    %cst_60 = arith.constant dense<0.000000e+00> : vector<1x96xf32>
    %472 = tpu.matmul %471, %289, %cst_60 {dimension_numbers = #tpu.dot_dimension_numbers<[1], [0], [0], [1], [0, 0, 1, 1], [], []>} : vector<1x32xbf16>, vector<32x96xbf16>, vector<1x96xf32> -> vector<1x96xf32>
    %473 = arith.addf %472, %293 : vector<1x96xf32>
    %474 = vector.extract_strided_slice %473 {offsets = [0, 0], sizes = [1, 64], strides = [1, 1]} : vector<1x96xf32> to vector<1x64xf32>
    %475 = arith.addf %474, %467 : vector<1x64xf32>
    %476 = arith.negf %475 : vector<1x64xf32>
    %477 = math.exp %476 : vector<1x64xf32>
    %cst_61 = arith.constant 1.000000e+00 : f32
    %478 = vector.broadcast %cst_61 : f32 to vector<1x64xf32>
    %479 = arith.addf %478, %477 : vector<1x64xf32>
    %480 = arith.divf %478, %479 : vector<1x64xf32>
    %481 = vector.extract_strided_slice %480 {offsets = [0, 0], sizes = [1, 32], strides = [1, 1]} : vector<1x64xf32> to vector<1x32xf32>
    %482 = vector.extract_strided_slice %480 {offsets = [0, 32], sizes = [1, 32], strides = [1, 1]} : vector<1x64xf32> to vector<1x32xf32>
    %483 = vector.extract_strided_slice %473 {offsets = [0, 64], sizes = [1, 32], strides = [1, 1]} : vector<1x96xf32> to vector<1x32xf32>
    %484 = arith.mulf %481, %483 : vector<1x32xf32>
    %485 = arith.addf %470, %484 : vector<1x32xf32>
    %486 = math.tanh %485 : vector<1x32xf32>
    %487 = arith.subf %462, %486 : vector<1x32xf32>
    %488 = arith.mulf %482, %487 : vector<1x32xf32>
    %489 = arith.addf %486, %488 : vector<1x32xf32>
    %490 = vector.extract_strided_slice %298 {offsets = [7, 0], sizes = [1, 16], strides = [1, 1]} : vector<8x48xf32> to vector<1x16xf32>
    %491 = vector.extract_strided_slice %299 {offsets = [0, 0], sizes = [1, 16], strides = [1, 1]} : vector<8x48xf32> to vector<1x16xf32>
    %492 = vector.extract_strided_slice %298 {offsets = [7, 16], sizes = [1, 16], strides = [1, 1]} : vector<8x48xf32> to vector<1x16xf32>
    %493 = vector.extract_strided_slice %299 {offsets = [0, 16], sizes = [1, 16], strides = [1, 1]} : vector<8x48xf32> to vector<1x16xf32>
    %494 = tpu.concatenate %490, %491, %492, %493 in 1 : vector<1x16xf32>, vector<1x16xf32>, vector<1x16xf32>, vector<1x16xf32> -> vector<1x64xf32>
    %495 = vector.extract_strided_slice %298 {offsets = [7, 32], sizes = [1, 16], strides = [1, 1]} : vector<8x48xf32> to vector<1x16xf32>
    %496 = vector.extract_strided_slice %299 {offsets = [0, 32], sizes = [1, 16], strides = [1, 1]} : vector<8x48xf32> to vector<1x16xf32>
    %497 = tpu.concatenate %495, %496 in 1 : vector<1x16xf32>, vector<1x16xf32> -> vector<1x32xf32>
    %498 = arith.truncf %489 : vector<1x32xf32> to vector<1x32xbf16>
    %cst_62 = arith.constant dense<0.000000e+00> : vector<1x96xf32>
    %499 = tpu.matmul %498, %289, %cst_62 {dimension_numbers = #tpu.dot_dimension_numbers<[1], [0], [0], [1], [0, 0, 1, 1], [], []>} : vector<1x32xbf16>, vector<32x96xbf16>, vector<1x96xf32> -> vector<1x96xf32>
    %500 = arith.addf %499, %293 : vector<1x96xf32>
    %501 = vector.extract_strided_slice %500 {offsets = [0, 0], sizes = [1, 64], strides = [1, 1]} : vector<1x96xf32> to vector<1x64xf32>
    %502 = arith.addf %501, %494 : vector<1x64xf32>
    %503 = arith.negf %502 : vector<1x64xf32>
    %504 = math.exp %503 : vector<1x64xf32>
    %cst_63 = arith.constant 1.000000e+00 : f32
    %505 = vector.broadcast %cst_63 : f32 to vector<1x64xf32>
    %506 = arith.addf %505, %504 : vector<1x64xf32>
    %507 = arith.divf %505, %506 : vector<1x64xf32>
    %508 = vector.extract_strided_slice %507 {offsets = [0, 0], sizes = [1, 32], strides = [1, 1]} : vector<1x64xf32> to vector<1x32xf32>
    %509 = vector.extract_strided_slice %507 {offsets = [0, 32], sizes = [1, 32], strides = [1, 1]} : vector<1x64xf32> to vector<1x32xf32>
    %510 = vector.extract_strided_slice %500 {offsets = [0, 64], sizes = [1, 32], strides = [1, 1]} : vector<1x96xf32> to vector<1x32xf32>
    %511 = arith.mulf %508, %510 : vector<1x32xf32>
    %512 = arith.addf %497, %511 : vector<1x32xf32>
    %513 = math.tanh %512 : vector<1x32xf32>
    %514 = arith.subf %489, %513 : vector<1x32xf32>
    %515 = arith.mulf %509, %514 : vector<1x32xf32>
    %516 = arith.addf %513, %515 : vector<1x32xf32>
    %517 = vector.extract_strided_slice %327 {offsets = [0, 0], sizes = [1, 16], strides = [1, 1]} : vector<1x32xf32> to vector<1x16xf32>
    %518 = vector.extract_strided_slice %516 {offsets = [0, 16], sizes = [1, 16], strides = [1, 1]} : vector<1x32xf32> to vector<1x16xf32>
    %519 = tpu.concatenate %517, %518 in 1 : vector<1x16xf32>, vector<1x16xf32> -> vector<1x32xf32>
    %520 = vector.extract_strided_slice %354 {offsets = [0, 0], sizes = [1, 16], strides = [1, 1]} : vector<1x32xf32> to vector<1x16xf32>
    %521 = vector.extract_strided_slice %489 {offsets = [0, 16], sizes = [1, 16], strides = [1, 1]} : vector<1x32xf32> to vector<1x16xf32>
    %522 = tpu.concatenate %520, %521 in 1 : vector<1x16xf32>, vector<1x16xf32> -> vector<1x32xf32>
    %523 = vector.extract_strided_slice %381 {offsets = [0, 0], sizes = [1, 16], strides = [1, 1]} : vector<1x32xf32> to vector<1x16xf32>
    %524 = vector.extract_strided_slice %462 {offsets = [0, 16], sizes = [1, 16], strides = [1, 1]} : vector<1x32xf32> to vector<1x16xf32>
    %525 = tpu.concatenate %523, %524 in 1 : vector<1x16xf32>, vector<1x16xf32> -> vector<1x32xf32>
    %526 = vector.extract_strided_slice %408 {offsets = [0, 0], sizes = [1, 16], strides = [1, 1]} : vector<1x32xf32> to vector<1x16xf32>
    %527 = vector.extract_strided_slice %435 {offsets = [0, 16], sizes = [1, 16], strides = [1, 1]} : vector<1x32xf32> to vector<1x16xf32>
    %528 = tpu.concatenate %526, %527 in 1 : vector<1x16xf32>, vector<1x16xf32> -> vector<1x32xf32>
    %529 = vector.extract_strided_slice %435 {offsets = [0, 0], sizes = [1, 16], strides = [1, 1]} : vector<1x32xf32> to vector<1x16xf32>
    %530 = vector.extract_strided_slice %408 {offsets = [0, 16], sizes = [1, 16], strides = [1, 1]} : vector<1x32xf32> to vector<1x16xf32>
    %531 = tpu.concatenate %529, %530 in 1 : vector<1x16xf32>, vector<1x16xf32> -> vector<1x32xf32>
    %532 = vector.extract_strided_slice %462 {offsets = [0, 0], sizes = [1, 16], strides = [1, 1]} : vector<1x32xf32> to vector<1x16xf32>
    %533 = vector.extract_strided_slice %381 {offsets = [0, 16], sizes = [1, 16], strides = [1, 1]} : vector<1x32xf32> to vector<1x16xf32>
    %534 = tpu.concatenate %532, %533 in 1 : vector<1x16xf32>, vector<1x16xf32> -> vector<1x32xf32>
    %535 = vector.extract_strided_slice %489 {offsets = [0, 0], sizes = [1, 16], strides = [1, 1]} : vector<1x32xf32> to vector<1x16xf32>
    %536 = vector.extract_strided_slice %354 {offsets = [0, 16], sizes = [1, 16], strides = [1, 1]} : vector<1x32xf32> to vector<1x16xf32>
    %537 = tpu.concatenate %535, %536 in 1 : vector<1x16xf32>, vector<1x16xf32> -> vector<1x32xf32>
    %538 = vector.extract_strided_slice %516 {offsets = [0, 0], sizes = [1, 16], strides = [1, 1]} : vector<1x32xf32> to vector<1x16xf32>
    %539 = vector.extract_strided_slice %327 {offsets = [0, 16], sizes = [1, 16], strides = [1, 1]} : vector<1x32xf32> to vector<1x16xf32>
    %540 = tpu.concatenate %538, %539 in 1 : vector<1x16xf32>, vector<1x16xf32> -> vector<1x32xf32>
    %541 = tpu.concatenate %519, %522, %525, %528, %531, %534, %537, %540 in 0 : vector<1x32xf32>, vector<1x32xf32>, vector<1x32xf32>, vector<1x32xf32>, vector<1x32xf32>, vector<1x32xf32>, vector<1x32xf32>, vector<1x32xf32> -> vector<8x32xf32>
    %c0_64 = arith.constant 0 : index
    %c0_65 = arith.constant 0 : index
    %542 = vector.load %arg7[%c0_64, %c0_65] : memref<6x32xf32, #tpu.memory_space<vmem>>, vector<6x32xf32>
    %543 = vector.extract_strided_slice %542 {offsets = [0, 0], sizes = [1, 32], strides = [1, 1]} : vector<6x32xf32> to vector<1x32xf32>
    %544 = vector.extract_strided_slice %542 {offsets = [1, 0], sizes = [1, 32], strides = [1, 1]} : vector<6x32xf32> to vector<1x32xf32>
    %545 = vector.extract_strided_slice %542 {offsets = [2, 0], sizes = [1, 32], strides = [1, 1]} : vector<6x32xf32> to vector<1x32xf32>
    %546 = vector.extract_strided_slice %542 {offsets = [3, 0], sizes = [1, 32], strides = [1, 1]} : vector<6x32xf32> to vector<1x32xf32>
    %547 = vector.extract_strided_slice %542 {offsets = [4, 0], sizes = [1, 32], strides = [1, 1]} : vector<6x32xf32> to vector<1x32xf32>
    %548 = vector.extract_strided_slice %542 {offsets = [5, 0], sizes = [1, 1], strides = [1, 1]} : vector<6x32xf32> to vector<1x1xf32>
    %549 = tpu.concatenate %543, %541 in 0 : vector<1x32xf32>, vector<8x32xf32> -> vector<9x32xf32>
    %cst_66 = arith.constant dense<0.000000e+00> : vector<9xf32>
    %550 = vector.multi_reduction <add>, %549, %cst_66 [1] : vector<9x32xf32> to vector<9xf32>
    %551 = vector.shape_cast %550 : vector<9xf32> to vector<9x1xf32>
    %cst_67 = arith.constant 3.200000e+01 : f32
    %552 = vector.broadcast %cst_67 : f32 to vector<9x1xf32>
    %553 = arith.divf %551, %552 : vector<9x1xf32>
    %554 = vector.broadcast %553 : vector<9x1xf32> to vector<9x32xf32>
    %555 = arith.subf %549, %554 : vector<9x32xf32>
    %556 = arith.mulf %555, %555 : vector<9x32xf32>
    %cst_68 = arith.constant dense<0.000000e+00> : vector<9xf32>
    %557 = vector.multi_reduction <add>, %556, %cst_68 [1] : vector<9x32xf32> to vector<9xf32>
    %558 = vector.shape_cast %557 : vector<9xf32> to vector<9x1xf32>
    %cst_69 = arith.constant 3.200000e+01 : f32
    %559 = vector.broadcast %cst_69 : f32 to vector<9x1xf32>
    %560 = arith.divf %558, %559 : vector<9x1xf32>
    %561 = vector.broadcast %553 : vector<9x1xf32> to vector<9x32xf32>
    %562 = arith.subf %549, %561 : vector<9x32xf32>
    %cst_70 = arith.constant 9.99999974E-6 : f32
    %563 = vector.broadcast %cst_70 : f32 to vector<9x1xf32>
    %564 = arith.addf %560, %563 : vector<9x1xf32>
    %565 = math.rsqrt %564 : vector<9x1xf32>
    %566 = vector.broadcast %565 : vector<9x1xf32> to vector<9x32xf32>
    %567 = arith.mulf %562, %566 : vector<9x32xf32>
    %568 = vector.broadcast %544 : vector<1x32xf32> to vector<9x32xf32>
    %569 = arith.mulf %567, %568 : vector<9x32xf32>
    %570 = vector.broadcast %545 : vector<1x32xf32> to vector<9x32xf32>
    %571 = arith.addf %569, %570 : vector<9x32xf32>
    %c0_71 = arith.constant 0 : index
    %c0_72 = arith.constant 0 : index
    %572 = vector.load %arg2[%c0_71, %c0_72] : memref<128x2xi32, #tpu.memory_space<vmem>>, vector<128x2xi32>
    %573 = tpu.iota {dimensions = array<i32: 1>} : vector<128x9xi32>
    %574 = vector.extract_strided_slice %572 {offsets = [0, 0], sizes = [128, 1], strides = [1, 1]} : vector<128x2xi32> to vector<128x1xi32>
    %575 = vector.broadcast %574 : vector<128x1xi32> to vector<128x9xi32>
    %576 = arith.cmpi eq, %575, %573 : vector<128x9xi32>
    %cst_73 = arith.constant 1.000000e+00 : f32
    %cst_74 = arith.constant 0.000000e+00 : f32
    %577 = vector.broadcast %cst_73 : f32 to vector<128x9xf32>
    %578 = vector.broadcast %cst_74 : f32 to vector<128x9xf32>
    %579 = arith.select %576, %577, %578 : vector<128x9xi1>, vector<128x9xf32>
    %580 = vector.extract_strided_slice %572 {offsets = [0, 1], sizes = [128, 1], strides = [1, 1]} : vector<128x2xi32> to vector<128x1xi32>
    %581 = vector.broadcast %580 : vector<128x1xi32> to vector<128x9xi32>
    %582 = arith.cmpi eq, %581, %573 : vector<128x9xi32>
    %cst_75 = arith.constant 1.000000e+00 : f32
    %cst_76 = arith.constant 0.000000e+00 : f32
    %583 = vector.broadcast %cst_75 : f32 to vector<128x9xf32>
    %584 = vector.broadcast %cst_76 : f32 to vector<128x9xf32>
    %585 = arith.select %582, %583, %584 : vector<128x9xi1>, vector<128x9xf32>
    %cst_77 = arith.constant dense<0.000000e+00> : vector<128x32xf32>
    %586 = tpu.matmul %579, %571, %cst_77 {dimension_numbers = #tpu.dot_dimension_numbers<[1], [0], [0], [1], [0, 0, 1, 1], [], []>} : vector<128x9xf32>, vector<9x32xf32>, vector<128x32xf32> -> vector<128x32xf32>
    %cst_78 = arith.constant dense<0.000000e+00> : vector<128x32xf32>
    %587 = tpu.matmul %585, %571, %cst_78 {dimension_numbers = #tpu.dot_dimension_numbers<[1], [0], [0], [1], [0, 0, 1, 1], [], []>} : vector<128x9xf32>, vector<9x32xf32>, vector<128x32xf32> -> vector<128x32xf32>
    %588 = tpu.concatenate %586, %587 in 1 : vector<128x32xf32>, vector<128x32xf32> -> vector<128x64xf32>
    %589 = arith.truncf %588 : vector<128x64xf32> to vector<128x64xbf16>
    %c0_79 = arith.constant 0 : index
    %c0_80 = arith.constant 0 : index
    %590 = vector.load %arg6[%c0_79, %c0_80] : memref<64x32xbf16, #tpu.memory_space<vmem>>, vector<64x32xbf16>
    %cst_81 = arith.constant dense<0.000000e+00> : vector<128x32xf32>
    %591 = tpu.matmul %589, %590, %cst_81 {dimension_numbers = #tpu.dot_dimension_numbers<[1], [0], [0], [1], [0, 0, 1, 1], [], []>} : vector<128x64xbf16>, vector<64x32xbf16>, vector<128x32xf32> -> vector<128x32xf32>
    %592 = vector.broadcast %546 : vector<1x32xf32> to vector<128x32xf32>
    %593 = arith.addf %591, %592 : vector<128x32xf32>
    %cst_82 = arith.constant 0.000000e+00 : f32
    %594 = vector.broadcast %cst_82 : f32 to vector<128x32xf32>
    %595 = arith.maximumf %593, %594 : vector<128x32xf32>
    %cst_83 = arith.constant dense<0.000000e+00> : vector<128xf32>
    %596 = vector.multi_reduction <add>, %595, %cst_83 [1] : vector<128x32xf32> to vector<128xf32>
    %597 = vector.shape_cast %596 : vector<128xf32> to vector<128x1xf32>
    %cst_84 = arith.constant 3.200000e+01 : f32
    %598 = vector.broadcast %cst_84 : f32 to vector<128x1xf32>
    %599 = arith.divf %597, %598 : vector<128x1xf32>
    %600 = vector.broadcast %599 : vector<128x1xf32> to vector<128x32xf32>
    %601 = arith.subf %595, %600 : vector<128x32xf32>
    %602 = arith.mulf %601, %601 : vector<128x32xf32>
    %cst_85 = arith.constant dense<0.000000e+00> : vector<128xf32>
    %603 = vector.multi_reduction <add>, %602, %cst_85 [1] : vector<128x32xf32> to vector<128xf32>
    %604 = vector.shape_cast %603 : vector<128xf32> to vector<128x1xf32>
    %cst_86 = arith.constant 3.200000e+01 : f32
    %605 = vector.broadcast %cst_86 : f32 to vector<128x1xf32>
    %606 = arith.divf %604, %605 : vector<128x1xf32>
    %607 = vector.broadcast %599 : vector<128x1xf32> to vector<128x32xf32>
    %608 = arith.subf %595, %607 : vector<128x32xf32>
    %cst_87 = arith.constant 9.99999974E-6 : f32
    %609 = vector.broadcast %cst_87 : f32 to vector<128x1xf32>
    %610 = arith.addf %606, %609 : vector<128x1xf32>
    %611 = math.rsqrt %610 : vector<128x1xf32>
    %612 = vector.broadcast %611 : vector<128x1xf32> to vector<128x32xf32>
    %613 = arith.mulf %608, %612 : vector<128x32xf32>
    %614 = vector.broadcast %544 : vector<1x32xf32> to vector<128x32xf32>
    %615 = arith.mulf %613, %614 : vector<128x32xf32>
    %616 = vector.broadcast %545 : vector<1x32xf32> to vector<128x32xf32>
    %617 = arith.addf %615, %616 : vector<128x32xf32>
    %cst_88 = arith.constant dense<0.000000e+00> : vector<1x128xf32>
    %618 = tpu.matmul %547, %617, %cst_88 {dimension_numbers = #tpu.dot_dimension_numbers<[1], [1], [0], [0], [0, 0, 1, 0], [], []>} : vector<1x32xf32>, vector<128x32xf32>, vector<1x128xf32> -> vector<1x128xf32>
    %619 = vector.broadcast %548 : vector<1x1xf32> to vector<1x128xf32>
    %620 = arith.addf %618, %619 : vector<1x128xf32>
    %c0_89 = arith.constant 0 : index
    %c0_90 = arith.constant 0 : index
    %621 = vector.load %arg8[%c0_89, %c0_90] : memref<1x128xf32, #tpu.memory_space<vmem>>, vector<1x128xf32>
    tpu.vector_store %arg8[%c0_89, %c0_90], %620 {strides = array<i32>} : memref<1x128xf32, #tpu.memory_space<vmem>>, vector<1x128xf32>,
    return
  }
}

</mosaic_0001>

<bundles_post_ra>
// kernel: arc_prediction_forward.1
= control target key start
LH: loop header
LB: loop body
LE: loop exit
PB: predicated region body
PF: predicated region fallthrough
CT: control target
= control target key end

     0   :  { %v3975_v0 = vmov 2   ;;  %v3976_v2 = vmov 0   ;;  %v3977_v4 = vmov 0.0   ;;  %vm3978_vm0 = vmmov 0   ;;  %s3981_s28 = smov 16   ;;  %s3982_s29 = smov 24   ;;  %s5222_s0 = inlined_call_operand.vmem [shape: s32[8,4], index: 0, kind: input, shape index: {}]   ;;  %s5223_s1 = inlined_call_operand.vmem [shape: f32[149,16], index: 1, kind: input, shape index: {}]   ;;  %s5224_s3 = inlined_call_operand.vmem [shape: bf16[2,32,96], index: 3, kind: input, shape index: {}]   ;;  %s5225_s4 = inlined_call_operand.vmem [shape: bf16[2,32,96], index: 4, kind: input, shape index: {}]   ;;  %s5226_s5 = inlined_call_operand.vmem [shape: f32[2,2,96], index: 5, kind: input, shape index: {}]   ;;  %s5227_s7 = inlined_call_operand.vmem [shape: f32[6,32], index: 7, kind: input, shape index: {}]   ;;  %s5228_s2 = inlined_call_operand.vmem [shape: s32[128,2], index: 2, kind: input, shape index: {}]   ;;  %s5229_s6 = inlined_call_operand.vmem [shape: bf16[64,32], index: 6, kind: input, shape index: {}]   ;;  %s5230_s8 = inlined_call_operand.vmem [shape: f32[1,128], index: 8, kind: output, shape index: {}]  }
   0x1   :  { %3783 = vset.pattern.permute.xlu0 %v3975_v0  ;;  %v30_v1 = vld [vmem:[%s5222_s0] sm:$0xff]  ;;  %3785 = vset.pattern.permute.xlu1 %v3976_v2  ;;  %v48_v3 = vld [vmem:[%s5223_s1 + $0x88] sm:$0xff]  ;;  %v46_v6 = vld [vmem:[%s5223_s1 + $0x78] sm:$0xff]  ;;  %v3979_v7 = vmov 3   ;;  %v50_v23 = vlaneseq  ;;  %vm132_vm1 = vcmask 130048   ;;  %vm215_vm3 = vcmask 1044480  }
   0x2   :  { %128 = vperm.xlu0 %3783, %v30_v1   ;;  %53 = vperm.xlu1 %3785, %v30_v1   ;;  %v47_v5 = vld [vmem:[%s5223_s1 + $0x80] sm:$0xff]  ;;  %v45_v8 = vld [vmem:[%s5223_s1 + $0x70] sm:$0xff]  ;;  %v44_v9 = vld [vmem:[%s5223_s1 + $0x68] sm:$0xff]  ;;  %v3980_v29 = vmov 1.0   ;;  %vm211_vm5 = vcmask 39936   ;;  %vm298_vm7 = vcmask 195584  }
   0x3   :  { %3499 = vmatprep.subr.mxu1 %v3977_v4  ;;  %3503 = vmatprep.mubr.msk.f32.mxu1 %vm3978_vm0, %v3977_v4  ;;  %v43_v10 = vld [vmem:[%s5223_s1 + $0x60] sm:$0xff]  ;;  %v42_v11 = vld [vmem:[%s5223_s1 + $0x58] sm:$0xff]  ;;  %v41_v12 = vld [vmem:[%s5223_s1 + $0x50] sm:$0xff]  ;;  %v4116_v24 = vand.u32 127, %v50_v23  ;;  %vm326_vm8 = vcmask 261120   ;;  %v4174_v47 = vshrl.u32 %v50_v23, 7 }
   0x4   :  { %3500 = vmatpush3.msra.mxu1 %v48_v3  ;;  %3464 = vmatprep.subr.mxu0 %v3977_v4  ;;  %v40_v13 = vld [vmem:[%s5223_s1 + $0x48] sm:$0xff]  ;;  %v39_v14 = vld [vmem:[%s5223_s1 + $0x40] sm:$0xff]  ;;  %v38_v15 = vld [vmem:[%s5223_s1 + $0x38] sm:$0xff]  ;;  %s3983_s10 = smov 96   ;;  %s3984_s0 = smov 112   ;;  %vm383_vm9 = vcmask 392192  }
   0x5   :  { %3501 = vmatprep.subr.mxu1 %v3977_v4  ;;  %3496 = vmatprep.mubr.msk.f32.mxu0 %vm3978_vm0, %v3977_v4  ;;  %v37_v16 = vld [vmem:[%s5223_s1 + $0x30] sm:$0xff]  ;;  %v36_v17 = vld [vmem:[%s5223_s1 + $0x28] sm:$0xff]  ;;  %v35_v18 = vld [vmem:[%s5223_s1 + $0x20] sm:$0xff]  ;;  %v312_v48 = vsub.s32 0, %v4174_v47  ;;  %s3985_s11 = smov 64   ;;  %s3986_s12 = smov 32  }
   0x6   :  { %3784 = vset.pattern.permute.xlu0 %v3979_v7  ;;  %3502 = vmatpush3.msra.mxu1 %v47_v5  ;;  %v34_v19 = vld [vmem:[%s5223_s1 + $0x18] sm:$0xff]  ;;  %v33_v20 = vld [vmem:[%s5223_s1 + $0x10] sm:$0xff]  ;;  %v32_v21 = vld [vmem:[%s5223_s1 + $0x8] sm:$0xff]  ;;  %vm1122_vm10 = vcmask 1040384   ;;  %vm1124_vm11 = vcmask 1041408   ;;  %vm1126_vm12 = vcmask 1042432  }
   0x7   :  { %207 = vperm.xlu0 %3784, %v30_v1   ;;  %3506 = vmatprep.subr.mxu1 %v3977_v4  ;;  %v31_v22 = vld [vmem:[%s5223_s1] sm:$0xff]  ;;  %v49_v27 = vld [vmem:[%s5223_s1 + $0x90] sm:$0x1f]  ;;  %v3830_v32 = vld [vmem:[%s5224_s3 + $0x8] sm:$0xff]   ;;  %vm1128_vm13 = vcmask 1043456   ;;  %vm1131_vm14 = vcmask 1045504  }
   0x8   :  { %3465 = vmatpush3.msra.mxu0 %v46_v6  ;;  %v3831_v33 = vld [vmem:[%s5224_s3] sm:$0xff]   ;;  %v4146_v34 = vld [vmem:[%s5225_s4 + $0x8] sm:$0xff]   ;;  %vm1133_vm15 = vcmask 1046528  }
   0x9   :  { %3466 = vmatprep.subr.mxu0 %v3977_v4  ;;  %v4153_v36 = vld [vmem:[%s5225_s4] sm:$0xff]  }
   0xa   :  { %3467 = vmatpush3.msra.mxu0 %v45_v8  ;;  %v308_v49 = vld [vmem:[%s5226_s5] sm:$0x3] }
   0xb   :  { %3468 = vmatprep.subr.mxu0 %v3977_v4  ;;  %v313_v50 = vrot.slane %v308_v49, %v312_v48  ;;  %v4187_v56 = vrot.slane %v308_v49, 1 }
   0xc   :  { %3469 = vmatpush3.msra.mxu0 %v44_v9 }
   0xd   :  { %3470 = vmatprep.subr.mxu0 %v3977_v4 }
   0xe   :  { %3471 = vmatpush3.msra.mxu0 %v43_v10 }
   0xf   :  { %3472 = vmatprep.subr.mxu0 %v3977_v4 }
  0x10   :  { %3473 = vmatpush3.msra.mxu0 %v42_v11 }
  0x11   :  { %3474 = vmatprep.subr.mxu0 %v3977_v4 }
  0x12   :  { %3475 = vmatpush3.msra.mxu0 %v41_v12 }
  0x13   :  { %3476 = vmatprep.subr.mxu0 %v3977_v4 }
  0x14   :  { %3477 = vmatpush3.msra.mxu0 %v40_v13 }
  0x15   :  { %3478 = vmatprep.subr.mxu0 %v3977_v4 }
  0x16   :  { %3479 = vmatpush3.msra.mxu0 %v39_v14 }
  0x17   :  { %3480 = vmatprep.subr.mxu0 %v3977_v4 }
  0x18   :  { %3481 = vmatpush3.msra.mxu0 %v38_v15 }
  0x19   :  { %3482 = vmatprep.subr.mxu0 %v3977_v4 }
  0x1a   :  { %3483 = vmatpush3.msra.mxu0 %v37_v16 }
  0x1b   :  { %3484 = vmatprep.subr.mxu0 %v3977_v4 }
  0x1c   :  { %3485 = vmatpush3.msra.mxu0 %v36_v17 }
  0x1d   :  { %3486 = vmatprep.subr.mxu0 %v3977_v4 }
  0x1e   :  { %3487 = vmatpush3.msra.mxu0 %v35_v18 }
  0x1f   :  { %3488 = vmatprep.subr.mxu0 %v3977_v4 }
  0x20   :  { %3489 = vmatpush3.msra.mxu0 %v34_v19 }
  0x21   :  { %3490 = vmatprep.subr.mxu0 %v3977_v4 }
  0x22   :  { %3491 = vmatpush3.msra.mxu0 %v33_v20 }
  0x23   :  { %3492 = vmatprep.subr.mxu0 %v3977_v4 }
  0x24   :  { %3493 = vmatpush3.msra.mxu0 %v32_v21 }
  0x25   :  { %3494 = vmatprep.subr.mxu0 %v3977_v4 }
  0x26   :  { %3495 = vmatpush3.msra.mxu0 %v31_v22 }
  0x27   :  { %3551 = vmatprep.subr.bf16.mxu0 %v3977_v4 }
  0x7d   :  { %v129_v25 = vpop.permute.xlu0 %128  ;;  %v54_v26 = vpop.permute.xlu1 %53 }
  0x7e   :  { %vm130_vm2 = vcmp.eq.s32.totalorder %v129_v25, %v4116_v24  ;;  %vm55_vm4 = vcmp.eq.s32.totalorder %v54_v26, %v4116_v24 }
  0x7f   :  { %v131_v28 = vsel %vm130_vm2, 1.0, %v3977_v4  ;;  %3497 = vmatmul.mubr.msk.f32.vlgmr.msra.gmra.mxu0 %vm55_vm4, %v3980_v29  ;;  %vm1970_vm2 = vcmask 253952  }
  0x80   :  { %3504 = vmatmul.mubr.msk.f32.vlgmr.msra.gmra.mxu1 %vm132_vm1, %v131_v28  ;;  %3555 = vmatprep.mubr.msk.bf16.mxu0 %vm3978_vm0, %v3977_v4 }
  0x81   :  { %3507 = vmatpush3.msk.msra.mxu1 %vm215_vm3, %v49_v27  ;;  %3508 = vmatprep.mubr.msk.f32.mxu1 %vm3978_vm0, %v3977_v4 }
  0x82   :  { %v208_v30 = vpop.permute.xlu0 %207  ;;  %3511 = vmatprep.subr.bf16.mxu1 %v3977_v4  ;;  %3552 = vmatpush3.bf16.msra.mxu0 %v4146_v34 }
  0x83   :  { %vm209_vm6 = vcmp.eq.s32.totalorder %v208_v30, %v4116_v24  ;;  %3553 = vmatprep.subr.bf16.mxu0 %v3977_v4 }
  0x84   :  { %v210_v31 = vsel %vm209_vm6, 1.0, %v3977_v4 }
  0x85   :  { %3509 = vmatmul.mubr.msk.f32.vlgmr.msra.gmra.mxu1 %vm211_vm5, %v210_v31 }
  0x86   :  { %3515 = vmatprep.mubr.msk.bf16.mxu1 %vm3978_vm0, %v3977_v4  ;;  %3512 = vmatpush3.bf16.msra.mxu1 %v3830_v32 }
  0x87   :  { %3513 = vmatprep.subr.bf16.mxu1 %v3977_v4  ;;  %3554 = vmatpush3.bf16.msra.mxu0 %v4153_v36 }
  0x88   :  { %3567 = vmatprep.subr.bf16.mxu0 %v3977_v4 }
  0x8a   :  { %3514 = vmatpush3.bf16.msra.mxu1 %v3831_v33 }
  0x8b   :  { %3519 = vmatprep.subr.bf16.mxu1 %v3977_v4 }
 0x13f   :  { %v123_v35 = vpop.f32.mrf.mxu0 }
 0x140   :  { %v202_v37 = vpop.f32.mrf.mxu1 }
 0x141   :  { %290 = vrot.lane.b32.xlu1 %v202_v37, %s3981_s28  ;;  %v3498_v38 = vpop.f32.mrf.mxu0 }
 0x142   :  { %v3505_v39 = vpop.f32.mrf.mxu1 }
 0x145   :  { %v285_v40 = vpop.f32.mrf.mxu1 }
 0x146   :  { %294 = vrot.lane.b32.xlu1 %v285_v40, %s3982_s29 }
 0x147   :  { %v3510_v41 = vpop.f32.mrf.mxu1 }
 0x1b3   :  { %v291_v42 = vpop.permute.xlu1 %290 }
 0x1b4   :  { %v297_v43 = vsel %vm132_vm1, %v123_v35, %v291_v42 }
 0x1b8   :  { %v295_v44 = vpop.permute.xlu1 %294 }
 0x1b9   :  { %v299_v45 = vsel %vm298_vm7, %v297_v43, %v295_v44 }
 0x1ba   :  { %v309_v46 = vpack.c.bf16 %v299_v45, %v299_v45 }
 0x1bc   :  { %3516 = vmatmul.mubr.msk.bf16.vlgmr.msra.gmra.mxu1 %vm326_vm8, %v309_v46 }
 0x1bd   :  { %3520 = vmatpush3.bf16.msra.mxu1 %v4146_v34  ;;  %3523 = vmatprep.mubr.msk.bf16.mxu1 %vm3978_vm0, %v3977_v4 }
 0x1be   :  { %3521 = vmatprep.subr.bf16.mxu1 %v3977_v4 }
 0x1c1   :  { %3522 = vmatpush3.bf16.msra.mxu1 %v4153_v36 }
 0x1c2   :  { %3527 = vmatprep.subr.bf16.mxu1 %v3977_v4 }
 0x1c4   :  { %3524 = vmatmul.mubr.bf16.vlgmr.msra.gmra.mxu1 %v3976_v2 }
 0x1c5   :  { %3528 = vmatpush3.bf16.msra.mxu1 %v4146_v34  ;;  %3531 = vmatprep.mubr.msk.bf16.mxu1 %vm3978_vm0, %v3977_v4 }
 0x1c6   :  { %3529 = vmatprep.subr.bf16.mxu1 %v3977_v4 }
 0x1c9   :  { %3530 = vmatpush3.bf16.msra.mxu1 %v4153_v36 }
 0x1ca   :  { %3535 = vmatprep.subr.bf16.mxu1 %v3977_v4 }
 0x27c   :  { %v364_v51 = vpop.f32.mrf.mxu1 }
 0x27d   :  { %v4182_v52 = vadd.f32 %v364_v51, %v313_v50 }
 0x27e   :  { %v3517_v53 = vpop.f32.mrf.mxu1 }
 0x27f   :  { %375 = vrot.lane.b32.xlu1 %v4182_v52, %s3981_s28  ;;  %v371_v54 = vrot.slane %v4182_v52, 7  ;;  %v475_v20 = vrot.slane %v4182_v52, 5 }
 0x280   :  { %v367_v55 = vpop.f32.mrf.mxu1 }
 0x281   :  { %372 = vrot.lane.b32.xlu0 %v371_v54, %s3983_s10 }
 0x282   :  { %v3518_v57 = vpop.f32.mrf.mxu1 }
 0x284   :  { %v444_v58 = vpop.f32.mrf.mxu1 }
 0x285   :  { %v445_v59 = vadd.f32 %v444_v58, %v4187_v56  ;;  %378 = vrot.lane.b32.xlu0 %v371_v54, %s3984_s0  ;;  %v568_v58 = vrot.slane %v4182_v52, 3 }
 0x286   :  { %v3525_v60 = vpop.f32.mrf.mxu1 }
 0x287   :  { %458 = vrot.lane.b32.xlu1 %v445_v59, %s3985_s11 }
 0x288   :  { %v447_v61 = vpop.f32.mrf.mxu1 }
 0x289   :  { %385 = vrot.lane.b32.xlu0 %v4182_v52, %s3983_s10 }
 0x28a   :  { %v3526_v62 = vpop.f32.mrf.mxu1 }
 0x28b   :  { %388 = vrot.lane.b32.xlu1 %v371_v54, %s3985_s11 }
 0x2f1   :  { %v4198_v1 = vpop.permute.xlu1 %375 }
 0x2f3   :  { %v373_v63 = vpop.permute.xlu0 %372 }
 0x2f4   :  { %v381_v0 = vsel %vm132_vm1, %v4182_v52, %v373_v63 }
 0x2f5   :  { %v382_v3 = vsel %vm326_vm8, %v381_v0, %v4198_v1 }
 0x2f7   :  { %v379_v5 = vpop.permute.xlu0 %378 }
 0x2f8   :  { %v4203_v6 = vsel %vm383_vm9, %v382_v3, %v379_v5 }
 0x2f9   :  { %v450_v7 = vadd.f32 %v445_v59, %v4203_v6  ;;  %v459_v11 = vpop.permute.xlu1 %458 }
 0x2fb   :  { %v3216_v8 = vmul.f32 -1.442695, %v450_v7  ;;  %v4206_v15 = vpop.permute.xlu0 %385 }
 0x2fd   :  { %3842 = vpow2.f32 %v3216_v8  ;;  %v389_v12 = vpop.permute.xlu1 %388 }
 0x2fe   :  { %v4210_v16 = vsel %vm132_vm1, %v4206_v15, %v389_v12 }
 0x30a   :  { %v3843_v9 = vpop.eup %3842 }
 0x30b   :  { %v454_v10 = vadd.f32 1.0, %v3843_v9 }
 0x30d   :  { %3844 = vrcp.f32 %v454_v10 }
 0x31a   :  { %v3845_v13 = vpop.eup %3844 }
 0x31b   :  { %v461_v14 = vmul.f32 %v3845_v13, %v459_v11 }
 0x31d   :  { %v462_v17 = vadd.f32 %v461_v14, %v4210_v16 }
 0x31f   :  { %3846 = vtanh.f32 %v462_v17 }
 0x32c   :  { %v3847_v18 = vpop.eup %3846 }
 0x32d   :  { %v464_v19 = vsub.f32 0.0, %v3847_v18 }
 0x32f   :  { %466 = vrot.lane.b32.xlu0 %v464_v19, %s3986_s12 }
 0x333   :  { %476 = vrot.lane.b32.xlu0 %v475_v20, %s3983_s10 }
 0x3a1   :  { %v467_v21 = vpop.permute.xlu0 %466 }
 0x3a2   :  { %v469_v22 = vmul.f32 %v3845_v13, %v467_v21 }
 0x3a4   :  { %471 = vrot.lane.b32.xlu1 %v469_v22, %s3983_s10 }
 0x3a5   :  { %v477_v32 = vpop.permute.xlu0 %476 }
 0x3a6   :  { %v482_v33 = vsel %vm132_vm1, %v4182_v52, %v477_v32 }
 0x3a7   :  { %v483_v37 = vsel %vm326_vm8, %v482_v33, %v4198_v1 }
 0x3a8   :  { %479 = vrot.lane.b32.xlu1 %v475_v20, %s3984_s0 }
 0x3ac   :  { %485 = vrot.lane.b32.xlu1 %v475_v20, %s3985_s11 }
 0x416   :  { %v472_v23 = vpop.permute.xlu1 %471 }
 0x417   :  { %v4219_v25 = vadd.f32 %v3847_v18, %v472_v23 }
 0x419   :  { %v489_v26 = vpack.c.bf16 %v4219_v25, %v4219_v25 }
 0x41a   :  { %v480_v35 = vpop.permute.xlu1 %479 }
 0x41b   :  { %3532 = vmatmul.mubr.msk.bf16.vlgmr.msra.gmra.mxu1 %vm326_vm8, %v489_v26  ;;  %v4237_v38 = vsel %vm383_vm9, %v483_v37, %v480_v35 }
 0x41c   :  { %3536 = vmatpush3.bf16.msra.mxu1 %v4146_v34  ;;  %3539 = vmatprep.mubr.msk.bf16.mxu1 %vm3978_vm0, %v3977_v4  ;;  %v534_v39 = vrot.slane %v4237_v38, 1 }
 0x41d   :  { %3537 = vmatprep.subr.bf16.mxu1 %v3977_v4 }
 0x41e   :  { %v486_v46 = vpop.permute.xlu1 %485 }
 0x41f   :  { %v4242_v51 = vsel %vm132_vm1, %v4206_v15, %v486_v46 }
 0x420   :  { %3538 = vmatpush3.bf16.msra.mxu1 %v4153_v36 }
 0x421   :  { %3543 = vmatprep.subr.bf16.mxu1 %v3977_v4 }
 0x4db   :  { %v527_v27 = vpop.f32.mrf.mxu1 }
 0x4dc   :  { %v528_v28 = vadd.f32 %v527_v27, %v4187_v56 }
 0x4dd   :  { %v3533_v29 = vpop.f32.mrf.mxu1 }
 0x4de   :  { %544 = vrot.lane.b32.xlu0 %v528_v28, %s3985_s11  ;;  %v536_v40 = vadd.f32 %v534_v39, %v528_v28  ;;  %v665_v39 = vrot.slane %v4182_v52, 1 }
 0x4df   :  { %v530_v30 = vpop.f32.mrf.mxu1 }
 0x4e0   :  { %v3218_v41 = vmul.f32 -1.442695, %v536_v40 }
 0x4e1   :  { %v3534_v31 = vpop.f32.mrf.mxu1 }
 0x4e2   :  { %3848 = vpow2.f32 %v3218_v41 }
 0x4ef   :  { %v3849_v42 = vpop.eup %3848 }
 0x4f0   :  { %v540_v43 = vadd.f32 1.0, %v3849_v42 }
 0x4f2   :  { %3850 = vrcp.f32 %v540_v43 }
 0x4ff   :  { %v3851_v44 = vpop.eup %3850 }
 0x550   :  { %v545_v45 = vpop.permute.xlu0 %544 }
 0x551   :  { %v547_v49 = vmul.f32 %v3851_v44, %v545_v45 }
 0x553   :  { %v549_v50 = vrot.slane %v547_v49, 7 }
 0x555   :  { %v551_v53 = vadd.f32 %v549_v50, %v4242_v51 }
 0x557   :  { %3852 = vtanh.f32 %v551_v53 }
 0x564   :  { %v3853_v54 = vpop.eup %3852 }
 0x565   :  { %v554_v55 = vrot.slane %v3853_v54, 1 }
 0x567   :  { %v556_v57 = vsub.f32 %v4219_v25, %v554_v55 }
 0x569   :  { %558 = vrot.lane.b32.xlu0 %v556_v57, %s3986_s12 }
 0x56d   :  { %569 = vrot.lane.b32.xlu0 %v568_v58, %s3983_s10 }
 0x5db   :  { %v559_v59 = vpop.permute.xlu0 %558 }
 0x5dc   :  { %v561_v60 = vmul.f32 %v3851_v44, %v559_v59 }
 0x5de   :  { %v563_v61 = vrot.slane %v561_v60, 7 }
 0x5df   :  { %v570_v11 = vpop.permute.xlu0 %569 }
 0x5e0   :  { %564 = vrot.lane.b32.xlu1 %v563_v61, %s3983_s10  ;;  %v575_v12 = vsel %vm132_vm1, %v4182_v52, %v570_v11 }
 0x5e1   :  { %v576_v14 = vsel %vm326_vm8, %v575_v12, %v4198_v1 }
 0x5e4   :  { %572 = vrot.lane.b32.xlu1 %v568_v58, %s3984_s0 }
 0x5e8   :  { %578 = vrot.lane.b32.xlu1 %v568_v58, %s3985_s11 }
 0x652   :  { %v565_v62 = vpop.permute.xlu1 %564 }
 0x653   :  { %v4252_v63 = vadd.f32 %v3853_v54, %v565_v62 }
 0x655   :  { %v582_v0 = vpack.c.bf16 %v4252_v63, %v4252_v63 }
 0x656   :  { %v573_v13 = vpop.permute.xlu1 %572 }
 0x657   :  { %v584_v3 = vshrl.u32 %v582_v0, 16  ;;  %v4270_v17 = vsel %vm383_vm9, %v576_v14, %v573_v13 }
 0x658   :  { %v630_v18 = vrot.slane %v4270_v17, 2 }
 0x659   :  { %3540 = vmatmul.mubr.msk.bf16.vlgmr.msra.gmra.mxu1 %vm326_vm8, %v584_v3 }
 0x65a   :  { %3544 = vmatpush3.bf16.msra.mxu1 %v4146_v34  ;;  %3547 = vmatprep.mubr.msk.bf16.mxu1 %vm3978_vm0, %v3977_v4  ;;  %v579_v27 = vpop.permute.xlu1 %578 }
 0x65b   :  { %3545 = vmatprep.subr.bf16.mxu1 %v3977_v4  ;;  %v4275_v30 = vsel %vm132_vm1, %v4206_v15, %v579_v27 }
 0x65e   :  { %3546 = vmatpush3.bf16.msra.mxu1 %v4153_v36 }
 0x65f   :  { %3559 = vmatprep.subr.bf16.mxu1 %v3977_v4 }
 0x719   :  { %v623_v5 = vpop.f32.mrf.mxu1 }
 0x71a   :  { %v624_v7 = vadd.f32 %v623_v5, %v4187_v56 }
 0x71b   :  { %v3541_v8 = vpop.f32.mrf.mxu1 }
 0x71c   :  { %640 = vrot.lane.b32.xlu0 %v624_v7, %s3985_s11  ;;  %v632_v19 = vadd.f32 %v630_v18, %v624_v7 }
 0x71d   :  { %v626_v9 = vpop.f32.mrf.mxu1 }
 0x71e   :  { %v3220_v20 = vmul.f32 -1.442695, %v632_v19 }
 0x71f   :  { %v3542_v10 = vpop.f32.mrf.mxu1 }
 0x720   :  { %3854 = vpow2.f32 %v3220_v20 }
 0x72d   :  { %v3855_v21 = vpop.eup %3854 }
 0x72e   :  { %v636_v22 = vadd.f32 1.0, %v3855_v21 }
 0x730   :  { %3856 = vrcp.f32 %v636_v22 }
 0x73d   :  { %v3857_v23 = vpop.eup %3856 }
 0x78e   :  { %v641_v26 = vpop.permute.xlu0 %640 }
 0x78f   :  { %v643_v28 = vmul.f32 %v3857_v23, %v641_v26 }
 0x791   :  { %v645_v29 = vrot.slane %v643_v28, 6 }
 0x793   :  { %v647_v31 = vadd.f32 %v645_v29, %v4275_v30 }
 0x795   :  { %3858 = vtanh.f32 %v647_v31  ;;  %v810_v31 = vrot.slane %v4203_v6, 4 }
 0x7a2   :  { %v3859_v32 = vpop.eup %3858 }
 0x7a3   :  { %v650_v33 = vrot.slane %v3859_v32, 1 }
 0x7a5   :  { %v652_v35 = vsub.f32 %v4252_v63, %v650_v33 }
 0x7a7   :  { %v654_v37 = vrot.slane %v652_v35, 1 }
 0x7a9   :  { %655 = vrot.lane.b32.xlu0 %v654_v37, %s3986_s12 }
 0x7ad   :  { %666 = vrot.lane.b32.xlu0 %v665_v39, %s3983_s10 }
 0x81b   :  { %v656_v40 = vpop.permute.xlu0 %655 }
 0x81c   :  { %v658_v41 = vmul.f32 %v3857_v23, %v656_v40 }
 0x81e   :  { %v660_v42 = vrot.slane %v658_v41, 6 }
 0x81f   :  { %v667_v57 = vpop.permute.xlu0 %666 }
 0x820   :  { %661 = vrot.lane.b32.xlu1 %v660_v42, %s3983_s10  ;;  %v672_v58 = vsel %vm132_vm1, %v4182_v52, %v667_v57 }
 0x821   :  { %v673_v60 = vsel %vm326_vm8, %v672_v58, %v4198_v1 }
 0x824   :  { %669 = vrot.lane.b32.xlu1 %v665_v39, %s3984_s0 }
 0x828   :  { %675 = vrot.lane.b32.xlu1 %v665_v39, %s3985_s11 }
 0x892   :  { %v662_v43 = vpop.permute.xlu1 %661 }
 0x893   :  { %v4285_v44 = vadd.f32 %v3859_v32, %v662_v43 }
 0x895   :  { %v679_v45 = vpack.c.bf16 %v4285_v44, %v4285_v44 }
 0x896   :  { %v670_v59 = vpop.permute.xlu1 %669 }
 0x897   :  { %v681_v46 = vrot.slane %v679_v45, 1  ;;  %v4303_v61 = vsel %vm383_vm9, %v673_v60, %v670_v59 }
 0x898   :  { %v726_v62 = vrot.slane %v4303_v61, 3 }
 0x899   :  { %3548 = vmatmul.mubr.msk.bf16.vlgmr.msra.gmra.mxu1 %vm326_vm8, %v681_v46 }
 0x89a   :  { %3560 = vmatpush3.bf16.msra.mxu1 %v4146_v34  ;;  %3563 = vmatprep.mubr.msk.bf16.mxu1 %vm3978_vm0, %v3977_v4  ;;  %v676_v10 = vpop.permute.xlu1 %675 }
 0x89b   :  { %3561 = vmatprep.subr.bf16.mxu1 %v3977_v4  ;;  %v4308_v12 = vsel %vm132_vm1, %v4206_v15, %v676_v10 }
 0x89e   :  { %3562 = vmatpush3.bf16.msra.mxu1 %v4153_v36 }
 0x89f   :  { %3575 = vmatprep.subr.bf16.mxu1 %v3977_v4 }
 0x959   :  { %v719_v49 = vpop.f32.mrf.mxu1 }
 0x95a   :  { %v720_v50 = vadd.f32 %v719_v49, %v4187_v56 }
 0x95b   :  { %v3549_v53 = vpop.f32.mrf.mxu1 }
 0x95c   :  { %736 = vrot.lane.b32.xlu0 %v720_v50, %s3985_s11  ;;  %v728_v0 = vadd.f32 %v726_v62, %v720_v50 }
 0x95d   :  { %v722_v54 = vpop.f32.mrf.mxu1 }
 0x95e   :  { %v3222_v3 = vmul.f32 -1.442695, %v728_v0 }
 0x95f   :  { %v3550_v55 = vpop.f32.mrf.mxu1 }
 0x960   :  { %3860 = vpow2.f32 %v3222_v3 }
 0x96d   :  { %v3861_v5 = vpop.eup %3860 }
 0x96e   :  { %v732_v7 = vadd.f32 1.0, %v3861_v5  ;;  %v891_v5 = vrot.slane %v4237_v38, 5 }
 0x970   :  { %3862 = vrcp.f32 %v732_v7 }
 0x97d   :  { %v3863_v8 = vpop.eup %3862 }
 0x9ce   :  { %v737_v9 = vpop.permute.xlu0 %736 }
 0x9cf   :  { %v739_v11 = vmul.f32 %v3863_v8, %v737_v9 }
 0x9d1   :  { %v741_v52 = vrot.slane %v739_v11, 5 }
 0x9d3   :  { %v743_v1 = vadd.f32 %v741_v52, %v4308_v12 }
 0x9d5   :  { %3864 = vtanh.f32 %v743_v1 }
 0x9e2   :  { %v3865_v13 = vpop.eup %3864 }
 0x9e3   :  { %v746_v14 = vrot.slane %v3865_v13, 1 }
 0x9e5   :  { %v748_v18 = vsub.f32 %v4285_v44, %v746_v14 }
 0x9e7   :  { %v750_v19 = vrot.slane %v748_v18, 2 }
 0x9e9   :  { %751 = vrot.lane.b32.xlu0 %v750_v19, %s3986_s12 }
 0xa5b   :  { %v752_v20 = vpop.permute.xlu0 %751 }
 0xa5c   :  { %v754_v21 = vmul.f32 %v3863_v8, %v752_v20 }
 0xa5e   :  { %v756_v22 = vrot.slane %v754_v21, 5 }
 0xa60   :  { %757 = vrot.lane.b32.xlu1 %v756_v22, %s3983_s10 }
 0xad2   :  { %v758_v23 = vpop.permute.xlu1 %757 }
 0xad3   :  { %v4314_v26 = vadd.f32 %v3865_v13, %v758_v23 }
 0xad5   :  { %v761_v15 = vpack.c.bf16 %v4314_v26, %v4314_v26 }
 0xad7   :  { %v763_v27 = vshrl.u32 %v761_v15, 16 }
 0xad9   :  { %v765_v28 = vrot.slane %v763_v27, 1 }
 0xadb   :  { %3556 = vmatmul.mubr.msk.bf16.vlgmr.msra.gmra.mxu0 %vm326_vm8, %v765_v28 }
 0xadc   :  { %3568 = vmatpush3.bf16.msra.mxu0 %v4146_v34  ;;  %3571 = vmatprep.mubr.msk.bf16.mxu0 %vm3978_vm0, %v3977_v4 }
 0xadd   :  { %3569 = vmatprep.subr.bf16.mxu0 %v3977_v4 }
 0xae0   :  { %3570 = vmatpush3.bf16.msra.mxu0 %v4153_v36 }
 0xae1   :  { %3583 = vmatprep.subr.bf16.mxu0 %v3977_v4 }
 0xb9b   :  { %v803_v29 = vpop.f32.mrf.mxu0 }
 0xb9c   :  { %v804_v32 = vadd.f32 %v803_v29, %v4187_v56 }
 0xb9d   :  { %v3557_v33 = vpop.f32.mrf.mxu0 }
 0xb9e   :  { %v812_v35 = vadd.f32 %v810_v31, %v804_v32  ;;  %820 = vrot.lane.b32.xlu0 %v804_v32, %s3985_s11 }
 0xb9f   :  { %v806_v37 = vpop.f32.mrf.mxu0 }
 0xba0   :  { %v3224_v40 = vmul.f32 -1.442695, %v812_v35  ;;  %v974_v35 = vrot.slane %v4270_v17, 6 }
 0xba1   :  { %v3558_v39 = vpop.f32.mrf.mxu0 }
 0xba2   :  { %3866 = vpow2.f32 %v3224_v40 }
 0xbaf   :  { %v3867_v41 = vpop.eup %3866 }
 0xbb0   :  { %v816_v42 = vadd.f32 1.0, %v3867_v41 }
 0xbb2   :  { %3868 = vrcp.f32 %v816_v42 }
 0xbbf   :  { %v3869_v43 = vpop.eup %3868 }
 0xc10   :  { %v821_v45 = vpop.permute.xlu0 %820 }
 0xc11   :  { %v823_v46 = vmul.f32 %v3869_v43, %v821_v45 }
 0xc13   :  { %v825_v49 = vrot.slane %v823_v46, 4 }
 0xc15   :  { %v827_v50 = vadd.f32 %v825_v49, %v4210_v16 }
 0xc17   :  { %3870 = vtanh.f32 %v827_v50 }
 0xc24   :  { %v3871_v6 = vpop.eup %3870 }
 0xc25   :  { %v830_v53 = vrot.slane %v3871_v6, 1 }
 0xc27   :  { %v832_v54 = vsub.f32 %v4314_v26, %v830_v53 }
 0xc29   :  { %v834_v55 = vrot.slane %v832_v54, 3 }
 0xc2b   :  { %835 = vrot.lane.b32.xlu1 %v834_v55, %s3986_s12 }
 0xc9d   :  { %v836_v57 = vpop.permute.xlu1 %835 }
 0xc9e   :  { %v838_v58 = vmul.f32 %v3869_v43, %v836_v57 }
 0xca0   :  { %v840_v59 = vrot.slane %v838_v58, 4 }
 0xca2   :  { %841 = vrot.lane.b32.xlu0 %v840_v59, %s3983_s10 }
 0xd14   :  { %v842_v60 = vpop.permute.xlu0 %841 }
 0xd15   :  { %v4332_v62 = vadd.f32 %v3871_v6, %v842_v60 }
 0xd17   :  { %v845_v0 = vpack.c.bf16 %v4332_v62, %v4332_v62 }
 0xd19   :  { %v847_v16 = vrot.slane %v845_v0, 2 }
 0xd1b   :  { %3564 = vmatmul.mubr.msk.bf16.vlgmr.msra.gmra.mxu1 %vm326_vm8, %v847_v16 }
 0xd1c   :  { %3576 = vmatpush3.bf16.msra.mxu1 %v4146_v34  ;;  %3579 = vmatprep.mubr.msk.bf16.mxu1 %vm3978_vm0, %v3977_v4 }
 0xd1d   :  { %3577 = vmatprep.subr.bf16.mxu1 %v3977_v4 }
 0xd20   :  { %3578 = vmatpush3.bf16.msra.mxu1 %v4153_v36 }
 0xd21   :  { %3591 = vmatprep.subr.bf16.mxu1 %v3977_v4 }
 0xddb   :  { %v885_v3 = vpop.f32.mrf.mxu1 }
 0xddc   :  { %v886_v7 = vadd.f32 %v885_v3, %v4187_v56 }
 0xddd   :  { %v3565_v8 = vpop.f32.mrf.mxu1 }
 0xdde   :  { %v893_v9 = vadd.f32 %v891_v5, %v886_v7  ;;  %901 = vrot.lane.b32.xlu1 %v886_v7, %s3985_s11  ;;  %v1055_v8 = vrot.slane %v4303_v61, 7 }
 0xddf   :  { %v888_v10 = vpop.f32.mrf.mxu1 }
 0xde0   :  { %v3226_v11 = vmul.f32 -1.442695, %v893_v9 }
 0xde1   :  { %v3566_v34 = vpop.f32.mrf.mxu1 }
 0xde2   :  { %3872 = vpow2.f32 %v3226_v11 }
 0xdef   :  { %v3873_v52 = vpop.eup %3872 }
 0xdf0   :  { %v897_v1 = vadd.f32 1.0, %v3873_v52 }
 0xdf2   :  { %3874 = vrcp.f32 %v897_v1 }
 0xdff   :  { %v3875_v13 = vpop.eup %3874 }
 0xe50   :  { %v902_v36 = vpop.permute.xlu1 %901 }
 0xe51   :  { %v904_v14 = vmul.f32 %v3875_v13, %v902_v36 }
 0xe53   :  { %v906_v18 = vrot.slane %v904_v14, 3 }
 0xe55   :  { %v908_v19 = vadd.f32 %v906_v18, %v4242_v51 }
 0xe57   :  { %3876 = vtanh.f32 %v908_v19 }
 0xe64   :  { %v3877_v38 = vpop.eup %3876 }
 0xe65   :  { %v911_v20 = vrot.slane %v3877_v38, 1 }
 0xe67   :  { %v913_v21 = vsub.f32 %v4332_v62, %v911_v20 }
 0xe69   :  { %v915_v22 = vrot.slane %v913_v21, 4 }
 0xe6b   :  { %916 = vrot.lane.b32.xlu0 %v915_v22, %s3986_s12 }
 0xedd   :  { %v917_v23 = vpop.permute.xlu0 %916 }
 0xede   :  { %v919_v15 = vmul.f32 %v3875_v13, %v917_v23  ;;  %v3834_v23 = vld [vmem:[%s5224_s3 + $0x18] sm:$0xff]  }
 0xee0   :  { %v921_v27 = vrot.slane %v919_v15, 3 }
 0xee2   :  { %922 = vrot.lane.b32.xlu1 %v921_v27, %s3983_s10 }
 0xf54   :  { %v923_v28 = vpop.permute.xlu1 %922 }
 0xf55   :  { %v4350_v29 = vadd.f32 %v3877_v38, %v923_v28  ;;  %v4387_v28 = vld [vmem:[%s5225_s4 + $0x18] sm:$0xff]  }
 0xf57   :  { %v926_v31 = vpack.c.bf16 %v4350_v29, %v4350_v29 }
 0xf59   :  { %v928_v51 = vshrl.u32 %v926_v31, 16 }
 0xf5b   :  { %v930_v32 = vrot.slane %v928_v51, 2  ;;  %v4396_v51 = vld [vmem:[%s5225_s4 + $0x10] sm:$0xff]  }
 0xf5d   :  { %3572 = vmatmul.mubr.msk.bf16.vlgmr.msra.gmra.mxu0 %vm326_vm8, %v930_v32 }
 0xf5e   :  { %3587 = vmatprep.mubr.msk.bf16.mxu0 %vm3978_vm0, %v3977_v4  ;;  %3584 = vmatpush3.bf16.msra.mxu0 %v3834_v23 }
 0xf5f   :  { %3585 = vmatprep.subr.bf16.mxu0 %v3977_v4 }
0x101d   :  { %v968_v33 = vpop.f32.mrf.mxu0 }
0x101e   :  { %v969_v37 = vadd.f32 %v968_v33, %v4187_v56 }
0x101f   :  { %v3573_v39 = vpop.f32.mrf.mxu0 }
0x1020   :  { %v976_v40 = vadd.f32 %v974_v35, %v969_v37  ;;  %984 = vrot.lane.b32.xlu0 %v969_v37, %s3985_s11  ;;  %v1099_v37 = vrot.slane %v4350_v29, 3  ;;  %v1103_v39 = vrot.slane %v4332_v62, 1 }
0x1021   :  { %v971_v41 = vpop.f32.mrf.mxu0 }
0x1022   :  { %v3228_v43 = vmul.f32 -1.442695, %v976_v40 }
0x1023   :  { %v3574_v42 = vpop.f32.mrf.mxu0 }
0x1024   :  { %3878 = vpow2.f32 %v3228_v43  ;;  %v1107_v43 = vrot.slane %v4314_v26, 7 }
0x1031   :  { %v3879_v45 = vpop.eup %3878 }
0x1032   :  { %v980_v46 = vadd.f32 1.0, %v3879_v45  ;;  %v1101_v45 = vsel %vm132_vm1, %v4285_v44, %v1099_v37 }
0x1034   :  { %3880 = vrcp.f32 %v980_v46 }
0x1041   :  { %v3881_v49 = vpop.eup %3880 }
0x1092   :  { %v985_v50 = vpop.permute.xlu0 %984 }
0x1093   :  { %v987_v6 = vmul.f32 %v3881_v49, %v985_v50  ;;  %v1105_v50 = vsel %vm132_vm1, %v4314_v26, %v1103_v39 }
0x1095   :  { %v989_v53 = vrot.slane %v987_v6, 2 }
0x1097   :  { %v991_v54 = vadd.f32 %v989_v53, %v4275_v30  ;;  %v1115_v53 = vrot.slane %v4252_v63, 3 }
0x1099   :  { %3882 = vtanh.f32 %v991_v54  ;;  %v1109_v54 = vsel %vm132_vm1, %v4332_v62, %v1107_v43 }
0x10a6   :  { %v3883_v17 = vpop.eup %3882 }
0x10a7   :  { %v994_v55 = vrot.slane %v3883_v17, 1 }
0x10a9   :  { %v996_v57 = vsub.f32 %v4350_v29, %v994_v55  ;;  %v1119_v55 = vrot.slane %v4219_v25, 1 }
0x10ab   :  { %v998_v58 = vrot.slane %v996_v57, 5 }
0x10ad   :  { %999 = vrot.lane.b32.xlu1 %v998_v58, %s3986_s12 }
0x111f   :  { %v1000_v59 = vpop.permute.xlu1 %999 }
0x1120   :  { %v1002_v60 = vmul.f32 %v3881_v49, %v1000_v59  ;;  %v1111_v49 = vrot.slane %v4285_v44, 5 }
0x1122   :  { %v1004_v0 = vrot.slane %v1002_v60, 2  ;;  %v1113_v57 = vsel %vm132_vm1, %v4350_v29, %v1111_v49 }
0x1124   :  { %1005 = vrot.lane.b32.xlu0 %v1004_v0, %s3983_s10 }
0x1196   :  { %v1006_v16 = vpop.permute.xlu0 %1005 }
0x1197   :  { %v4364_v3 = vadd.f32 %v3883_v17, %v1006_v16 }
0x1199   :  { %v1009_v5 = vpack.c.bf16 %v4364_v3, %v4364_v3  ;;  %v1095_v33 = vrot.slane %v4364_v3, 5  ;;  %v1117_v26 = vsel %vm132_vm1, %v4364_v3, %v1115_v53 }
0x119b   :  { %v1011_v30 = vrot.slane %v1009_v5, 3  ;;  %v1097_v41 = vsel %vm132_vm1, %v4252_v63, %v1095_v33 }
0x119d   :  { %3580 = vmatmul.mubr.msk.bf16.vlgmr.msra.gmra.mxu1 %vm326_vm8, %v1011_v30 }
0x119e   :  { %3595 = vmatprep.mubr.msk.bf16.mxu1 %vm3978_vm0, %v3977_v4  ;;  %3592 = vmatpush3.bf16.msra.mxu1 %v4387_v28 }
0x119f   :  { %3593 = vmatprep.subr.bf16.mxu1 %v3977_v4 }
0x11a2   :  { %3594 = vmatpush3.bf16.msra.mxu1 %v4396_v51 }
0x11a3   :  { %3607 = vmatprep.subr.bf16.mxu1 %v3977_v4 }
0x11a5   :  { %3596 = vmatmul.mubr.bf16.vlgmr.msra.gmra.mxu1 %v3976_v2 }
0x11a6   :  { %3608 = vmatpush3.bf16.msra.mxu1 %v4387_v28  ;;  %3611 = vmatprep.mubr.msk.bf16.mxu1 %vm3978_vm0, %v3977_v4 }
0x11a7   :  { %3609 = vmatprep.subr.bf16.mxu1 %v3977_v4 }
0x11aa   :  { %3610 = vmatpush3.bf16.msra.mxu1 %v4396_v51 }
0x11ab   :  { %3623 = vmatprep.subr.bf16.mxu1 %v3977_v4 }
0x125d   :  { %v1049_v7 = vpop.f32.mrf.mxu1 }
0x125e   :  { %v1050_v9 = vadd.f32 %v1049_v7, %v4187_v56 }
0x125f   :  { %v3581_v10 = vpop.f32.mrf.mxu1 }
0x1260   :  { %v1057_v34 = vadd.f32 %v1055_v8, %v1050_v9  ;;  %1065 = vrot.lane.b32.xlu1 %v1050_v9, %s3985_s11 }
0x1261   :  { %v1052_v11 = vpop.f32.mrf.mxu1 }
0x1262   :  { %v3230_v1 = vmul.f32 -1.442695, %v1057_v34 }
0x1263   :  { %v3582_v52 = vpop.f32.mrf.mxu1 }
0x1264   :  { %3884 = vpow2.f32 %v3230_v1 }
0x1271   :  { %v3885_v13 = vpop.eup %3884 }
0x1272   :  { %v1061_v36 = vadd.f32 1.0, %v3885_v13 }
0x1274   :  { %3886 = vrcp.f32 %v1061_v36 }
0x1281   :  { %v3887_v14 = vpop.eup %3886 }
0x12d2   :  { %v1066_v18 = vpop.permute.xlu1 %1065 }
0x12d3   :  { %v1068_v19 = vmul.f32 %v3887_v14, %v1066_v18 }
0x12d5   :  { %v1070_v38 = vrot.slane %v1068_v19, 1 }
0x12d7   :  { %v1072_v20 = vadd.f32 %v1070_v38, %v4308_v12  ;;  %v3835_v12 = vld [vmem:[%s5224_s3 + $0x10] sm:$0xff]  }
0x12d8   :  { %3586 = vmatpush3.bf16.msra.mxu0 %v3835_v12 }
0x12d9   :  { %3888 = vtanh.f32 %v1072_v20  ;;  %3599 = vmatprep.subr.bf16.mxu0 %v3977_v4 }
0x12e6   :  { %v3889_v61 = vpop.eup %3888 }
0x12e7   :  { %v1075_v56 = vrot.slane %v3889_v61, 1 }
0x12e9   :  { %v1077_v21 = vsub.f32 %v4364_v3, %v1075_v56  ;;  %v3239_v3 = vld [vmem:[%s5226_s5 + $0x2] sm:$0x3] }
0x12ea   :  { %v1151_v5 = vrot.slane %v3239_v3, %v312_v48  ;;  %v4448_v30 = vrot.slane %v3239_v3, 1 }
0x12eb   :  { %v1079_v22 = vrot.slane %v1077_v21, 6 }
0x12ed   :  { %1080 = vrot.lane.b32.xlu0 %v1079_v22, %s3986_s12 }
0x135f   :  { %v1081_v15 = vpop.permute.xlu0 %1080 }
0x1360   :  { %v1083_v27 = vmul.f32 %v3887_v14, %v1081_v15 }
0x1362   :  { %v1085_v31 = vrot.slane %v1083_v27, 1 }
0x1364   :  { %1086 = vrot.lane.b32.xlu1 %v1085_v31, %s3983_s10 }
0x13d6   :  { %v1087_v32 = vpop.permute.xlu1 %1086 }
0x13d7   :  { %v1089_v35 = vadd.f32 %v3889_v61, %v1087_v32 }
0x13d9   :  { %v1091_v40 = vrot.slane %v1089_v35, 7  ;;  %v1121_v63 = vsel %vm132_vm1, %v1089_v35, %v1119_v55 }
0x13db   :  { %v1093_v42 = vsel %vm132_vm1, %v4219_v25, %v1091_v40  ;;  %v1277_v25 = vpop.f32.mrf.mxu1 }
0x13dc   :  { %v1123_v46 = vsel %vm1122_vm10, %v1093_v42, %v1097_v41  ;;  %v1278_v10 = vadd.f32 %v1277_v25, %v4448_v30 }
0x13dd   :  { %v1125_v6 = vsel %vm1124_vm11, %v1123_v46, %v1101_v45  ;;  %v3597_v29 = vpop.f32.mrf.mxu1 }
0x13de   :  { %v1127_v17 = vsel %vm1126_vm12, %v1125_v6, %v1105_v50 }
0x13df   :  { %v1129_v44 = vsel %vm1128_vm13, %v1127_v17, %v1109_v54  ;;  %v1280_v0 = vpop.f32.mrf.mxu1 }
0x13e0   :  { %v1130_v58 = vsel %vm215_vm3, %v1129_v44, %v1113_v57 }
0x13e1   :  { %v1132_v62 = vsel %vm1131_vm14, %v1130_v58, %v1117_v26  ;;  %v3598_v16 = vpop.f32.mrf.mxu1 }
0x13e2   :  { %v1134_v59 = vsel %vm1133_vm15, %v1132_v62, %v1121_v63 }
0x13e3   :  { %v1147_v60 = vpack.c.bf16 %v1134_v59, %v1134_v59 }
0x13e5   :  { %3588 = vmatmul.mubr.msk.bf16.vlgmr.msra.gmra.mxu0 %vm326_vm8, %v1147_v60 }
0x13e6   :  { %3600 = vmatpush3.bf16.msra.mxu0 %v4387_v28  ;;  %3603 = vmatprep.mubr.msk.bf16.mxu0 %vm3978_vm0, %v3977_v4 }
0x13e7   :  { %3601 = vmatprep.subr.bf16.mxu0 %v3977_v4 }
0x13ea   :  { %3602 = vmatpush3.bf16.msra.mxu0 %v4396_v51 }
0x13eb   :  { %3615 = vmatprep.subr.bf16.mxu0 %v3977_v4 }
0x14a5   :  { %v1201_v7 = vpop.f32.mrf.mxu0 }
0x14a6   :  { %v4450_v8 = vadd.f32 %v1201_v7, %v1151_v5 }
0x14a7   :  { %v3589_v9 = vpop.f32.mrf.mxu0 }
0x14a8   :  { %1212 = vrot.lane.b32.xlu1 %v4450_v8, %s3981_s28  ;;  %v1208_v34 = vrot.slane %v4450_v8, 7  ;;  %v1308_v33 = vrot.slane %v4450_v8, 5  ;;  %v1401_v7 = vrot.slane %v4450_v8, 3 }
0x14a9   :  { %v1204_v11 = vpop.f32.mrf.mxu0 }
0x14aa   :  { %1209 = vrot.lane.b32.xlu0 %v1208_v34, %s3983_s10 }
0x14ab   :  { %v3590_v52 = vpop.f32.mrf.mxu0 }
0x14ac   :  { %1291 = vrot.lane.b32.xlu1 %v1278_v10, %s3985_s11 }
0x14ae   :  { %1215 = vrot.lane.b32.xlu0 %v1208_v34, %s3984_s0 }
0x14b0   :  { %1224 = vrot.lane.b32.xlu1 %v1208_v34, %s3985_s11 }
0x14b2   :  { %1221 = vrot.lane.b32.xlu0 %v4450_v8, %s3983_s10 }
0x151a   :  { %v4464_v13 = vpop.permute.xlu1 %1212 }
0x151c   :  { %v1210_v48 = vpop.permute.xlu0 %1209 }
0x151d   :  { %v1218_v1 = vsel %vm132_vm1, %v4450_v8, %v1210_v48 }
0x151e   :  { %v1219_v36 = vsel %vm326_vm8, %v1218_v1, %v4464_v13  ;;  %v1292_v56 = vpop.permute.xlu1 %1291 }
0x1520   :  { %v1216_v14 = vpop.permute.xlu0 %1215 }
0x1521   :  { %v4469_v18 = vsel %vm383_vm9, %v1219_v36, %v1216_v14 }
0x1522   :  { %v1283_v19 = vadd.f32 %v1278_v10, %v4469_v18  ;;  %v1225_v23 = vpop.permute.xlu1 %1224 }
0x1524   :  { %v3245_v38 = vmul.f32 -1.442695, %v1283_v19  ;;  %v4472_v21 = vpop.permute.xlu0 %1221 }
0x1525   :  { %v4476_v27 = vsel %vm132_vm1, %v4472_v21, %v1225_v23 }
0x1526   :  { %3890 = vpow2.f32 %v3245_v38 }
0x1533   :  { %v3891_v20 = vpop.eup %3890 }
0x1534   :  { %v1287_v61 = vadd.f32 1.0, %v3891_v20 }
0x1536   :  { %3892 = vrcp.f32 %v1287_v61 }
0x1543   :  { %v3893_v22 = vpop.eup %3892 }
0x1544   :  { %v1294_v15 = vmul.f32 %v3893_v22, %v1292_v56 }
0x1546   :  { %v1295_v12 = vadd.f32 %v1294_v15, %v4476_v27 }
0x1548   :  { %3894 = vtanh.f32 %v1295_v12 }
0x1555   :  { %v3895_v31 = vpop.eup %3894 }
0x1556   :  { %v1297_v32 = vsub.f32 0.0, %v3895_v31 }
0x1558   :  { %1299 = vrot.lane.b32.xlu0 %v1297_v32, %s3986_s12 }
0x155c   :  { %1309 = vrot.lane.b32.xlu0 %v1308_v33, %s3983_s10 }
0x15ca   :  { %v1300_v35 = vpop.permute.xlu0 %1299 }
0x15cb   :  { %v1302_v37 = vmul.f32 %v3893_v22, %v1300_v35 }
0x15cd   :  { %1304 = vrot.lane.b32.xlu1 %v1302_v37, %s3983_s10 }
0x15ce   :  { %v1310_v50 = vpop.permute.xlu0 %1309 }
0x15cf   :  { %v1315_v6 = vsel %vm132_vm1, %v4450_v8, %v1310_v50 }
0x15d0   :  { %v1316_v54 = vsel %vm326_vm8, %v1315_v6, %v4464_v13 }
0x15d1   :  { %1312 = vrot.lane.b32.xlu1 %v1308_v33, %s3984_s0 }
0x15d5   :  { %1318 = vrot.lane.b32.xlu1 %v1308_v33, %s3985_s11 }
0x163f   :  { %v1305_v39 = vpop.permute.xlu1 %1304 }
0x1640   :  { %v4485_v40 = vadd.f32 %v3895_v31, %v1305_v39 }
0x1642   :  { %v1322_v41 = vpack.c.bf16 %v4485_v40, %v4485_v40 }
0x1643   :  { %v1313_v53 = vpop.permute.xlu1 %1312 }
0x1644   :  { %3604 = vmatmul.mubr.msk.bf16.vlgmr.msra.gmra.mxu0 %vm326_vm8, %v1322_v41  ;;  %v4503_v17 = vsel %vm383_vm9, %v1316_v54, %v1313_v53  ;;  %v1498_v54 = vrot.slane %v4450_v8, 1 }
0x1645   :  { %3616 = vmatpush3.bf16.msra.mxu0 %v4387_v28  ;;  %3619 = vmatprep.mubr.msk.bf16.mxu0 %vm3978_vm0, %v3977_v4  ;;  %v1367_v55 = vrot.slane %v4503_v17, 1 }
0x1646   :  { %3617 = vmatprep.subr.bf16.mxu0 %v3977_v4 }
0x1647   :  { %v1319_v59 = vpop.permute.xlu1 %1318 }
0x1648   :  { %v4508_v29 = vsel %vm132_vm1, %v4472_v21, %v1319_v59 }
0x1649   :  { %3618 = vmatpush3.bf16.msra.mxu0 %v4396_v51 }
0x164a   :  { %3631 = vmatprep.subr.bf16.mxu0 %v3977_v4 }
0x1704   :  { %v1360_v42 = vpop.f32.mrf.mxu0 }
0x1705   :  { %v1361_v43 = vadd.f32 %v1360_v42, %v4448_v30 }
0x1706   :  { %v3605_v45 = vpop.f32.mrf.mxu0 }
0x1707   :  { %1377 = vrot.lane.b32.xlu0 %v1361_v43, %s3985_s11  ;;  %v1369_v57 = vadd.f32 %v1367_v55, %v1361_v43 }
0x1708   :  { %v1363_v46 = vpop.f32.mrf.mxu0 }
0x1709   :  { %v3247_v44 = vmul.f32 -1.442695, %v1369_v57 }
0x170a   :  { %v3606_v49 = vpop.f32.mrf.mxu0 }
0x170b   :  { %3896 = vpow2.f32 %v3247_v44 }
0x1718   :  { %v3897_v26 = vpop.eup %3896 }
0x1719   :  { %v1373_v58 = vadd.f32 1.0, %v3897_v26 }
0x171b   :  { %3898 = vrcp.f32 %v1373_v58 }
0x1728   :  { %v3899_v63 = vpop.eup %3898 }
0x1779   :  { %v1378_v62 = vpop.permute.xlu0 %1377 }
0x177a   :  { %v1380_v60 = vmul.f32 %v3899_v63, %v1378_v62 }
0x177c   :  { %v1382_v25 = vrot.slane %v1380_v60, 7 }
0x177e   :  { %v1384_v0 = vadd.f32 %v1382_v25, %v4508_v29 }
0x1780   :  { %3900 = vtanh.f32 %v1384_v0 }
0x178d   :  { %v3901_v16 = vpop.eup %3900 }
0x178e   :  { %v1387_v3 = vrot.slane %v3901_v16, 1 }
0x1790   :  { %v1389_v5 = vsub.f32 %v4485_v40, %v1387_v3 }
0x1792   :  { %1391 = vrot.lane.b32.xlu0 %v1389_v5, %s3986_s12 }
0x1796   :  { %1402 = vrot.lane.b32.xlu0 %v1401_v7, %s3983_s10 }
0x1804   :  { %v1392_v9 = vpop.permute.xlu0 %1391 }
0x1805   :  { %v1394_v10 = vmul.f32 %v3899_v63, %v1392_v9 }
0x1807   :  { %v1396_v34 = vrot.slane %v1394_v10, 7 }
0x1808   :  { %v1403_v61 = vpop.permute.xlu0 %1402 }
0x1809   :  { %1397 = vrot.lane.b32.xlu1 %v1396_v34, %s3983_s10  ;;  %v1408_v56 = vsel %vm132_vm1, %v4450_v8, %v1403_v61 }
0x180a   :  { %v1409_v23 = vsel %vm326_vm8, %v1408_v56, %v4464_v13 }
0x180d   :  { %1405 = vrot.lane.b32.xlu1 %v1401_v7, %s3984_s0 }
0x1811   :  { %1411 = vrot.lane.b32.xlu1 %v1401_v7, %s3985_s11 }
0x187b   :  { %v1398_v11 = vpop.permute.xlu1 %1397 }
0x187c   :  { %v4518_v52 = vadd.f32 %v3901_v16, %v1398_v11 }
0x187e   :  { %v1415_v48 = vpack.c.bf16 %v4518_v52, %v4518_v52 }
0x187f   :  { %v1406_v22 = vpop.permute.xlu1 %1405 }
0x1880   :  { %v1417_v1 = vshrl.u32 %v1415_v48, 16  ;;  %v4536_v15 = vsel %vm383_vm9, %v1409_v23, %v1406_v22 }
0x1881   :  { %v1463_v12 = vrot.slane %v4536_v15, 2 }
0x1882   :  { %3612 = vmatmul.mubr.msk.bf16.vlgmr.msra.gmra.mxu1 %vm326_vm8, %v1417_v1 }
0x1883   :  { %3624 = vmatpush3.bf16.msra.mxu1 %v4387_v28  ;;  %3627 = vmatprep.mubr.msk.bf16.mxu1 %vm3978_vm0, %v3977_v4  ;;  %v1412_v41 = vpop.permute.xlu1 %1411 }
0x1884   :  { %3625 = vmatprep.subr.bf16.mxu1 %v3977_v4  ;;  %v4541_v45 = vsel %vm132_vm1, %v4472_v21, %v1412_v41 }
0x1887   :  { %3626 = vmatpush3.bf16.msra.mxu1 %v4396_v51 }
0x1888   :  { %3639 = vmatprep.subr.bf16.mxu1 %v3977_v4 }
0x1942   :  { %v1456_v36 = vpop.f32.mrf.mxu1 }
0x1943   :  { %v1457_v14 = vadd.f32 %v1456_v36, %v4448_v30 }
0x1944   :  { %v3613_v19 = vpop.f32.mrf.mxu1 }
0x1945   :  { %1473 = vrot.lane.b32.xlu0 %v1457_v14, %s3985_s11  ;;  %v1465_v31 = vadd.f32 %v1463_v12, %v1457_v14 }
0x1946   :  { %v1459_v38 = vpop.f32.mrf.mxu1 }
0x1947   :  { %v3249_v32 = vmul.f32 -1.442695, %v1465_v31 }
0x1948   :  { %v3614_v20 = vpop.f32.mrf.mxu1 }
0x1949   :  { %3902 = vpow2.f32 %v3249_v32 }
0x1956   :  { %v3903_v33 = vpop.eup %3902 }
0x1957   :  { %v1469_v35 = vadd.f32 1.0, %v3903_v33 }
0x1959   :  { %3904 = vrcp.f32 %v1469_v35 }
0x1966   :  { %v3905_v37 = vpop.eup %3904 }
0x19b7   :  { %v1474_v39 = vpop.permute.xlu0 %1473 }
0x19b8   :  { %v1476_v42 = vmul.f32 %v3905_v37, %v1474_v39 }
0x19ba   :  { %v1478_v43 = vrot.slane %v1476_v42, 6 }
0x19bc   :  { %v1480_v46 = vadd.f32 %v1478_v43, %v4541_v45  ;;  %v1643_v43 = vrot.slane %v4469_v18, 4 }
0x19be   :  { %3906 = vtanh.f32 %v1480_v46 }
0x19cb   :  { %v3907_v49 = vpop.eup %3906 }
0x19cc   :  { %v1483_v50 = vrot.slane %v3907_v49, 1 }
0x19ce   :  { %v1485_v6 = vsub.f32 %v4518_v52, %v1483_v50 }
0x19d0   :  { %v1487_v53 = vrot.slane %v1485_v6, 1 }
0x19d2   :  { %1488 = vrot.lane.b32.xlu0 %v1487_v53, %s3986_s12 }
0x19d6   :  { %1499 = vrot.lane.b32.xlu0 %v1498_v54, %s3983_s10 }
0x1a44   :  { %v1489_v55 = vpop.permute.xlu0 %1488 }
0x1a45   :  { %v1491_v57 = vmul.f32 %v3905_v37, %v1489_v55 }
0x1a47   :  { %v1493_v44 = vrot.slane %v1491_v57, 6 }
0x1a48   :  { %v1500_v3 = vpop.permute.xlu0 %1499 }
0x1a49   :  { %1494 = vrot.lane.b32.xlu1 %v1493_v44, %s3983_s10  ;;  %v1505_v5 = vsel %vm132_vm1, %v4450_v8, %v1500_v3 }
0x1a4a   :  { %v1506_v9 = vsel %vm326_vm8, %v1505_v5, %v4464_v13 }
0x1a4d   :  { %1502 = vrot.lane.b32.xlu1 %v1498_v54, %s3984_s0 }
0x1a51   :  { %1508 = vrot.lane.b32.xlu1 %v1498_v54, %s3985_s11 }
0x1abb   :  { %v1495_v26 = vpop.permute.xlu1 %1494 }
0x1abc   :  { %v4551_v58 = vadd.f32 %v3907_v49, %v1495_v26 }
0x1abe   :  { %v1512_v63 = vpack.c.bf16 %v4551_v58, %v4551_v58 }
0x1abf   :  { %v1503_v7 = vpop.permute.xlu1 %1502 }
0x1ac0   :  { %v1514_v62 = vrot.slane %v1512_v63, 1  ;;  %v4569_v10 = vsel %vm383_vm9, %v1506_v9, %v1503_v7 }
0x1ac1   :  { %v1559_v34 = vrot.slane %v4569_v10, 3 }
0x1ac2   :  { %3620 = vmatmul.mubr.msk.bf16.vlgmr.msra.gmra.mxu0 %vm326_vm8, %v1514_v62 }
0x1ac3   :  { %3632 = vmatpush3.bf16.msra.mxu0 %v4387_v28  ;;  %3635 = vmatprep.mubr.msk.bf16.mxu0 %vm3978_vm0, %v3977_v4  ;;  %v1509_v38 = vpop.permute.xlu1 %1508 }
0x1ac4   :  { %3633 = vmatprep.subr.bf16.mxu0 %v3977_v4  ;;  %v4574_v61 = vsel %vm132_vm1, %v4472_v21, %v1509_v38 }
0x1ac7   :  { %3634 = vmatpush3.bf16.msra.mxu0 %v4396_v51 }
0x1ac8   :  { %3647 = vmatprep.subr.bf16.mxu0 %v3977_v4 }
0x1b82   :  { %v1552_v59 = vpop.f32.mrf.mxu0 }
0x1b83   :  { %v1553_v60 = vadd.f32 %v1552_v59, %v4448_v30 }
0x1b84   :  { %v3621_v25 = vpop.f32.mrf.mxu0 }
0x1b85   :  { %1569 = vrot.lane.b32.xlu0 %v1553_v60, %s3985_s11  ;;  %v1561_v11 = vadd.f32 %v1559_v34, %v1553_v60 }
0x1b86   :  { %v1555_v0 = vpop.f32.mrf.mxu0 }
0x1b87   :  { %v3251_v48 = vmul.f32 -1.442695, %v1561_v11 }
0x1b88   :  { %v3622_v16 = vpop.f32.mrf.mxu0 }
0x1b89   :  { %3908 = vpow2.f32 %v3251_v48  ;;  %v1724_v48 = vrot.slane %v4503_v17, 5 }
0x1b96   :  { %v3909_v1 = vpop.eup %3908 }
0x1b97   :  { %v1565_v36 = vadd.f32 1.0, %v3909_v1 }
0x1b99   :  { %3910 = vrcp.f32 %v1565_v36 }
0x1ba6   :  { %v3911_v14 = vpop.eup %3910 }
0x1bf7   :  { %v1570_v19 = vpop.permute.xlu0 %1569 }
0x1bf8   :  { %v1572_v20 = vmul.f32 %v3911_v14, %v1570_v19 }
0x1bfa   :  { %v1574_v8 = vrot.slane %v1572_v20, 5 }
0x1bfc   :  { %v1576_v13 = vadd.f32 %v1574_v8, %v4574_v61 }
0x1bfe   :  { %3912 = vtanh.f32 %v1576_v13 }
0x1c0b   :  { %v3913_v56 = vpop.eup %3912 }
0x1c0c   :  { %v1579_v22 = vrot.slane %v3913_v56, 1 }
0x1c0e   :  { %v1581_v23 = vsub.f32 %v4551_v58, %v1579_v22 }
0x1c10   :  { %v1583_v12 = vrot.slane %v1581_v23, 2 }
0x1c12   :  { %1584 = vrot.lane.b32.xlu0 %v1583_v12, %s3986_s12 }
0x1c84   :  { %v1585_v31 = vpop.permute.xlu0 %1584 }
0x1c85   :  { %v1587_v32 = vmul.f32 %v3911_v14, %v1585_v31 }
0x1c87   :  { %v1589_v33 = vrot.slane %v1587_v32, 5 }
0x1c89   :  { %1590 = vrot.lane.b32.xlu1 %v1589_v33, %s3983_s10 }
0x1cfb   :  { %v1591_v35 = vpop.permute.xlu1 %1590 }
0x1cfc   :  { %v4580_v37 = vadd.f32 %v3913_v56, %v1591_v35 }
0x1cfe   :  { %v1594_v21 = vpack.c.bf16 %v4580_v37, %v4580_v37 }
0x1d00   :  { %v1596_v39 = vshrl.u32 %v1594_v21, 16 }
0x1d02   :  { %v1598_v41 = vrot.slane %v1596_v39, 1 }
0x1d04   :  { %3628 = vmatmul.mubr.msk.bf16.vlgmr.msra.gmra.mxu1 %vm326_vm8, %v1598_v41 }
0x1d05   :  { %3640 = vmatpush3.bf16.msra.mxu1 %v4387_v28  ;;  %3643 = vmatprep.mubr.msk.bf16.mxu1 %vm3978_vm0, %v3977_v4 }
0x1d06   :  { %3641 = vmatprep.subr.bf16.mxu1 %v3977_v4 }
0x1d09   :  { %3642 = vmatpush3.bf16.msra.mxu1 %v4396_v51 }
0x1dc4   :  { %v1636_v42 = vpop.f32.mrf.mxu1 }
0x1dc5   :  { %v1637_v46 = vadd.f32 %v1636_v42, %v4448_v30 }
0x1dc6   :  { %v3629_v49 = vpop.f32.mrf.mxu1 }
0x1dc7   :  { %v1645_v50 = vadd.f32 %v1643_v43, %v1637_v46  ;;  %1653 = vrot.lane.b32.xlu0 %v1637_v46, %s3985_s11  ;;  %v1807_v49 = vrot.slane %v4536_v15, 6 }
0x1dc8   :  { %v1639_v6 = vpop.f32.mrf.mxu1 }
0x1dc9   :  { %v3253_v54 = vmul.f32 -1.442695, %v1645_v50 }
0x1dca   :  { %v3630_v53 = vpop.f32.mrf.mxu1 }
0x1dcb   :  { %3914 = vpow2.f32 %v3253_v54 }
0x1dd8   :  { %v3915_v55 = vpop.eup %3914 }
0x1dd9   :  { %v1649_v57 = vadd.f32 1.0, %v3915_v55 }
0x1ddb   :  { %3916 = vrcp.f32 %v1649_v57 }
0x1de8   :  { %v3917_v44 = vpop.eup %3916 }
0x1e39   :  { %v1654_v26 = vpop.permute.xlu0 %1653 }
0x1e3a   :  { %v1656_v63 = vmul.f32 %v3917_v44, %v1654_v26 }
0x1e3c   :  { %v1658_v62 = vrot.slane %v1656_v63, 4 }
0x1e3e   :  { %v1660_v59 = vadd.f32 %v1658_v62, %v4476_v27 }
0x1e40   :  { %3918 = vtanh.f32 %v1660_v59 }
0x1e4d   :  { %v3919_v18 = vpop.eup %3918 }
0x1e4e   :  { %v1663_v60 = vrot.slane %v3919_v18, 1 }
0x1e50   :  { %v1665_v25 = vsub.f32 %v4580_v37, %v1663_v60 }
0x1e52   :  { %v1667_v0 = vrot.slane %v1665_v25, 3 }
0x1e54   :  { %1668 = vrot.lane.b32.xlu1 %v1667_v0, %s3986_s12 }
0x1ec6   :  { %v1669_v16 = vpop.permute.xlu1 %1668 }
0x1ec7   :  { %v1671_v3 = vmul.f32 %v3917_v44, %v1669_v16 }
0x1ec9   :  { %v1673_v5 = vrot.slane %v1671_v3, 4 }
0x1ecb   :  { %1674 = vrot.lane.b32.xlu0 %v1673_v5, %s3983_s10 }
0x1f3d   :  { %v1675_v7 = vpop.permute.xlu0 %1674 }
0x1f3e   :  { %v4597_v9 = vadd.f32 %v3919_v18, %v1675_v7 }
0x1f40   :  { %v1678_v34 = vpack.c.bf16 %v4597_v9, %v4597_v9 }
0x1f42   :  { %v1680_v27 = vrot.slane %v1678_v34, 2 }
0x1f44   :  { %3636 = vmatmul.mubr.msk.bf16.vlgmr.msra.gmra.mxu0 %vm326_vm8, %v1680_v27 }
0x1f45   :  { %3648 = vmatpush3.bf16.msra.mxu0 %v4387_v28  ;;  %3651 = vmatprep.mubr.msk.bf16.mxu0 %vm3978_vm0, %v3977_v4 }
0x1f46   :  { %3649 = vmatprep.subr.bf16.mxu0 %v3977_v4 }
0x1f49   :  { %3650 = vmatpush3.bf16.msra.mxu0 %v4396_v51 }
0x2004   :  { %v1718_v11 = vpop.f32.mrf.mxu0 }
0x2005   :  { %v1719_v1 = vadd.f32 %v1718_v11, %v4448_v30 }
0x2006   :  { %v3637_v36 = vpop.f32.mrf.mxu0 }
0x2007   :  { %v1726_v14 = vadd.f32 %v1724_v48, %v1719_v1  ;;  %1734 = vrot.lane.b32.xlu1 %v1719_v1, %s3985_s11  ;;  %v1888_v1 = vrot.slane %v4569_v10, 7 }
0x2008   :  { %v1721_v19 = vpop.f32.mrf.mxu0 }
0x2009   :  { %v3255_v20 = vmul.f32 -1.442695, %v1726_v14 }
0x200a   :  { %v3638_v38 = vpop.f32.mrf.mxu0 }
0x200b   :  { %3920 = vpow2.f32 %v3255_v20 }
0x2018   :  { %v3921_v28 = vpop.eup %3920 }
0x2019   :  { %v1730_v8 = vadd.f32 1.0, %v3921_v28 }
0x201b   :  { %3922 = vrcp.f32 %v1730_v8 }
0x2028   :  { %v3923_v13 = vpop.eup %3922 }
0x2079   :  { %v1735_v56 = vpop.permute.xlu1 %1734 }
0x207a   :  { %v1737_v22 = vmul.f32 %v3923_v13, %v1735_v56 }
0x207c   :  { %v1739_v51 = vrot.slane %v1737_v22, 3 }
0x207e   :  { %v1741_v23 = vadd.f32 %v1739_v51, %v4508_v29 }
0x2080   :  { %3924 = vtanh.f32 %v1741_v23 }
0x208d   :  { %v3925_v17 = vpop.eup %3924 }
0x208e   :  { %v1744_v12 = vrot.slane %v3925_v17, 1 }
0x2090   :  { %v1746_v31 = vsub.f32 %v4597_v9, %v1744_v12 }
0x2092   :  { %v1748_v32 = vrot.slane %v1746_v31, 4 }
0x2094   :  { %1749 = vrot.lane.b32.xlu0 %v1748_v32, %s3986_s12 }
0x2106   :  { %v1750_v33 = vpop.permute.xlu0 %1749 }
0x2107   :  { %v1752_v35 = vmul.f32 %v3923_v13, %v1750_v33 }
0x2109   :  { %v1754_v21 = vrot.slane %v1752_v35, 3 }
0x210b   :  { %1755 = vrot.lane.b32.xlu1 %v1754_v21, %s3983_s10  ;;  %v3987_v21 = vmov 1  }
0x210c   :  { %3786 = vset.pattern.permute.xlu1 %v3987_v21  ;;  %3787 = vset.pattern.permute.xlu0 %v3987_v21 }
0x217d   :  { %v1756_v39 = vpop.permute.xlu1 %1755 }
0x217e   :  { %v4614_v41 = vadd.f32 %v3925_v17, %v1756_v39 }
0x2180   :  { %v1759_v42 = vpack.c.bf16 %v4614_v41, %v4614_v41 }
0x2182   :  { %v1761_v29 = vshrl.u32 %v1759_v42, 16 }
0x2184   :  { %v1763_v43 = vrot.slane %v1761_v29, 2 }
0x2186   :  { %3644 = vmatmul.mubr.msk.bf16.vlgmr.msra.gmra.mxu1 %vm326_vm8, %v1763_v43  ;;  %v1936_v43 = vrot.slane %v4597_v9, 1 }
0x2246   :  { %v1801_v46 = vpop.f32.mrf.mxu1 }
0x2247   :  { %v1802_v50 = vadd.f32 %v1801_v46, %v4448_v30 }
0x2248   :  { %v3645_v6 = vpop.f32.mrf.mxu1 }
0x2249   :  { %v1809_v53 = vadd.f32 %v1807_v49, %v1802_v50  ;;  %1817 = vrot.lane.b32.xlu0 %v1802_v50, %s3985_s11  ;;  %v1940_v6 = vrot.slane %v4580_v37, 7 }
0x224a   :  { %v1804_v54 = vpop.f32.mrf.mxu1 }
0x224b   :  { %v3257_v57 = vmul.f32 -1.442695, %v1809_v53 }
0x224c   :  { %v3646_v55 = vpop.f32.mrf.mxu1 }
0x224d   :  { %3926 = vpow2.f32 %v3257_v57  ;;  %v1944_v55 = vrot.slane %v4551_v58, 5  ;;  %v1938_v57 = vsel %vm132_vm1, %v4580_v37, %v1936_v43 }
0x225a   :  { %v3927_v44 = vpop.eup %3926 }
0x225b   :  { %v1813_v26 = vadd.f32 1.0, %v3927_v44 }
0x225d   :  { %3928 = vrcp.f32 %v1813_v26  ;;  %v1948_v26 = vrot.slane %v4518_v52, 3 }
0x226a   :  { %v3929_v63 = vpop.eup %3928 }
0x22bb   :  { %v1818_v62 = vpop.permute.xlu0 %1817 }
0x22bc   :  { %v1820_v59 = vmul.f32 %v3929_v63, %v1818_v62 }
0x22be   :  { %v1822_v18 = vrot.slane %v1820_v59, 2  ;;  %v1946_v59 = vsel %vm132_vm1, %v4614_v41, %v1944_v55 }
0x22c0   :  { %v1824_v60 = vadd.f32 %v1822_v18, %v4541_v45  ;;  %v1952_v18 = vrot.slane %v4485_v40, 1 }
0x22c2   :  { %3930 = vtanh.f32 %v1824_v60 }
0x22cf   :  { %v3931_v15 = vpop.eup %3930 }
0x22d0   :  { %v1827_v25 = vrot.slane %v3931_v15, 1 }
0x22d2   :  { %v1829_v0 = vsub.f32 %v4614_v41, %v1827_v25 }
0x22d4   :  { %v1831_v16 = vrot.slane %v1829_v0, 5 }
0x22d6   :  { %1832 = vrot.lane.b32.xlu1 %v1831_v16, %s3986_s12 }
0x2348   :  { %v1833_v3 = vpop.permute.xlu1 %1832 }
0x2349   :  { %v1835_v5 = vmul.f32 %v3929_v63, %v1833_v3  ;;  %v1942_v63 = vsel %vm132_vm1, %v4597_v9, %v1940_v6  ;;  %v4663_v9 = vld [vmem:[%s5227_s7] sm:$0x3f] }
0x234a   :  { %v2007_v3 = vld [vmem:[%s5228_s2] sm:$0xff] }
0x234b   :  { %v1837_v7 = vrot.slane %v1835_v5, 2  ;;  %v2009_v5 = vld [vmem:[%s5228_s2 + $0x10] sm:$0xff] }
0x234d   :  { %1838 = vrot.lane.b32.xlu0 %v1837_v7, %s3983_s10  ;;  %v2010_v7 = vld [vmem:[%s5228_s2 + $0x18] sm:$0xff] }
0x23bf   :  { %v1839_v34 = vpop.permute.xlu0 %1838 }
0x23c0   :  { %v1841_v27 = vadd.f32 %v3931_v15, %v1839_v34  ;;  %v2011_v34 = vld [vmem:[%s5228_s2 + $0x20] sm:$0xff] }
0x23c2   :  { %v1842_v11 = vpack.c.bf16 %v1841_v27, %v1841_v27  ;;  %v1928_v42 = vrot.slane %v1841_v27, 5 }
0x23c4   :  { %v1844_v48 = vrot.slane %v1842_v11, 3  ;;  %v1930_v49 = vsel %vm132_vm1, %v4518_v52, %v1928_v42  ;;  %v2013_v11 = vld [vmem:[%s5228_s2 + $0x30] sm:$0xff] }
0x23c6   :  { %3652 = vmatmul.mubr.msk.bf16.vlgmr.msra.gmra.mxu0 %vm326_vm8, %v1844_v48  ;;  %v2014_v48 = vld [vmem:[%s5228_s2 + $0x38] sm:$0xff] }
0x2486   :  { %v1882_v45 = vpop.f32.mrf.mxu0 }
0x2487   :  { %v1883_v36 = vadd.f32 %v1882_v45, %v4448_v30  ;;  %v2015_v45 = vld [vmem:[%s5228_s2 + $0x40] sm:$0xff] }
0x2488   :  { %v3653_v14 = vpop.f32.mrf.mxu0 }
0x2489   :  { %v1890_v19 = vadd.f32 %v1888_v1, %v1883_v36  ;;  %1898 = vrot.lane.b32.xlu1 %v1883_v36, %s3985_s11  ;;  %v2016_v1 = vld [vmem:[%s5228_s2 + $0x48] sm:$0xff]  ;;  %v2018_v36 = vld [vmem:[%s5228_s2 + $0x58] sm:$0xff] }
0x248a   :  { %v1885_v38 = vpop.f32.mrf.mxu0  ;;  %v2020_v14 = vld [vmem:[%s5228_s2 + $0x68] sm:$0xff] }
0x248b   :  { %v3259_v28 = vmul.f32 -1.442695, %v1890_v19  ;;  %v2022_v19 = vld [vmem:[%s5228_s2 + $0x78] sm:$0xff]  ;;  %v2008_v38 = vld [vmem:[%s5228_s2 + $0x8] sm:$0xff] }
0x248c   :  { %v3654_v20 = vpop.f32.mrf.mxu0 }
0x248d   :  { %3932 = vpow2.f32 %v3259_v28  ;;  %v2017_v20 = vld [vmem:[%s5228_s2 + $0x50] sm:$0xff]  ;;  %v2019_v28 = vld [vmem:[%s5228_s2 + $0x60] sm:$0xff] }
0x249a   :  { %v3933_v8 = vpop.eup %3932 }
0x249b   :  { %v1894_v13 = vadd.f32 1.0, %v3933_v8  ;;  %v2021_v8 = vld [vmem:[%s5228_s2 + $0x70] sm:$0xff] }
0x249d   :  { %3934 = vrcp.f32 %v1894_v13 }
0x24aa   :  { %v3935_v56 = vpop.eup %3934 }
0x24fb   :  { %v1899_v22 = vpop.permute.xlu1 %1898 }
0x24fc   :  { %v1901_v51 = vmul.f32 %v3935_v56, %v1899_v22 }
0x24fe   :  { %v1903_v23 = vrot.slane %v1901_v51, 1 }
0x2500   :  { %v1905_v17 = vadd.f32 %v1903_v23, %v4574_v61  ;;  %v1932_v61 = vrot.slane %v4614_v41, 3 }
0x2502   :  { %3936 = vtanh.f32 %v1905_v17  ;;  %v1934_v53 = vsel %vm132_vm1, %v4551_v58, %v1932_v61  ;;  %v1950_v58 = vsel %vm132_vm1, %v1841_v27, %v1948_v26 }
0x250f   :  { %v3937_v10 = vpop.eup %3936 }
0x2510   :  { %v1908_v30 = vrot.slane %v3937_v10, 1 }
0x2512   :  { %v1910_v12 = vsub.f32 %v1841_v27, %v1908_v30  ;;  %v2012_v27 = vld [vmem:[%s5228_s2 + $0x28] sm:$0xff] }
0x2514   :  { %v1912_v31 = vrot.slane %v1910_v12, 6 }
0x2516   :  { %1913 = vrot.lane.b32.xlu0 %v1912_v31, %s3986_s12 }
0x2588   :  { %v1914_v32 = vpop.permute.xlu0 %1913 }
0x2589   :  { %v1916_v33 = vmul.f32 %v3935_v56, %v1914_v32 }
0x258b   :  { %v1918_v35 = vrot.slane %v1916_v33, 1 }
0x258d   :  { %1919 = vrot.lane.b32.xlu1 %v1918_v35, %s3983_s10 }
0x25ff   :  { %v1920_v39 = vpop.permute.xlu1 %1919 }
0x2600   :  { %v1922_v29 = vadd.f32 %v3937_v10, %v1920_v39 }
0x2602   :  { %v1924_v46 = vrot.slane %v1922_v29, 7  ;;  %v1954_v15 = vsel %vm132_vm1, %v1922_v29, %v1952_v18  ;;  %v2003_v18 = vsub.s32 2, %v4174_v47 }
0x2604   :  { %v1926_v50 = vsel %vm132_vm1, %v4485_v40, %v1924_v46 }
0x2605   :  { %v1955_v54 = vsel %vm1122_vm10, %v1926_v50, %v1930_v49 }
0x2606   :  { %v1956_v44 = vsel %vm1124_vm11, %v1955_v54, %v1934_v53 }
0x2607   :  { %v1957_v62 = vsel %vm1126_vm12, %v1956_v44, %v1938_v57 }
0x2608   :  { %v1958_v60 = vsel %vm1128_vm13, %v1957_v62, %v1942_v63  ;;  %v1997_v62 = vsub.s32 1, %v4174_v47 }
0x2609   :  { %v1959_v37 = vsel %vm215_vm3, %v1958_v60, %v1946_v59  ;;  %vm2183_vm3 = vcmask 72704  }
0x260a   :  { %v1960_v52 = vsel %vm1131_vm14, %v1959_v37, %v1950_v58  ;;  %v4749_v58 = vrot.slane %v4663_v9, %v1997_v62 }
0x260b   :  { %v1961_v25 = vsel %vm1133_vm15, %v1960_v52, %v1954_v15  ;;  %v4752_v15 = vrot.slane %v4663_v9, %v2003_v18  ;;  %v3839_v18 = vld [vmem:[%s5229_s6 + $0x10] sm:$0xff]  }
0x260c   :  { %v1964_v41 = vrot.slane %v1961_v25, 7 }
0x260e   :  { %v1971_v40 = vsel %vm1970_vm2, %v1964_v41, 0.0  ;;  %v1966_v0 = vsel %vm1122_vm10, %v4663_v9, %v1964_v41 }
0x260f   :  { %1972 = vadd.xlane.f32.xlu0 %v1971_v40  ;;  %v1967_v16 = vsel %vm326_vm8, %v1966_v0, 0.0 }
0x2610   :  { %1968 = vadd.xlane.f32.xlu1 %v1967_v16 }
0x2621   :  { %2104 = vperm.xlu1 %3786, %v2007_v3  }
0x2625   :  { %2110 = vperm.xlu1 %3786, %v2009_v5  }
0x2629   :  { %2113 = vperm.xlu1 %3786, %v2010_v7  }
0x262d   :  { %2116 = vperm.xlu1 %3786, %v2011_v34  }
0x2631   :  { %2119 = vperm.xlu1 %3786, %v2012_v27  }
0x2635   :  { %2122 = vperm.xlu1 %3786, %v2013_v11  }
0x2639   :  { %2125 = vperm.xlu1 %3786, %v2014_v48  }
0x263d   :  { %2128 = vperm.xlu1 %3786, %v2015_v45  }
0x2641   :  { %2131 = vperm.xlu1 %3786, %v2016_v1  }
0x2645   :  { %2137 = vperm.xlu1 %3786, %v2018_v36  }
0x2649   :  { %2143 = vperm.xlu1 %3786, %v2020_v14  }
0x264d   :  { %2149 = vperm.xlu1 %3786, %v2022_v19  }
0x2651   :  { %3789 = vset.pattern.permute.xlu1 %v3976_v2 }
0x2652   :  { %2027 = vperm.xlu1 %3789, %v2008_v38  }
0x2656   :  { %2030 = vperm.xlu1 %3789, %v2009_v5  }
0x265a   :  { %2036 = vperm.xlu1 %3789, %v2011_v34  }
0x265e   :  { %2042 = vperm.xlu1 %3789, %v2013_v11  }
0x2662   :  { %2048 = vperm.xlu1 %3789, %v2015_v45  }
0x2666   :  { %2054 = vperm.xlu1 %3789, %v2017_v20  }
0x266a   :  { %2060 = vperm.xlu1 %3789, %v2019_v28  }
0x266e   :  { %2066 = vperm.xlu1 %3789, %v2021_v8  }
0x2698   :  { %v1973_v13 = vpop.xlane.xlu0 %1972 }
0x2699   :  { %v1976_v56 = vmul.f32 0.03125, %v1973_v13  ;;  %v1969_v22 = vpop.xlane.xlu1 %1968 }
0x269a   :  { %v1975_v51 = vmul.f32 0.03125, %v1969_v22 }
0x269b   :  { %v1978_v23 = vsub.f32 %v1964_v41, %v1976_v56 }
0x269c   :  { %v1977_v17 = vsub.f32 %v1966_v0, %v1975_v51 }
0x269d   :  { %v1980_v10 = vmul.f32 %v1978_v23, %v1978_v23  ;;  %v2105_v32 = vpop.permute.xlu1 %2104 }
0x269e   :  { %v1979_v12 = vmul.f32 %v1977_v17, %v1977_v17  ;;  %vm2151_vm1 = vcmp.eq.s32.totalorder %v2105_v32, %v4116_v24 }
0x269f   :  { %v1984_v30 = vsel %vm1970_vm2, %v1980_v10, 0.0  ;;  %v2167_v33 = vsel %vm2151_vm1, 1.0, %v3977_v4 }
0x26a0   :  { %1985 = vadd.xlane.f32.xlu0 %v1984_v30  ;;  %v1981_v31 = vsel %vm326_vm8, %v1979_v12, 0.0  ;;  %3687 = vmatprep.mubr.msk.f32.mxu0 %vm2183_vm3, %v2167_v33 }
0x26a1   :  { %v2111_v35 = vpop.permute.xlu1 %2110 }
0x26a2   :  { %vm2153_vm6 = vcmp.eq.s32.totalorder %v2111_v35, %v4116_v24 }
0x26a4   :  { %1982 = vadd.xlane.f32.xlu0 %v1981_v31 }
0x26a5   :  { %v4724_v21 = vpop.permute.xlu1 %2113 }
0x26a9   :  { %v4726_v39 = vpop.permute.xlu1 %2116 }
0x26aa   :  { %vm2155_vm11 = vcmp.eq.s32.totalorder %v4726_v39, %v4116_v24 }
0x26ad   :  { %v4728_v42 = vpop.permute.xlu1 %2119 }
0x26ae   :  { %vm2156_vm14 = vcmp.eq.s32.totalorder %v4728_v42, %v4116_v24 }
0x26af   :  { %v2172_v51 = vsel %vm2156_vm14, 1.0, %v3977_v4 }
0x26b1   :  { %v4730_v29 = vpop.permute.xlu1 %2122 }
0x26b2   :  { %vm2157_vm15 = vcmp.eq.s32.totalorder %v4730_v29, %v4116_v24 }
0x26b5   :  { %v4732_v61 = vpop.permute.xlu1 %2125 }
0x26ba   :  { %2107 = vperm.xlu0 %3787, %v2008_v38  }
0x26be   :  { %2134 = vperm.xlu0 %3787, %v2017_v20  }
0x26c2   :  { %2140 = vperm.xlu0 %3787, %v2019_v28   ;;  %v2171_v28 = vsel %vm2155_vm11, 1.0, %v3977_v4 }
0x26c6   :  { %2146 = vperm.xlu0 %3787, %v2021_v8  }
0x26ca   :  { %3788 = vset.pattern.permute.xlu0 %v3976_v2  ;;  %v4734_v2 = vpop.permute.xlu1 %2128 }
0x26cb   :  { %2024 = vperm.xlu0 %3788, %v2007_v3  }
0x26ce   :  { %v4736_v43 = vpop.permute.xlu1 %2131 }
0x26cf   :  { %2033 = vperm.xlu0 %3788, %v2010_v7  }
0x26d2   :  { %v4738_v46 = vpop.permute.xlu1 %2137 }
0x26d3   :  { %2039 = vperm.xlu0 %3788, %v2012_v27  }
0x26d6   :  { %v4740_v49 = vpop.permute.xlu1 %2143 }
0x26d7   :  { %2045 = vperm.xlu0 %3788, %v2014_v48  }
0x26da   :  { %v4742_v54 = vpop.permute.xlu1 %2149 }
0x26db   :  { %2051 = vperm.xlu0 %3788, %v2016_v1   ;;  %v2169_v1 = vsel %vm2153_vm6, 1.0, %v3977_v4 }
0x26de   :  { %v2028_v26 = vpop.permute.xlu1 %2027 }
0x26df   :  { %2057 = vperm.xlu0 %3788, %v2018_v36   ;;  %vm2072_vm5 = vcmp.eq.s32.totalorder %v2028_v26, %v4116_v24 }
0x26e0   :  { %v2088_v45 = vsel %vm2072_vm5, 1.0, %v3977_v4  ;;  %vm2159_vm5 = vcmp.eq.s32.totalorder %v4734_v2, %v4116_v24 }
0x26e1   :  { %v2175_v31 = vsel %vm2159_vm5, 1.0, %v3977_v4 }
0x26e2   :  { %v2031_v59 = vpop.permute.xlu1 %2030 }
0x26e3   :  { %2063 = vperm.xlu0 %3788, %v2020_v14   ;;  %vm2073_vm7 = vcmp.eq.s32.totalorder %v2031_v59, %v4116_v24  ;;  %v3838_v59 = vld [vmem:[%s5229_s6 + $0x18] sm:$0xff]  }
0x26e4   :  { %v2089_v14 = vsel %vm2073_vm7, 1.0, %v3977_v4 }
0x26e6   :  { %v2037_v25 = vpop.permute.xlu1 %2036 }
0x26e7   :  { %2069 = vperm.xlu0 %3788, %v2022_v19   ;;  %vm2075_vm12 = vcmp.eq.s32.totalorder %v2037_v25, %v4116_v24 }
0x26e8   :  { %v2091_v13 = vsel %vm2075_vm12, 1.0, %v3977_v4 }
0x26ea   :  { %v2043_v34 = vpop.permute.xlu1 %2042 }
0x26eb   :  { %vm2077_vm2 = vcmp.eq.s32.totalorder %v2043_v34, %v4116_v24 }
0x26ec   :  { %v2093_v10 = vsel %vm2077_vm2, 1.0, %v3977_v4 }
0x26ee   :  { %v2049_v19 = vpop.permute.xlu1 %2048 }
0x26ef   :  { %vm2079_vm6 = vcmp.eq.s32.totalorder %v2049_v19, %v4116_v24 }
0x26f0   :  { %v2095_v33 = vsel %vm2079_vm6, 1.0, %v3977_v4 }
0x26f2   :  { %v2055_v22 = vpop.permute.xlu1 %2054 }
0x26f3   :  { %vm2081_vm11 = vcmp.eq.s32.totalorder %v2055_v22, %v4116_v24 }
0x26f6   :  { %v2061_v35 = vpop.permute.xlu1 %2060 }
0x2729   :  { %v1986_v50 = vpop.xlane.xlu0 %1985 }
0x272a   :  { %v1988_v6 = vmul.f32 0.03125, %v1986_v50 }
0x272c   :  { %v1990_v53 = vadd.f32 1e-05, %v1988_v6 }
0x272d   :  { %v1983_v55 = vpop.xlane.xlu0 %1982 }
0x272e   :  { %3938 = vrsqrt.f32 %v1990_v53  ;;  %v1987_v57 = vmul.f32 0.03125, %v1983_v55 }
0x2730   :  { %v1989_v44 = vadd.f32 1e-05, %v1987_v57 }
0x2732   :  { %3940 = vrsqrt.f32 %v1989_v44 }
0x2735   :  { %v2108_v63 = vpop.permute.xlu0 %2107 }
0x2736   :  { %vm2152_vm4 = vcmp.eq.s32.totalorder %v2108_v63, %v4116_v24 }
0x2737   :  { %v2168_v11 = vsel %vm2152_vm4, 1.0, %v3977_v4  ;;  %vm2158_vm4 = vcmp.eq.s32.totalorder %v4732_v61, %v4116_v24  ;;  %v2097_v61 = vsel %vm2081_vm11, 1.0, %v3977_v4 }
0x2738   :  { %v2174_v12 = vsel %vm2158_vm4, 1.0, %v3977_v4 }
0x2739   :  { %v4746_v60 = vpop.permute.xlu0 %2134 }
0x273b   :  { %v3939_v37 = vpop.eup %3938 }
0x273c   :  { %v1994_v52 = vmul.f32 %v3939_v37, %v1978_v23  ;;  %v2173_v23 = vsel %vm2157_vm15, 1.0, %v3977_v4  ;;  %vm2083_vm15 = vcmp.eq.s32.totalorder %v2061_v35, %v4116_v24 }
0x273d   :  { %v4754_v41 = vpop.permute.xlu0 %2140  ;;  %v2099_v53 = vsel %vm2083_vm15, 1.0, %v3977_v4 }
0x273e   :  { %v2000_v40 = vmul.f32 %v4749_v58, %v1994_v52  ;;  %vm2163_vm14 = vcmp.eq.s32.totalorder %v4754_v41, %v4116_v24 }
0x273f   :  { %v3941_v0 = vpop.eup %3940  ;;  %v2179_v50 = vsel %vm2163_vm14, 1.0, %v3977_v4 }
0x2740   :  { %v2006_v16 = vadd.f32 %v4752_v15, %v2000_v40  ;;  %v1993_v3 = vmul.f32 %v3941_v0, %v1977_v17 }
0x2741   :  { %v4762_v7 = vpop.permute.xlu0 %2146 }
0x2742   :  { %3655 = vmatprep.subr.msk.mxu1 %vm1122_vm10, %v2006_v16  ;;  %3683 = vmatprep.subr.msk.mxu0 %vm1122_vm10, %v2006_v16  ;;  %v1999_v5 = vmul.f32 %v4749_v58, %v1993_v3  ;;  %vm2165_vm4 = vcmp.eq.s32.totalorder %v4762_v7, %v4116_v24 }
0x2743   :  { %3656 = vmatpush3.msk.msra.mxu1 %vm1122_vm10, %v2006_v16  ;;  %3684 = vmatpush3.msk.msra.mxu0 %vm1122_vm10, %v2006_v16  ;;  %vm2154_vm10 = vcmp.eq.s32.totalorder %v4724_v21, %v4116_v24  ;;  %v2181_v57 = vsel %vm2165_vm4, 1.0, %v3977_v4 }
0x2744   :  { %v2005_v27 = vadd.f32 %v4752_v15, %v1999_v5  ;;  %v2170_v20 = vsel %vm2154_vm10, 1.0, %v3977_v4  ;;  %vm2161_vm10 = vcmp.eq.s32.totalorder %v4746_v60, %v4116_v24  ;;  %v3841_v60 = vld [vmem:[%s5229_s6] sm:$0xff]  }
0x2745   :  { %v2177_v42 = vsel %vm2161_vm10, 1.0, %v3977_v4 }
0x2746   :  { %3657 = vmatprep.subr.mxu1 %v2005_v27  ;;  %3685 = vmatprep.subr.mxu0 %v2005_v27  ;;  %v2025_v48 = vpop.permute.xlu0 %2024 }
0x2747   :  { %3658 = vmatpush3.msra.mxu1 %v2005_v27  ;;  %3686 = vmatpush3.msra.mxu0 %v2005_v27  ;;  %vm2071_vm9 = vcmp.eq.s32.totalorder %v2025_v48, %v4116_v24 }
0x2748   :  { %3688 = vmatmul.mubr.msk.f32.vlgmr.msra.gmra.mxu0 %vm2183_vm3, %v2168_v11  ;;  %v2087_v36 = vsel %vm2071_vm9, 1.0, %v3977_v4  ;;  %3735 = vmatprep.subr.mxu0 %v3977_v4  ;;  %vm2160_vm9 = vcmp.eq.s32.totalorder %v4736_v43, %v4116_v24  ;;  %v2067_v43 = vpop.permute.xlu1 %2066 }
0x2749   :  { %3690 = vmatprep.mubr.msk.f32.mxu0 %vm2183_vm3, %v2169_v1  ;;  %3659 = vmatprep.mubr.msk.f32.mxu1 %vm2183_vm3, %v2087_v36  ;;  %v2176_v39 = vsel %vm2160_vm9, 1.0, %v3977_v4  ;;  %vm2085_vm5 = vcmp.eq.s32.totalorder %v2067_v43, %v4116_v24 }
0x274a   :  { %3660 = vmatmul.mubr.msk.f32.vlgmr.msra.gmra.mxu1 %vm2183_vm3, %v2088_v45  ;;  %v2034_v38 = vpop.permute.xlu0 %2033  ;;  %v2101_v26 = vsel %vm2085_vm5, 1.0, %v3977_v4  ;;  %3711 = vmatprep.subr.bf16.mxu1 %v3838_v59 }
0x274b   :  { %vm2074_vm13 = vcmp.eq.s32.totalorder %v2034_v38, %v4116_v24  ;;  %3662 = vmatprep.mubr.msk.f32.mxu1 %vm2183_vm3, %v2089_v14  ;;  %3712 = vmatpush3.bf16.msra.mxu1 %v3838_v59 }
0x274c   :  { %3691 = vmatmul.mubr.msk.f32.gmra.mxu0 %vm2183_vm3, %v2170_v20  ;;  %v2090_v8 = vsel %vm2074_vm13, 1.0, %v3977_v4  ;;  %vm2162_vm13 = vcmp.eq.s32.totalorder %v4738_v46, %v4116_v24  ;;  %3713 = vmatprep.subr.bf16.mxu1 %v3839_v18 }
0x274d   :  { %3693 = vmatprep.mubr.msk.f32.mxu0 %vm2183_vm3, %v2171_v28  ;;  %v2178_v46 = vsel %vm2162_vm13, 1.0, %v3977_v4 }
0x274e   :  { %3663 = vmatmul.mubr.msk.f32.gmra.mxu1 %vm2183_vm3, %v2090_v8  ;;  %v2040_v56 = vpop.permute.xlu0 %2039 }
0x274f   :  { %vm2076_vm1 = vcmp.eq.s32.totalorder %v2040_v56, %v4116_v24  ;;  %3665 = vmatprep.mubr.msk.f32.mxu1 %vm2183_vm3, %v2091_v13  ;;  %3714 = vmatpush3.bf16.msra.mxu1 %v3839_v18 }
0x2750   :  { %3694 = vmatmul.mubr.msk.f32.gmra.mxu0 %vm2183_vm3, %v2172_v51  ;;  %v2092_v17 = vsel %vm2076_vm1, 1.0, %v3977_v4  ;;  %vm2164_vm1 = vcmp.eq.s32.totalorder %v4740_v49, %v4116_v24 }
0x2751   :  { %3696 = vmatprep.mubr.msk.f32.mxu0 %vm2183_vm3, %v2173_v23  ;;  %v2180_v49 = vsel %vm2164_vm1, 1.0, %v3977_v4 }
0x2752   :  { %3666 = vmatmul.mubr.msk.f32.gmra.mxu1 %vm2183_vm3, %v2092_v17  ;;  %v2046_v30 = vpop.permute.xlu0 %2045 }
0x2753   :  { %vm2078_vm7 = vcmp.eq.s32.totalorder %v2046_v30, %v4116_v24  ;;  %3668 = vmatprep.mubr.msk.f32.mxu1 %vm2183_vm3, %v2093_v10 }
0x2754   :  { %3697 = vmatmul.mubr.msk.f32.gmra.mxu0 %vm2183_vm3, %v2174_v12  ;;  %v2094_v32 = vsel %vm2078_vm7, 1.0, %v3977_v4  ;;  %vm2166_vm7 = vcmp.eq.s32.totalorder %v4742_v54, %v4116_v24 }
0x2755   :  { %3699 = vmatprep.mubr.msk.f32.mxu0 %vm2183_vm3, %v2175_v31  ;;  %v2182_v62 = vsel %vm2166_vm7, 1.0, %v3977_v4 }
0x2756   :  { %3669 = vmatmul.mubr.msk.f32.gmra.mxu1 %vm2183_vm3, %v2094_v32  ;;  %v2052_v21 = vpop.permute.xlu0 %2051 }
0x2757   :  { %vm2080_vm12 = vcmp.eq.s32.totalorder %v2052_v21, %v4116_v24  ;;  %3671 = vmatprep.mubr.msk.f32.mxu1 %vm2183_vm3, %v2095_v33 }
0x2758   :  { %3700 = vmatmul.mubr.msk.f32.gmra.mxu0 %vm2183_vm3, %v2176_v39  ;;  %v2096_v29 = vsel %vm2080_vm12, 1.0, %v3977_v4 }
0x2759   :  { %3702 = vmatprep.mubr.msk.f32.mxu0 %vm2183_vm3, %v2177_v42 }
0x275a   :  { %3672 = vmatmul.mubr.msk.f32.gmra.mxu1 %vm2183_vm3, %v2096_v29  ;;  %v2058_v2 = vpop.permute.xlu0 %2057 }
0x275b   :  { %vm2082_vm2 = vcmp.eq.s32.totalorder %v2058_v2, %v4116_v24  ;;  %3674 = vmatprep.mubr.msk.f32.mxu1 %vm2183_vm3, %v2097_v61 }
0x275c   :  { %3703 = vmatmul.mubr.msk.f32.gmra.mxu0 %vm2183_vm3, %v2178_v46  ;;  %v2098_v6 = vsel %vm2082_vm2, 1.0, %v3977_v4 }
0x275d   :  { %3705 = vmatprep.mubr.msk.f32.mxu0 %vm2183_vm3, %v2179_v50 }
0x275e   :  { %3675 = vmatmul.mubr.msk.f32.gmra.mxu1 %vm2183_vm3, %v2098_v6  ;;  %v2064_v55 = vpop.permute.xlu0 %2063 }
0x275f   :  { %vm2084_vm6 = vcmp.eq.s32.totalorder %v2064_v55, %v4116_v24  ;;  %3677 = vmatprep.mubr.msk.f32.mxu1 %vm2183_vm3, %v2099_v53 }
0x2760   :  { %3706 = vmatmul.mubr.msk.f32.gmra.mxu0 %vm2183_vm3, %v2180_v49  ;;  %v2100_v44 = vsel %vm2084_vm6, 1.0, %v3977_v4 }
0x2761   :  { %3708 = vmatprep.mubr.msk.f32.mxu0 %vm2183_vm3, %v2181_v57 }
0x2762   :  { %3678 = vmatmul.mubr.msk.f32.gmra.mxu1 %vm2183_vm3, %v2100_v44  ;;  %v2070_v63 = vpop.permute.xlu0 %2069 }
0x2763   :  { %vm2086_vm9 = vcmp.eq.s32.totalorder %v2070_v63, %v4116_v24  ;;  %3680 = vmatprep.mubr.msk.f32.mxu1 %vm2183_vm3, %v2101_v26  ;;  %v3840_v24 = vld [vmem:[%s5229_s6 + $0x8] sm:$0xff]  }
0x2764   :  { %3709 = vmatmul.mubr.msk.f32.gmra.mxu0 %vm2183_vm3, %v2182_v62  ;;  %v2102_v54 = vsel %vm2086_vm9, 1.0, %v3977_v4  ;;  %3715 = vmatprep.subr.bf16.mxu1 %v3840_v24 }
0x2765   :  { %3767 = vmatprep.mubr.msk.f32.mxu0 %vm3978_vm0, %v3977_v4  ;;  %3716 = vmatpush3.bf16.msra.mxu1 %v3840_v24  ;;  %vm2697_vm0 = vcmask 523264  }
0x2766   :  { %3681 = vmatmul.mubr.msk.f32.gmra.mxu1 %vm2183_vm3, %v2102_v54  ;;  %3717 = vmatprep.subr.bf16.mxu1 %v3841_v60 }
0x2769   :  { %3718 = vmatpush3.bf16.msra.mxu1 %v3841_v60 }
0x2808   :  { %v3689_v37 = vpop.f32.mrf.mxu0 }
0x280a   :  { %v2494_v52 = vpop.f32.mrf.mxu0  ;;  %v3661_v56 = vpop.f32.mrf.mxu1 }
0x280b   :  { %v3790_v25 = vpack.i.bf16 %v3689_v37, %v2494_v52 }
0x280c   :  { %v3692_v41 = vpop.f32.mrf.mxu0  ;;  %v2301_v22 = vpop.f32.mrf.mxu1 }
0x280d   :  { %3791 = vrot.lane.b32.xlu1 %v3790_v25, %s3986_s12 }
0x280e   :  { %v2504_v40 = vpop.f32.mrf.mxu0  ;;  %v3664_v51 = vpop.f32.mrf.mxu1 }
0x280f   :  { %v3795_v0 = vpack.i.bf16 %v3692_v41, %v2504_v40 }
0x2810   :  { %v3695_v16 = vpop.f32.mrf.mxu0  ;;  %v2311_v23 = vpop.f32.mrf.mxu1 }
0x2811   :  { %3796 = vrot.lane.b32.xlu0 %v3795_v0, %s3986_s12 }
0x2812   :  { %v2514_v3 = vpop.f32.mrf.mxu0  ;;  %v3667_v17 = vpop.f32.mrf.mxu1 }
0x2813   :  { %v3800_v5 = vpack.i.bf16 %v3695_v16, %v2514_v3 }
0x2814   :  { %v3698_v7 = vpop.f32.mrf.mxu0  ;;  %v2321_v10 = vpop.f32.mrf.mxu1 }
0x2815   :  { %3801 = vrot.lane.b32.xlu1 %v3800_v5, %s3986_s12 }
0x2816   :  { %v2524_v34 = vpop.f32.mrf.mxu0  ;;  %v3670_v30 = vpop.f32.mrf.mxu1 }
0x2817   :  { %v3805_v27 = vpack.i.bf16 %v3698_v7, %v2524_v34 }
0x2818   :  { %v3701_v11 = vpop.f32.mrf.mxu0  ;;  %v2331_v12 = vpop.f32.mrf.mxu1 }
0x2819   :  { %3806 = vrot.lane.b32.xlu0 %v3805_v27, %s3986_s12 }
0x281a   :  { %v2534_v48 = vpop.f32.mrf.mxu0  ;;  %v3673_v35 = vpop.f32.mrf.mxu1 }
0x281b   :  { %v3810_v45 = vpack.i.bf16 %v3701_v11, %v2534_v48 }
0x281c   :  { %v3704_v1 = vpop.f32.mrf.mxu0  ;;  %v2341_v43 = vpop.f32.mrf.mxu1 }
0x281d   :  { %3811 = vrot.lane.b32.xlu1 %v3810_v45, %s3986_s12 }
0x281e   :  { %v2544_v36 = vpop.f32.mrf.mxu0  ;;  %v3676_v57 = vpop.f32.mrf.mxu1 }
0x281f   :  { %v3815_v14 = vpack.i.bf16 %v3704_v1, %v2544_v36 }
0x2820   :  { %v3707_v19 = vpop.f32.mrf.mxu0  ;;  %v2351_v18 = vpop.f32.mrf.mxu1 }
0x2821   :  { %3816 = vrot.lane.b32.xlu0 %v3815_v14, %s3986_s12 }
0x2822   :  { %v2554_v38 = vpop.f32.mrf.mxu0  ;;  %v3679_v40 = vpop.f32.mrf.mxu1 }
0x2823   :  { %v3820_v20 = vpack.i.bf16 %v3707_v19, %v2554_v38 }
0x2824   :  { %v3710_v28 = vpop.f32.mrf.mxu0  ;;  %v2361_v27 = vpop.f32.mrf.mxu1 }
0x2825   :  { %3821 = vrot.lane.b32.xlu1 %v3820_v20, %s3986_s12 }
0x2826   :  { %v2564_v8 = vpop.f32.mrf.mxu0  ;;  %v3682_v19 = vpop.f32.mrf.mxu1 }
0x2827   :  { %v3825_v13 = vpack.i.bf16 %v3710_v28, %v2564_v8 }
0x2829   :  { %3826 = vrot.lane.b32.xlu0 %v3825_v13, %s3986_s12 }
0x287f   :  { %v3792_v31 = vpop.permute.xlu1 %3791 }
0x2880   :  { %v3794_v32 = vunpack.i.h.bf16 %v3792_v31  ;;  %v3793_v33 = vunpack.i.l.bf16 %v3792_v31 }
0x2882   :  { %v2637_v21 = vsel %vm326_vm8, %v2301_v22, %v3793_v33  ;;  %v2638_v39 = vsel %vm326_vm8, %v3661_v56, %v3794_v32  ;;  %v2371_v22 = vpop.f32.mrf.mxu1 }
0x2883   :  { %v2653_v42 = vpack.c.bf16 %v2638_v39, %v2637_v21  ;;  %v3797_v29 = vpop.permute.xlu0 %3796 }
0x2884   :  { %v3799_v61 = vunpack.i.h.bf16 %v3797_v29  ;;  %v3798_v2 = vunpack.i.l.bf16 %v3797_v29  ;;  %v2671_v29 = vsub.s32 3, %v4174_v47 }
0x2885   :  { %3719 = vmatprep.mubr.msk.bf16.mxu1 %vm2697_vm0, %v2653_v42 }
0x2886   :  { %v2639_v46 = vsel %vm326_vm8, %v2311_v23, %v3798_v2  ;;  %v2640_v50 = vsel %vm326_vm8, %v3664_v51, %v3799_v61 }
0x2887   :  { %v2654_v6 = vpack.c.bf16 %v2640_v50, %v2639_v46  ;;  %v3802_v53 = vpop.permute.xlu1 %3801 }
0x2888   :  { %v3804_v55 = vunpack.i.h.bf16 %v3802_v53  ;;  %v3803_v49 = vunpack.i.l.bf16 %v3802_v53 }
0x2889   :  { %3720 = vmatmul.mubr.msk.bf16.vlgmr.msra.gmra.mxu1 %vm2697_vm0, %v2654_v6 }
0x288a   :  { %v2641_v44 = vsel %vm326_vm8, %v2321_v10, %v3803_v49  ;;  %v2642_v26 = vsel %vm326_vm8, %v3667_v17, %v3804_v55 }
0x288b   :  { %v2655_v63 = vpack.c.bf16 %v2642_v26, %v2641_v44  ;;  %v3807_v62 = vpop.permute.xlu0 %3806 }
0x288c   :  { %v3809_v54 = vunpack.i.h.bf16 %v3807_v62  ;;  %v3808_v59 = vunpack.i.l.bf16 %v3807_v62 }
0x288d   :  { %3723 = vmatprep.mubr.msk.bf16.mxu1 %vm2697_vm0, %v2655_v63 }
0x288e   :  { %v2643_v24 = vsel %vm326_vm8, %v2331_v12, %v3808_v59  ;;  %v2644_v60 = vsel %vm326_vm8, %v3670_v30, %v3809_v54 }
0x288f   :  { %v2656_v37 = vpack.c.bf16 %v2644_v60, %v2643_v24  ;;  %v3812_v52 = vpop.permute.xlu1 %3811 }
0x2890   :  { %v3814_v25 = vunpack.i.h.bf16 %v3812_v52  ;;  %v3813_v41 = vunpack.i.l.bf16 %v3812_v52 }
0x2891   :  { %3724 = vmatmul.mubr.msk.bf16.gmra.mxu1 %vm2697_vm0, %v2656_v37 }
0x2892   :  { %v2645_v0 = vsel %vm326_vm8, %v2341_v43, %v3813_v41  ;;  %v2646_v16 = vsel %vm326_vm8, %v3673_v35, %v3814_v25  ;;  %v2672_v43 = vrot.slane %v4663_v9, %v2671_v29 }
0x2893   :  { %v2657_v3 = vpack.c.bf16 %v2646_v16, %v2645_v0  ;;  %v3817_v5 = vpop.permute.xlu0 %3816 }
0x2894   :  { %v3819_v7 = vunpack.i.h.bf16 %v3817_v5  ;;  %v3818_v34 = vunpack.i.l.bf16 %v3817_v5 }
0x2895   :  { %3727 = vmatprep.mubr.msk.bf16.mxu1 %vm2697_vm0, %v2657_v3 }
0x2896   :  { %v2647_v11 = vsel %vm326_vm8, %v2351_v18, %v3818_v34  ;;  %v2648_v48 = vsel %vm326_vm8, %v3676_v57, %v3819_v7 }
0x2897   :  { %v2658_v45 = vpack.c.bf16 %v2648_v48, %v2647_v11  ;;  %v3822_v1 = vpop.permute.xlu1 %3821 }
0x2898   :  { %v3824_v36 = vunpack.i.h.bf16 %v3822_v1  ;;  %v3823_v14 = vunpack.i.l.bf16 %v3822_v1 }
0x2899   :  { %3728 = vmatmul.mubr.msk.bf16.gmra.mxu1 %vm2697_vm0, %v2658_v45 }
0x289a   :  { %v2649_v38 = vsel %vm326_vm8, %v2361_v27, %v3823_v14  ;;  %v2650_v20 = vsel %vm326_vm8, %v3679_v40, %v3824_v36 }
0x289b   :  { %v2659_v28 = vpack.c.bf16 %v2650_v20, %v2649_v38  ;;  %v3827_v8 = vpop.permute.xlu0 %3826 }
0x289c   :  { %v3829_v13 = vunpack.i.h.bf16 %v3827_v8  ;;  %v3828_v56 = vunpack.i.l.bf16 %v3827_v8 }
0x289d   :  { %3731 = vmatprep.mubr.msk.bf16.mxu1 %vm2697_vm0, %v2659_v28 }
0x289e   :  { %v2651_v51 = vsel %vm326_vm8, %v2371_v22, %v3828_v56  ;;  %v2652_v23 = vsel %vm326_vm8, %v3682_v19, %v3829_v13 }
0x289f   :  { %v2660_v17 = vpack.c.bf16 %v2652_v23, %v2651_v51 }
0x28a1   :  { %3732 = vmatmul.mubr.msk.bf16.gmra.mxu1 %vm2697_vm0, %v2660_v17 }
0x2949   :  { %v3721_v10 = vpop.f32.mrf.mxu1 }
0x294a   :  { %v4987_v38 = vadd.f32 %v3721_v10, %v2672_v43 }
0x294b   :  { %v4919_v30 = vpop.f32.mrf.mxu1 }
0x294c   :  { %v2821_v22 = vmax.f32 %v4987_v38, 0.0  ;;  %v5001_v51 = vadd.f32 %v4919_v30, %v2672_v43 }
0x294d   :  { %v3722_v12 = vpop.f32.mrf.mxu1 }
0x294e   :  { %v4981_v36 = vadd.f32 %v3722_v12, %v2672_v43  ;;  %v2819_v12 = vmax.f32 %v5001_v51, 0.0  ;;  %v5135_v51 = vld [vmem:[%s5227_s7] sm:$0x3f] }
0x294f   :  { %v2759_v31 = vpop.f32.mrf.mxu1 }
0x2950   :  { %v2822_v8 = vmax.f32 %v4981_v36, 0.0  ;;  %v4994_v13 = vadd.f32 %v2759_v31, %v2672_v43  ;;  %v2841_v31 = vsel %vm326_vm8, %v2821_v22, 0.0 }
0x2951   :  { %v3725_v32 = vpop.f32.mrf.mxu1 }
0x2952   :  { %v4963_v3 = vadd.f32 %v3725_v32, %v2672_v43  ;;  %v2820_v17 = vmax.f32 %v4994_v13, 0.0  ;;  %v2844_v10 = vsel %vm326_vm8, %v2822_v8, 0.0  ;;  %v2835_v32 = vsel %vm326_vm8, %v2819_v12, 0.0 }
0x2953   :  { %v2772_v33 = vpop.f32.mrf.mxu1 }
0x2954   :  { %v2825_v48 = vmax.f32 %v4963_v3, 0.0  ;;  %v4976_v45 = vadd.f32 %v2772_v33, %v2672_v43  ;;  %v2838_v30 = vsel %vm326_vm8, %v2820_v17, 0.0 }
0x2955   :  { %v3726_v35 = vpop.f32.mrf.mxu1 }
0x2956   :  { %v4957_v40 = vadd.f32 %v3726_v35, %v2672_v43  ;;  %v2823_v20 = vmax.f32 %v4976_v45, 0.0  ;;  %v2853_v28 = vsel %vm326_vm8, %v2825_v48, 0.0 }
0x2957   :  { %v2775_v21 = vpop.f32.mrf.mxu1 }
0x2958   :  { %v2826_v34 = vmax.f32 %v4957_v40, 0.0  ;;  %v4970_v27 = vadd.f32 %v2775_v21, %v2672_v43  ;;  %v2847_v23 = vsel %vm326_vm8, %v2823_v20, 0.0 }
0x2959   :  { %v3729_v39 = vpop.f32.mrf.mxu1 }
0x295a   :  { %v4938_v62 = vadd.f32 %v3729_v39, %v2672_v43  ;;  %v2824_v14 = vmax.f32 %v4970_v27, 0.0  ;;  %v2856_v19 = vsel %vm326_vm8, %v2826_v34, 0.0 }
0x295b   :  { %v2788_v42 = vpop.f32.mrf.mxu1 }
0x295c   :  { %v2829_v52 = vmax.f32 %v4938_v62, 0.0  ;;  %v4952_v25 = vadd.f32 %v2788_v42, %v2672_v43  ;;  %v2850_v56 = vsel %vm326_vm8, %v2824_v14, 0.0 }
0x295d   :  { %v3730_v61 = vpop.f32.mrf.mxu1 }
0x295e   :  { %v4933_v26 = vadd.f32 %v3730_v61, %v2672_v43  ;;  %v2827_v5 = vmax.f32 %v4952_v25, 0.0  ;;  %v2865_v7 = vsel %vm326_vm8, %v2829_v52, 0.0 }
0x295f   :  { %v2791_v2 = vpop.f32.mrf.mxu1 }
0x2960   :  { %v2830_v24 = vmax.f32 %v4933_v26, 0.0  ;;  %v4946_v60 = vadd.f32 %v2791_v2, %v2672_v43  ;;  %v2859_v1 = vsel %vm326_vm8, %v2827_v5, 0.0 }
0x2961   :  { %v3733_v46 = vpop.f32.mrf.mxu1 }
0x2962   :  { %v4923_v50 = vadd.f32 %v3733_v46, %v2672_v43  ;;  %v2828_v0 = vmax.f32 %v4946_v60, 0.0  ;;  %v2868_v16 = vsel %vm326_vm8, %v2830_v24, 0.0 }
0x2963   :  { %v2804_v6 = vpop.f32.mrf.mxu1 }
0x2964   :  { %v2833_v53 = vmax.f32 %v4923_v50, 0.0  ;;  %v4926_v49 = vadd.f32 %v2804_v6, %v2672_v43  ;;  %v2862_v11 = vsel %vm326_vm8, %v2828_v0, 0.0 }
0x2965   :  { %v3734_v55 = vpop.f32.mrf.mxu1 }
0x2966   :  { %v4928_v57 = vadd.f32 %v3734_v55, %v2672_v43  ;;  %v2877_v44 = vsel %vm326_vm8, %v2833_v53, 0.0  ;;  %v2831_v54 = vmax.f32 %v4926_v49, 0.0 }
0x2967   :  { %2878 = vadd.xlane.f32.xlu0 %v2877_v44  ;;  %v2807_v47 = vpop.f32.mrf.mxu1 }
0x2968   :  { %v2834_v9 = vmax.f32 %v4928_v57, 0.0  ;;  %v4936_v63 = vadd.f32 %v2807_v47, %v2672_v43  ;;  %v2871_v41 = vsel %vm326_vm8, %v2831_v54, 0.0 }
0x296a   :  { %v2832_v59 = vmax.f32 %v4936_v63, 0.0  ;;  %v2880_v18 = vsel %vm326_vm8, %v2834_v9, 0.0 }
0x296b   :  { %2881 = vadd.xlane.f32.xlu1 %v2880_v18 }
0x296c   :  { %v2874_v37 = vsel %vm326_vm8, %v2832_v59, 0.0 }
0x296d   :  { %2875 = vadd.xlane.f32.xlu0 %v2874_v37 }
0x296f   :  { %2872 = vadd.xlane.f32.xlu1 %v2871_v41 }
0x2971   :  { %2869 = vadd.xlane.f32.xlu0 %v2868_v16 }
0x2973   :  { %2866 = vadd.xlane.f32.xlu1 %v2865_v7 }
0x2975   :  { %2863 = vadd.xlane.f32.xlu0 %v2862_v11 }
0x2977   :  { %2860 = vadd.xlane.f32.xlu1 %v2859_v1 }
0x2979   :  { %2857 = vadd.xlane.f32.xlu0 %v2856_v19 }
0x297b   :  { %2854 = vadd.xlane.f32.xlu1 %v2853_v28 }
0x297d   :  { %2851 = vadd.xlane.f32.xlu0 %v2850_v56 }
0x297f   :  { %2848 = vadd.xlane.f32.xlu1 %v2847_v23 }
0x2981   :  { %2845 = vadd.xlane.f32.xlu0 %v2844_v10 }
0x2983   :  { %2842 = vadd.xlane.f32.xlu1 %v2841_v31 }
0x2985   :  { %2839 = vadd.xlane.f32.xlu0 %v2838_v30 }
0x2987   :  { %2836 = vadd.xlane.f32.xlu1 %v2835_v32 }
0x29f0   :  { %v2879_v33 = vpop.xlane.xlu0 %2878 }
0x29f1   :  { %v2897_v35 = vmul.f32 0.03125, %v2879_v33 }
0x29f3   :  { %v5022_v21 = vsub.f32 %v2833_v53, %v2897_v35 }
0x29f4   :  { %v2882_v39 = vpop.xlane.xlu1 %2881 }
0x29f5   :  { %v2898_v42 = vmul.f32 0.03125, %v2882_v39  ;;  %v2929_v29 = vmul.f32 %v5022_v21, %v5022_v21 }
0x29f6   :  { %v2876_v61 = vpop.xlane.xlu0 %2875 }
0x29f7   :  { %v5028_v2 = vsub.f32 %v2834_v9, %v2898_v42  ;;  %v2896_v43 = vmul.f32 0.03125, %v2876_v61  ;;  %v2973_v46 = vsel %vm326_vm8, %v2929_v29, 0.0 }
0x29f8   :  { %2974 = vadd.xlane.f32.xlu1 %v2973_v46  ;;  %v2873_v6 = vpop.xlane.xlu1 %2872 }
0x29f9   :  { %v5033_v50 = vsub.f32 %v2832_v59, %v2896_v43  ;;  %v2895_v53 = vmul.f32 0.03125, %v2873_v6  ;;  %v2930_v55 = vmul.f32 %v5028_v2, %v5028_v2 }
0x29fa   :  { %v2870_v44 = vpop.xlane.xlu0 %2869 }
0x29fb   :  { %v5039_v47 = vsub.f32 %v2831_v54, %v2895_v53  ;;  %v2894_v57 = vmul.f32 0.03125, %v2870_v44  ;;  %v2976_v9 = vsel %vm326_vm8, %v2930_v55, 0.0  ;;  %v2928_v18 = vmul.f32 %v5033_v50, %v5033_v50 }
0x29fc   :  { %2977 = vadd.xlane.f32.xlu0 %v2976_v9  ;;  %v2867_v37 = vpop.xlane.xlu1 %2866 }
0x29fd   :  { %v5046_v63 = vsub.f32 %v2830_v24, %v2894_v57  ;;  %v2893_v59 = vmul.f32 0.03125, %v2867_v37  ;;  %v2927_v41 = vmul.f32 %v5039_v47, %v5039_v47  ;;  %v2970_v49 = vsel %vm326_vm8, %v2928_v18, 0.0 }
0x29fe   :  { %v2864_v16 = vpop.xlane.xlu0 %2863 }
0x29ff   :  { %v5053_v54 = vsub.f32 %v2829_v52, %v2893_v59  ;;  %v2892_v7 = vmul.f32 0.03125, %v2864_v16  ;;  %v2967_v11 = vsel %vm326_vm8, %v2927_v41, 0.0  ;;  %v2926_v1 = vmul.f32 %v5046_v63, %v5046_v63 }
0x2a00   :  { %2971 = vadd.xlane.f32.xlu0 %v2970_v49  ;;  %2968 = vadd.xlane.f32.xlu1 %v2967_v11  ;;  %v2861_v26 = vpop.xlane.xlu1 %2860 }
0x2a01   :  { %v5060_v24 = vsub.f32 %v2828_v0, %v2892_v7  ;;  %v2891_v19 = vmul.f32 0.03125, %v2861_v26  ;;  %v2925_v28 = vmul.f32 %v5053_v54, %v5053_v54  ;;  %v2964_v52 = vsel %vm326_vm8, %v2926_v1, 0.0 }
0x2a02   :  { %v2858_v62 = vpop.xlane.xlu0 %2857 }
0x2a03   :  { %v5067_v56 = vsub.f32 %v2827_v5, %v2891_v19  ;;  %v2890_v23 = vmul.f32 0.03125, %v2858_v62  ;;  %v2961_v10 = vsel %vm326_vm8, %v2925_v28, 0.0  ;;  %v2924_v31 = vmul.f32 %v5060_v24, %v5060_v24 }
0x2a04   :  { %2965 = vadd.xlane.f32.xlu0 %v2964_v52  ;;  %2962 = vadd.xlane.f32.xlu1 %v2961_v10  ;;  %v2855_v60 = vpop.xlane.xlu1 %2854 }
0x2a05   :  { %v5074_v0 = vsub.f32 %v2826_v34, %v2890_v23  ;;  %v2889_v30 = vmul.f32 0.03125, %v2855_v60  ;;  %v2923_v32 = vmul.f32 %v5067_v56, %v5067_v56  ;;  %v2958_v5 = vsel %vm326_vm8, %v2924_v31, 0.0 }
0x2a06   :  { %v2852_v25 = vpop.xlane.xlu0 %2851 }
0x2a07   :  { %v5081_v33 = vsub.f32 %v2825_v48, %v2889_v30  ;;  %v2888_v35 = vmul.f32 0.03125, %v2852_v25  ;;  %v2955_v39 = vsel %vm326_vm8, %v2923_v32, 0.0  ;;  %v2922_v42 = vmul.f32 %v5074_v0, %v5074_v0 }
0x2a08   :  { %2959 = vadd.xlane.f32.xlu0 %v2958_v5  ;;  %2956 = vadd.xlane.f32.xlu1 %v2955_v39  ;;  %v2849_v40 = vpop.xlane.xlu1 %2848 }
0x2a09   :  { %v5088_v34 = vsub.f32 %v2824_v14, %v2888_v35  ;;  %v2887_v29 = vmul.f32 0.03125, %v2849_v40  ;;  %v2921_v61 = vmul.f32 %v5081_v33, %v5081_v33  ;;  %v2952_v48 = vsel %vm326_vm8, %v2922_v42, 0.0 }
0x2a0a   :  { %v2846_v3 = vpop.xlane.xlu0 %2845 }
0x2a0b   :  { %v5095_v43 = vsub.f32 %v2823_v20, %v2887_v29  ;;  %v2886_v46 = vmul.f32 0.03125, %v2846_v3  ;;  %v2949_v6 = vsel %vm326_vm8, %v2921_v61, 0.0  ;;  %v2920_v53 = vmul.f32 %v5088_v34, %v5088_v34 }
0x2a0c   :  { %2953 = vadd.xlane.f32.xlu0 %v2952_v48  ;;  %2950 = vadd.xlane.f32.xlu1 %v2949_v6  ;;  %v2843_v27 = vpop.xlane.xlu1 %2842 }
0x2a0d   :  { %v5102_v14 = vsub.f32 %v2822_v8, %v2886_v46  ;;  %v2885_v55 = vmul.f32 0.03125, %v2843_v27  ;;  %v2919_v44 = vmul.f32 %v5095_v43, %v5095_v43  ;;  %v2946_v20 = vsel %vm326_vm8, %v2920_v53, 0.0 }
0x2a0e   :  { %v2840_v45 = vpop.xlane.xlu0 %2839 }
0x2a0f   :  { %v5109_v57 = vsub.f32 %v2821_v22, %v2885_v55  ;;  %v2884_v9 = vmul.f32 0.03125, %v2840_v45  ;;  %v2943_v18 = vsel %vm326_vm8, %v2919_v44, 0.0  ;;  %v2918_v37 = vmul.f32 %v5102_v14, %v5102_v14 }
0x2a10   :  { %2947 = vadd.xlane.f32.xlu0 %v2946_v20  ;;  %2944 = vadd.xlane.f32.xlu1 %v2943_v18  ;;  %v2837_v36 = vpop.xlane.xlu1 %2836 }
0x2a11   :  { %v5116_v8 = vsub.f32 %v2820_v17, %v2884_v9  ;;  %v2883_v59 = vmul.f32 0.03125, %v2837_v36  ;;  %v2917_v41 = vmul.f32 %v5109_v57, %v5109_v57  ;;  %v2940_v22 = vsel %vm326_vm8, %v2918_v37, 0.0 }
0x2a13   :  { %v5122_v38 = vsub.f32 %v2819_v12, %v2883_v59  ;;  %v2937_v16 = vsel %vm326_vm8, %v2917_v41, 0.0  ;;  %v2916_v49 = vmul.f32 %v5116_v8, %v5116_v8 }
0x2a14   :  { %2941 = vadd.xlane.f32.xlu0 %v2940_v22  ;;  %2938 = vadd.xlane.f32.xlu1 %v2937_v16 }
0x2a15   :  { %v2915_v13 = vmul.f32 %v5122_v38, %v5122_v38  ;;  %v2934_v17 = vsel %vm326_vm8, %v2916_v49, 0.0 }
0x2a17   :  { %v2931_v7 = vsel %vm326_vm8, %v2915_v13, 0.0 }
0x2a18   :  { %2935 = vadd.xlane.f32.xlu0 %v2934_v17  ;;  %2932 = vadd.xlane.f32.xlu1 %v2931_v7 }
0x2a2e   :  { %3077 = vperm.xlu0 %3788, %v5135_v51  }
0x2a81   :  { %v2975_v12 = vpop.xlane.xlu1 %2974 }
0x2a82   :  { %v2993_v11 = vmul.f32 0.03125, %v2975_v12 }
0x2a84   :  { %v3009_v1 = vadd.f32 1e-05, %v2993_v11 }
0x2a85   :  { %v2978_v26 = vpop.xlane.xlu0 %2977 }
0x2a86   :  { %v2994_v19 = vmul.f32 0.03125, %v2978_v26  ;;  %3942 = vrsqrt.f32 %v3009_v1 }
0x2a88   :  { %v3010_v28 = vadd.f32 1e-05, %v2994_v19 }
0x2a89   :  { %v2972_v62 = vpop.xlane.xlu0 %2971  ;;  %v2969_v52 = vpop.xlane.xlu1 %2968 }
0x2a8a   :  { %3944 = vrsqrt.f32 %v3010_v28  ;;  %v2992_v23 = vmul.f32 0.03125, %v2972_v62  ;;  %v2991_v10 = vmul.f32 0.03125, %v2969_v52 }
0x2a8c   :  { %v3008_v31 = vadd.f32 1e-05, %v2992_v23  ;;  %v3007_v60 = vadd.f32 1e-05, %v2991_v10 }
0x2a8d   :  { %v2966_v30 = vpop.xlane.xlu0 %2965  ;;  %v2963_v32 = vpop.xlane.xlu1 %2962 }
0x2a8e   :  { %3946 = vrsqrt.f32 %v3008_v31  ;;  %v2990_v25 = vmul.f32 0.03125, %v2966_v30  ;;  %v2989_v35 = vmul.f32 0.03125, %v2963_v32 }
0x2a8f   :  { %3948 = vrsqrt.f32 %v3007_v60 }
0x2a90   :  { %v3006_v5 = vadd.f32 1e-05, %v2990_v25  ;;  %v3005_v42 = vadd.f32 1e-05, %v2989_v35 }
0x2a91   :  { %v2960_v39 = vpop.xlane.xlu0 %2959  ;;  %v2957_v29 = vpop.xlane.xlu1 %2956 }
0x2a92   :  { %3950 = vrsqrt.f32 %v3006_v5  ;;  %v2988_v40 = vmul.f32 0.03125, %v2960_v39  ;;  %v2987_v48 = vmul.f32 0.03125, %v2957_v29 }
0x2a93   :  { %v3943_v61 = vpop.eup %3942  ;;  %3952 = vrsqrt.f32 %v3005_v42 }
0x2a94   :  { %v3041_v46 = vmul.f32 %v3943_v61, %v5022_v21  ;;  %v3004_v53 = vadd.f32 1e-05, %v2988_v40  ;;  %v3003_v45 = vadd.f32 1e-05, %v2987_v48 }
0x2a95   :  { %v2954_v27 = vpop.xlane.xlu0 %2953  ;;  %v2951_v18 = vpop.xlane.xlu1 %2950 }
0x2a96   :  { %v2986_v20 = vmul.f32 0.03125, %v2954_v27  ;;  %3954 = vrsqrt.f32 %v3004_v53  ;;  %v3057_v36 = vmul.f32 %v3041_v46, %v4749_v58 }
0x2a97   :  { %v3945_v3 = vpop.eup %3944  ;;  %3956 = vrsqrt.f32 %v3003_v45 }
0x2a98   :  { %v3042_v6 = vmul.f32 %v3945_v3, %v5028_v2  ;;  %v3002_v21 = vadd.f32 1e-05, %v2986_v20  ;;  %v2985_v2 = vmul.f32 0.03125, %v2951_v18  ;;  %v3073_v22 = vadd.f32 %v3057_v36, %v4752_v15 }
0x2a99   :  { %v2948_v49 = vpop.xlane.xlu0 %2947  ;;  %v2945_v12 = vpop.xlane.xlu1 %2944 }
0x2a9a   :  { %v3058_v55 = vmul.f32 %v3042_v6, %v4749_v58  ;;  %3958 = vrsqrt.f32 %v3002_v21  ;;  %v3001_v13 = vadd.f32 1e-05, %v2985_v2  ;;  %v2984_v7 = vmul.f32 0.03125, %v2948_v49 }
0x2a9b   :  { %v3947_v44 = vpop.eup %3946  ;;  %v2983_v26 = vmul.f32 0.03125, %v2945_v12 }
0x2a9c   :  { %v3040_v9 = vmul.f32 %v3947_v44, %v5033_v50  ;;  %v3074_v37 = vadd.f32 %v3058_v55, %v4752_v15  ;;  %v3949_v59 = vpop.eup %3948  ;;  %3960 = vrsqrt.f32 %v3001_v13  ;;  %v3000_v28 = vadd.f32 1e-05, %v2984_v7 }
0x2a9d   :  { %v3039_v41 = vmul.f32 %v3949_v59, %v5039_v47  ;;  %v2942_v62 = vpop.xlane.xlu0 %2941  ;;  %v2999_v10 = vadd.f32 1e-05, %v2983_v26  ;;  %v2939_v30 = vpop.xlane.xlu1 %2938 }
0x2a9e   :  { %3736 = vmatpush3.xpose.msk.msra.mxu0 %vm326_vm8, %v3074_v37  ;;  %v3056_v50 = vmul.f32 %v3040_v9, %v4749_v58  ;;  %v2982_v31 = vmul.f32 0.03125, %v2942_v62  ;;  %3962 = vrsqrt.f32 %v3000_v28  ;;  %v2981_v35 = vmul.f32 0.03125, %v2939_v30 }
0x2a9f   :  { %3737 = vmatprep.subr.mxu0 %v3977_v4  ;;  %v3951_v16 = vpop.eup %3950  ;;  %v3055_v47 = vmul.f32 %v3039_v41, %v4749_v58  ;;  %3964 = vrsqrt.f32 %v2999_v10 }
0x2aa0   :  { %v3038_v17 = vmul.f32 %v3951_v16, %v5046_v63  ;;  %v3072_v11 = vadd.f32 %v3056_v50, %v4752_v15  ;;  %v3953_v1 = vpop.eup %3952  ;;  %v2998_v5 = vadd.f32 1e-05, %v2982_v31  ;;  %v2997_v61 = vadd.f32 1e-05, %v2981_v35 }
0x2aa1   :  { %v3037_v19 = vmul.f32 %v3953_v1, %v5053_v54  ;;  %v3071_v52 = vadd.f32 %v3055_v47, %v4752_v15  ;;  %v2936_v29 = vpop.xlane.xlu0 %2935  ;;  %v2933_v6 = vpop.xlane.xlu1 %2932 }
0x2aa2   :  { %3738 = vmatpush3.xpose.msk.msra.mxu0 %vm326_vm8, %v3073_v22  ;;  %v3054_v63 = vmul.f32 %v3038_v17, %v4749_v58  ;;  %3966 = vrsqrt.f32 %v2998_v5  ;;  %v2980_v46 = vmul.f32 0.03125, %v2936_v29  ;;  %v2979_v27 = vmul.f32 0.03125, %v2933_v6 }
0x2aa3   :  { %3739 = vmatprep.subr.mxu0 %v3977_v4  ;;  %v3955_v23 = vpop.eup %3954  ;;  %v3053_v54 = vmul.f32 %v3037_v19, %v4749_v58  ;;  %3968 = vrsqrt.f32 %v2997_v61 }
0x2aa4   :  { %v3036_v60 = vmul.f32 %v3955_v23, %v5060_v24  ;;  %v3070_v32 = vadd.f32 %v3054_v63, %v4752_v15  ;;  %v3957_v25 = vpop.eup %3956  ;;  %v2996_v44 = vadd.f32 1e-05, %v2980_v46  ;;  %v2995_v9 = vadd.f32 1e-05, %v2979_v27 }
0x2aa5   :  { %v3035_v42 = vmul.f32 %v3957_v25, %v5067_v56  ;;  %v3069_v40 = vadd.f32 %v3053_v54, %v4752_v15 }
0x2aa6   :  { %3740 = vmatpush3.xpose.msk.msra.mxu0 %vm326_vm8, %v3072_v11  ;;  %v3052_v24 = vmul.f32 %v3036_v60, %v4749_v58  ;;  %3970 = vrsqrt.f32 %v2996_v44 }
0x2aa7   :  { %3741 = vmatprep.subr.mxu0 %v3977_v4  ;;  %v3959_v39 = vpop.eup %3958  ;;  %v3051_v56 = vmul.f32 %v3035_v42, %v4749_v58  ;;  %3972 = vrsqrt.f32 %v2995_v9 }
0x2aa8   :  { %v3034_v48 = vmul.f32 %v3959_v39, %v5074_v0  ;;  %v3068_v53 = vadd.f32 %v3052_v24, %v4752_v15 }
0x2aa9   :  { %v3961_v3 = vpop.eup %3960  ;;  %v3067_v45 = vadd.f32 %v3051_v56, %v4752_v15  ;;  %v3078_v28 = vpop.permute.xlu0 %3077 }
0x2aaa   :  { %3742 = vmatpush3.xpose.msk.msra.mxu0 %vm326_vm8, %v3071_v52  ;;  %v3033_v55 = vmul.f32 %v3961_v3, %v5081_v33  ;;  %v3050_v20 = vmul.f32 %v3034_v48, %v4749_v58  ;;  %v3080_v62 = vrot.slane %v3078_v28, 5 }
0x2aab   :  { %3743 = vmatprep.subr.mxu0 %v3977_v4  ;;  %v3963_v0 = vpop.eup %3962 }
0x2aac   :  { %v3032_v18 = vmul.f32 %v3963_v0, %v5088_v34  ;;  %v3066_v37 = vadd.f32 %v3050_v20, %v4752_v15  ;;  %v3049_v36 = vmul.f32 %v3033_v55, %v4749_v58  ;;  %v3965_v59 = vpop.eup %3964 }
0x2aad   :  { %v3031_v21 = vmul.f32 %v3965_v59, %v5095_v43 }
0x2aae   :  { %3744 = vmatpush3.xpose.msk.msra.mxu0 %vm326_vm8, %v3070_v32  ;;  %v3065_v2 = vadd.f32 %v3049_v36, %v4752_v15  ;;  %v3048_v41 = vmul.f32 %v3032_v18, %v4749_v58 }
0x2aaf   :  { %3745 = vmatprep.subr.mxu0 %v3977_v4  ;;  %v3967_v33 = vpop.eup %3966  ;;  %v3047_v16 = vmul.f32 %v3031_v21, %v4749_v58 }
0x2ab0   :  { %v3969_v34 = vpop.eup %3968  ;;  %v3030_v22 = vmul.f32 %v3967_v33, %v5102_v14  ;;  %v3064_v50 = vadd.f32 %v3048_v41, %v4752_v15 }
0x2ab1   :  { %v3029_v43 = vmul.f32 %v3969_v34, %v5109_v57  ;;  %v3063_v49 = vadd.f32 %v3047_v16, %v4752_v15 }
0x2ab2   :  { %3746 = vmatpush3.xpose.msk.msra.mxu0 %vm326_vm8, %v3069_v40  ;;  %v3046_v13 = vmul.f32 %v3030_v22, %v4749_v58 }
0x2ab3   :  { %3747 = vmatprep.subr.mxu0 %v3977_v4  ;;  %v3971_v17 = vpop.eup %3970  ;;  %v3045_v12 = vmul.f32 %v3029_v43, %v4749_v58 }
0x2ab4   :  { %v3028_v14 = vmul.f32 %v3971_v17, %v5116_v8  ;;  %v3062_v7 = vadd.f32 %v3046_v13, %v4752_v15  ;;  %v3973_v11 = vpop.eup %3972 }
0x2ab5   :  { %v3027_v57 = vmul.f32 %v3973_v11, %v5122_v38  ;;  %v3061_v47 = vadd.f32 %v3045_v12, %v4752_v15  ;;  %v3079_v38 = vrot.slane %v5135_v51, 4 }
0x2ab6   :  { %3748 = vmatpush3.xpose.msk.msra.mxu0 %vm326_vm8, %v3068_v53  ;;  %v3044_v1 = vmul.f32 %v3028_v14, %v4749_v58 }
0x2ab7   :  { %3749 = vmatprep.subr.mxu0 %v3977_v4  ;;  %v3043_v26 = vmul.f32 %v3027_v57, %v4749_v58 }
0x2ab8   :  { %v3060_v8 = vadd.f32 %v3044_v1, %v4752_v15 }
0x2ab9   :  { %v3059_v19 = vadd.f32 %v3043_v26, %v4752_v15 }
0x2aba   :  { %3750 = vmatpush3.xpose.msk.msra.mxu0 %vm326_vm8, %v3067_v45 }
0x2abb   :  { %3751 = vmatprep.subr.mxu0 %v3977_v4 }
0x2abe   :  { %3752 = vmatpush3.xpose.msk.msra.mxu0 %vm326_vm8, %v3066_v37 }
0x2abf   :  { %3753 = vmatprep.subr.mxu0 %v3977_v4 }
0x2ac2   :  { %3754 = vmatpush3.xpose.msk.msra.mxu0 %vm326_vm8, %v3065_v2 }
0x2ac3   :  { %3755 = vmatprep.subr.mxu0 %v3977_v4 }
0x2ac6   :  { %3756 = vmatpush3.xpose.msk.msra.mxu0 %vm326_vm8, %v3064_v50 }
0x2ac7   :  { %3757 = vmatprep.subr.mxu0 %v3977_v4 }
0x2aca   :  { %3758 = vmatpush3.xpose.msk.msra.mxu0 %vm326_vm8, %v3063_v49 }
0x2acb   :  { %3759 = vmatprep.subr.mxu0 %v3977_v4 }
0x2ace   :  { %3760 = vmatpush3.xpose.msk.msra.mxu0 %vm326_vm8, %v3062_v7 }
0x2acf   :  { %3761 = vmatprep.subr.mxu0 %v3977_v4 }
0x2ad2   :  { %3762 = vmatpush3.xpose.msk.msra.mxu0 %vm326_vm8, %v3061_v47 }
0x2ad3   :  { %3763 = vmatprep.subr.mxu0 %v3977_v4 }
0x2ad6   :  { %3764 = vmatpush3.xpose.msk.msra.mxu0 %vm326_vm8, %v3060_v8 }
0x2ad7   :  { %3765 = vmatprep.subr.mxu0 %v3977_v4 }
0x2ada   :  { %3766 = vmatpush3.xpose.msk.msra.mxu0 %vm326_vm8, %v3059_v19 }
0x2add   :  { %3768 = vmatmul.mubr.msk.f32.vlgmr.msra.gmra.mxu0 %vm326_vm8, %v3079_v38 }
0x2b9d   :  { %v3198_v52 = vpop.f32.mrf.mxu0 }
0x2b9e   :  { %v3199_v63 = vadd.f32 %v3198_v52, %v3080_v62 }
0x2b9f   :  { %v3769_v23 = vpop.f32.mrf.mxu0 }
0x2ba0   :  { %3202 = vst [vmem:[%s5230_s8] sm:$0x1] %v3199_v63 }

</bundles_post_ra>
